<compile_context>
chip_gen: v6e
topology: v6e:2x2x1
jax: 0.10.0
libtpu: 0.0.40
codegen_flags: <defaults>
</compile_context>

<pallas_src>
import functools

import jax
import jax.numpy as jnp
from jax.experimental import pallas as pl
from jax.experimental.pallas import tpu as pltpu

LATENT_DIM = 100
LATENT_PAD = 128                 # 100 -> 128 (MXU-aligned K)
IMG_SIZE = 28
HID1, HID2, HID3, FLAT_OUT = 128, 256, 512, 1024
OUT_DIM = IMG_SIZE * IMG_SIZE    # 784
OUT_PAD = 896                    # 784 -> 7*128 (lane-dense output)

_SELU_ALPHA = 1.6732632423543772
_SELU_SCALE = 1.0507009873554805


def _selu(x):
    # select (not multiply) -> exp overflow on the untaken branch cannot leak.
    return _SELU_SCALE * jnp.where(x > 0, x, _SELU_ALPHA * (jnp.exp(x) - 1.0))


def _generator_kernel(z_ref, w1_ref, b1_ref, w2_ref, w3_ref, w4_ref,
                      w5_ref, b5_ref, out_ref):
    # All matmuls: bf16 x bf16 -> f32 accumulate (MXU native on v5e/v6e/v7x).
    # SELU / bias-add / sigmoid stay in f32.
    h = jnp.dot(z_ref[...], w1_ref[...], preferred_element_type=jnp.float32)
    h = _selu(h + b1_ref[...])
    h = _selu(jnp.dot(h.astype(jnp.bfloat16), w2_ref[...],
                      preferred_element_type=jnp.float32))
    h = _selu(jnp.dot(h.astype(jnp.bfloat16), w3_ref[...],
                      preferred_element_type=jnp.float32))
    h = _selu(jnp.dot(h.astype(jnp.bfloat16), w4_ref[...],
                      preferred_element_type=jnp.float32))
    logits = jnp.dot(h.astype(jnp.bfloat16), w5_ref[...],
                     preferred_element_type=jnp.float32) + b5_ref[...]
    out_ref[...] = jax.nn.sigmoid(logits)


def _round_up(x, m):
    return ((x + m - 1) // m) * m


@functools.partial(jax.jit, static_argnames=("img_size",))
def generator_forward(z, params, img_size=IMG_SIZE):
    """z: (B, latent_dim) float32 -> images (B, 1, img_size, img_size) f32."""
    B = z.shape[0]
    w1, b1, w2, w3, w4, w5, b5 = params

    # Batch tile: large enough to feed the MXU and enable double-buffered
    # pipelining at big B, but never larger than the (8-padded) batch.
    TB = min(256, _round_up(B, 8))
    B_pad = _round_up(B, TB)

    # ---- layout / dtype prep (cheap XLA ops around the kernel) -------------
    z_p = jnp.zeros((B_pad, LATENT_PAD), jnp.bfloat16)
    z_p = z_p.at[:B, :LATENT_DIM].set(z.astype(jnp.bfloat16))

    w1_p = jnp.zeros((LATENT_PAD, HID1), jnp.bfloat16)
    w1_p = w1_p.at[:LATENT_DIM, :].set(w1.astype(jnp.bfloat16))

    w2_p = w2.astype(jnp.bfloat16)
    w3_p = w3.astype(jnp.bfloat16)
    w4_p = w4.astype(jnp.bfloat16)

    w5_p = jnp.zeros((FLAT_OUT, OUT_PAD), jnp.bfloat16)
    w5_p = w5_p.at[:, :OUT_DIM].set(w5.astype(jnp.bfloat16))
    b5_p = jnp.zeros((1, OUT_PAD), jnp.float32).at[:, :OUT_DIM].set(b5)

    # Weights/biases: constant block index -> stay resident across grid steps.
    const = lambda shape: pl.BlockSpec(shape, lambda i: (0, 0))

    out_flat = pl.pallas_call(
        _generator_kernel,
        out_shape=jax.ShapeDtypeStruct((B_pad, OUT_PAD), jnp.float32),
        grid_spec=pltpu.PrefetchScalarGridSpec(
            num_scalar_prefetch=0,
            grid=(B_pad // TB,),
            in_specs=[
                pl.BlockSpec((TB, LATENT_PAD), lambda i: (i, 0)),     # z tile
                const((LATENT_PAD, HID1)), const((1, HID1)),          # w1, b1
                const((HID1, HID2)), const((HID2, HID3)),             # w2, w3
                const((HID3, FLAT_OUT)),                              # w4
                const((FLAT_OUT, OUT_PAD)), const((1, OUT_PAD)),      # w5, b5
            ],
            out_specs=pl.BlockSpec((TB, OUT_PAD), lambda i: (i, 0)),
        ),
        compiler_params=pltpu.CompilerParams(
            dimension_semantics=("parallel",),   # v7x: 2 TCs split batch tiles
            vmem_limit_bytes=32 * 1024 * 1024,
        ),
    )(z_p, w1_p, b1, w2_p, w3_p, w4_p, w5_p, b5_p)

    out = out_flat[:B, :OUT_DIM]                 # drop batch + lane padding
    return out.reshape(B, 1, img_size, img_size)


def init_params(key):
    """Weights stored as (in_features, out_features) so the kernel computes
    x @ W (equivalent to PyTorch's x @ W_pt.T). PyTorch default uniform init."""
    def linear(key, fan_in, fan_out, bias):
        kw, kb = jax.random.split(key)
        bound = 1.0 / jnp.sqrt(fan_in)
        w = jax.random.uniform(kw, (fan_in, fan_out), jnp.float32, -bound, bound)
        if bias:
            b = jax.random.uniform(kb, (1, fan_out), jnp.float32, -bound, bound)
            return w, b
        return w, None

    k1, k2, k3, k4, k5 = jax.random.split(key, 5)
    w1, b1 = linear(k1, LATENT_DIM, HID1, bias=True)
    w2, _ = linear(k2, HID1, HID2, bias=False)
    w3, _ = linear(k3, HID2, HID3, bias=False)
    w4, _ = linear(k4, HID3, FLAT_OUT, bias=False)
    w5, b5 = linear(k5, FLAT_OUT, OUT_DIM, bias=True)
    return (w1, b1, w2, w3, w4, w5, b5)


def _reference_forward(z, params):
    """Pure-JAX reference mirroring the kernel's bf16-matmul / f32-activation
    numerics (zero padding has no numerical effect, so it is omitted here)."""
    w1, b1, w2, w3, w4, w5, b5 = params
    bf, f32 = jnp.bfloat16, jnp.float32
    h = jnp.dot(z.astype(bf), w1.astype(bf), preferred_element_type=f32)
    h = _selu(h + b1)
    h = _selu(jnp.dot(h.astype(bf), w2.astype(bf), preferred_element_type=f32))
    h = _selu(jnp.dot(h.astype(bf), w3.astype(bf), preferred_element_type=f32))
    h = _selu(jnp.dot(h.astype(bf), w4.astype(bf), preferred_element_type=f32))
    out = jax.nn.sigmoid(
        jnp.dot(h.astype(bf), w5.astype(bf), preferred_element_type=f32) + b5)
    return out.reshape(z.shape[0], 1, IMG_SIZE, IMG_SIZE)


# TODO(synk): forward_return_scene / generate_return_scene are unimplemented
# (raise NotImplementedError) in the PyTorch spec, so they have no kernel here.

if __name__ == "__main__":
    key = jax.random.PRNGKey(0)
    kp, kz = jax.random.split(key)
    params = init_params(kp)

    B = 8
    # generate_latent uses torch.rand -> U[0, 1)
    z = jax.random.uniform(kz, (B, LATENT_DIM), jnp.float32)

    imgs = generator_forward(z, params)
    imgs = jax.block_until_ready(imgs)

    assert imgs.shape == (B, 1, IMG_SIZE, IMG_SIZE), imgs.shape
    assert imgs.dtype == jnp.float32

    ref = _reference_forward(z, params)
    max_err = float(jnp.max(jnp.abs(imgs - ref)))
    assert jnp.allclose(imgs, ref, atol=1e-3, rtol=1e-3), f"mismatch: {max_err}"

    print("KERNEL_OK")
</pallas_src>

<mosaic_0001>
module attributes {stable_mosaic.version = 11 : i64} {
  func.func @_generator_kernel(%arg0: i32, %arg1: memref<8x128xbf16, #tpu.memory_space<vmem>>, %arg2: memref<128x128xbf16, #tpu.memory_space<vmem>>, %arg3: memref<1x128xf32, #tpu.memory_space<vmem>>, %arg4: memref<128x256xbf16, #tpu.memory_space<vmem>>, %arg5: memref<256x512xbf16, #tpu.memory_space<vmem>>, %arg6: memref<512x1024xbf16, #tpu.memory_space<vmem>>, %arg7: memref<1024x896xbf16, #tpu.memory_space<vmem>>, %arg8: memref<1x896xf32, #tpu.memory_space<vmem>>, %arg9: memref<8x896xf32, #tpu.memory_space<vmem>>) attributes {dimension_semantics = [#tpu.dimension_semantics<parallel>], iteration_bounds = array<i64: 1>, scalar_prefetch = 0 : i64, scratch_operands = 0 : i64, tpu.core_type = #tpu.core_type<tc>, window_params = [{transform_indices = @transform_0, window_bounds = array<i64: 8, 128>}, {pipeline_mode = #tpu.pipeline_mode<synchronous>, transform_indices = @transform_1, window_bounds = array<i64: 128, 128>}, {pipeline_mode = #tpu.pipeline_mode<synchronous>, transform_indices = @transform_2, window_bounds = array<i64: 1, 128>}, {pipeline_mode = #tpu.pipeline_mode<synchronous>, transform_indices = @transform_3, window_bounds = array<i64: 128, 256>}, {pipeline_mode = #tpu.pipeline_mode<synchronous>, transform_indices = @transform_4, window_bounds = array<i64: 256, 512>}, {pipeline_mode = #tpu.pipeline_mode<synchronous>, transform_indices = @transform_5, window_bounds = array<i64: 512, 1024>}, {pipeline_mode = #tpu.pipeline_mode<synchronous>, transform_indices = @transform_6, window_bounds = array<i64: 1024, 896>}, {pipeline_mode = #tpu.pipeline_mode<synchronous>, transform_indices = @transform_7, window_bounds = array<i64: 1, 896>}, {transform_indices = @transform_8, window_bounds = array<i64: 8, 896>}]} {
    %c0 = arith.constant 0 : index
    %c0_0 = arith.constant 0 : index
    %0 = vector.load %arg1[%c0, %c0_0] : memref<8x128xbf16, #tpu.memory_space<vmem>>, vector<8x128xbf16>
    %c0_1 = arith.constant 0 : index
    %c0_2 = arith.constant 0 : index
    %1 = vector.load %arg2[%c0_1, %c0_2] : memref<128x128xbf16, #tpu.memory_space<vmem>>, vector<128x128xbf16>
    %cst = arith.constant dense<0.000000e+00> : vector<8x128xf32>
    %2 = tpu.matmul %0, %1, %cst {dimension_numbers = #tpu.dot_dimension_numbers<[1], [0], [0], [1], [0, 0, 1, 1], [], []>} : vector<8x128xbf16>, vector<128x128xbf16>, vector<8x128xf32> -> vector<8x128xf32>
    %c0_3 = arith.constant 0 : index
    %c0_4 = arith.constant 0 : index
    %3 = vector.load %arg3[%c0_3, %c0_4] : memref<1x128xf32, #tpu.memory_space<vmem>>, vector<1x128xf32>
    %4 = vector.broadcast %3 : vector<1x128xf32> to vector<8x128xf32>
    %5 = arith.addf %2, %4 : vector<8x128xf32>
    %cst_5 = arith.constant 0.000000e+00 : f32
    %6 = vector.broadcast %cst_5 : f32 to vector<8x128xf32>
    %7 = arith.cmpf ogt, %5, %6 : vector<8x128xf32>
    %8 = math.exp %5 : vector<8x128xf32>
    %cst_6 = arith.constant 1.000000e+00 : f32
    %9 = vector.broadcast %cst_6 : f32 to vector<8x128xf32>
    %10 = arith.subf %8, %9 : vector<8x128xf32>
    %cst_7 = arith.constant 1.67326319 : f32
    %11 = vector.broadcast %cst_7 : f32 to vector<8x128xf32>
    %12 = arith.mulf %11, %10 : vector<8x128xf32>
    %13 = arith.select %7, %5, %12 : vector<8x128xi1>, vector<8x128xf32>
    %cst_8 = arith.constant 1.05070102 : f32
    %14 = vector.broadcast %cst_8 : f32 to vector<8x128xf32>
    %15 = arith.mulf %14, %13 : vector<8x128xf32>
    %16 = arith.truncf %15 : vector<8x128xf32> to vector<8x128xbf16>
    %c0_9 = arith.constant 0 : index
    %c0_10 = arith.constant 0 : index
    %17 = vector.load %arg4[%c0_9, %c0_10] : memref<128x256xbf16, #tpu.memory_space<vmem>>, vector<128x256xbf16>
    %cst_11 = arith.constant dense<0.000000e+00> : vector<8x256xf32>
    %18 = tpu.matmul %16, %17, %cst_11 {dimension_numbers = #tpu.dot_dimension_numbers<[1], [0], [0], [1], [0, 0, 1, 1], [], []>} : vector<8x128xbf16>, vector<128x256xbf16>, vector<8x256xf32> -> vector<8x256xf32>
    %cst_12 = arith.constant 0.000000e+00 : f32
    %19 = vector.broadcast %cst_12 : f32 to vector<8x256xf32>
    %20 = arith.cmpf ogt, %18, %19 : vector<8x256xf32>
    %21 = math.exp %18 : vector<8x256xf32>
    %cst_13 = arith.constant 1.000000e+00 : f32
    %22 = vector.broadcast %cst_13 : f32 to vector<8x256xf32>
    %23 = arith.subf %21, %22 : vector<8x256xf32>
    %cst_14 = arith.constant 1.67326319 : f32
    %24 = vector.broadcast %cst_14 : f32 to vector<8x256xf32>
    %25 = arith.mulf %24, %23 : vector<8x256xf32>
    %26 = arith.select %20, %18, %25 : vector<8x256xi1>, vector<8x256xf32>
    %cst_15 = arith.constant 1.05070102 : f32
    %27 = vector.broadcast %cst_15 : f32 to vector<8x256xf32>
    %28 = arith.mulf %27, %26 : vector<8x256xf32>
    %29 = arith.truncf %28 : vector<8x256xf32> to vector<8x256xbf16>
    %c0_16 = arith.constant 0 : index
    %c0_17 = arith.constant 0 : index
    %30 = vector.load %arg5[%c0_16, %c0_17] : memref<256x512xbf16, #tpu.memory_space<vmem>>, vector<256x512xbf16>
    %cst_18 = arith.constant dense<0.000000e+00> : vector<8x512xf32>
    %31 = tpu.matmul %29, %30, %cst_18 {dimension_numbers = #tpu.dot_dimension_numbers<[1], [0], [0], [1], [0, 0, 1, 1], [], []>} : vector<8x256xbf16>, vector<256x512xbf16>, vector<8x512xf32> -> vector<8x512xf32>
    %cst_19 = arith.constant 0.000000e+00 : f32
    %32 = vector.broadcast %cst_19 : f32 to vector<8x512xf32>
    %33 = arith.cmpf ogt, %31, %32 : vector<8x512xf32>
    %34 = math.exp %31 : vector<8x512xf32>
    %cst_20 = arith.constant 1.000000e+00 : f32
    %35 = vector.broadcast %cst_20 : f32 to vector<8x512xf32>
    %36 = arith.subf %34, %35 : vector<8x512xf32>
    %cst_21 = arith.constant 1.67326319 : f32
    %37 = vector.broadcast %cst_21 : f32 to vector<8x512xf32>
    %38 = arith.mulf %37, %36 : vector<8x512xf32>
    %39 = arith.select %33, %31, %38 : vector<8x512xi1>, vector<8x512xf32>
    %cst_22 = arith.constant 1.05070102 : f32
    %40 = vector.broadcast %cst_22 : f32 to vector<8x512xf32>
    %41 = arith.mulf %40, %39 : vector<8x512xf32>
    %42 = arith.truncf %41 : vector<8x512xf32> to vector<8x512xbf16>
    %c0_23 = arith.constant 0 : index
    %c0_24 = arith.constant 0 : index
    %43 = vector.load %arg6[%c0_23, %c0_24] : memref<512x1024xbf16, #tpu.memory_space<vmem>>, vector<512x1024xbf16>
    %cst_25 = arith.constant dense<0.000000e+00> : vector<8x1024xf32>
    %44 = tpu.matmul %42, %43, %cst_25 {dimension_numbers = #tpu.dot_dimension_numbers<[1], [0], [0], [1], [0, 0, 1, 1], [], []>} : vector<8x512xbf16>, vector<512x1024xbf16>, vector<8x1024xf32> -> vector<8x1024xf32>
    %cst_26 = arith.constant 0.000000e+00 : f32
    %45 = vector.broadcast %cst_26 : f32 to vector<8x1024xf32>
    %46 = arith.cmpf ogt, %44, %45 : vector<8x1024xf32>
    %47 = math.exp %44 : vector<8x1024xf32>
    %cst_27 = arith.constant 1.000000e+00 : f32
    %48 = vector.broadcast %cst_27 : f32 to vector<8x1024xf32>
    %49 = arith.subf %47, %48 : vector<8x1024xf32>
    %cst_28 = arith.constant 1.67326319 : f32
    %50 = vector.broadcast %cst_28 : f32 to vector<8x1024xf32>
    %51 = arith.mulf %50, %49 : vector<8x1024xf32>
    %52 = arith.select %46, %44, %51 : vector<8x1024xi1>, vector<8x1024xf32>
    %cst_29 = arith.constant 1.05070102 : f32
    %53 = vector.broadcast %cst_29 : f32 to vector<8x1024xf32>
    %54 = arith.mulf %53, %52 : vector<8x1024xf32>
    %55 = arith.truncf %54 : vector<8x1024xf32> to vector<8x1024xbf16>
    %c0_30 = arith.constant 0 : index
    %c0_31 = arith.constant 0 : index
    %56 = vector.load %arg7[%c0_30, %c0_31] : memref<1024x896xbf16, #tpu.memory_space<vmem>>, vector<1024x896xbf16>
    %cst_32 = arith.constant dense<0.000000e+00> : vector<8x896xf32>
    %57 = tpu.matmul %55, %56, %cst_32 {dimension_numbers = #tpu.dot_dimension_numbers<[1], [0], [0], [1], [0, 0, 1, 1], [], []>} : vector<8x1024xbf16>, vector<1024x896xbf16>, vector<8x896xf32> -> vector<8x896xf32>
    %c0_33 = arith.constant 0 : index
    %c0_34 = arith.constant 0 : index
    %58 = vector.load %arg8[%c0_33, %c0_34] : memref<1x896xf32, #tpu.memory_space<vmem>>, vector<1x896xf32>
    %59 = vector.broadcast %58 : vector<1x896xf32> to vector<8x896xf32>
    %60 = arith.addf %57, %59 : vector<8x896xf32>
    %61 = arith.negf %60 : vector<8x896xf32>
    %62 = math.exp %61 : vector<8x896xf32>
    %cst_35 = arith.constant 1.000000e+00 : f32
    %63 = vector.broadcast %cst_35 : f32 to vector<8x896xf32>
    %64 = arith.addf %63, %62 : vector<8x896xf32>
    %65 = arith.divf %63, %64 : vector<8x896xf32>
    %c0_36 = arith.constant 0 : index
    %c0_37 = arith.constant 0 : index
    %66 = vector.load %arg9[%c0_36, %c0_37] : memref<8x896xf32, #tpu.memory_space<vmem>>, vector<8x896xf32>
    tpu.vector_store %arg9[%c0_36, %c0_37], %65 {strides = array<i32>} : memref<8x896xf32, #tpu.memory_space<vmem>>, vector<8x896xf32>,
    return
  }
  func.func @transform_0(%arg0: i32) -> (i32, i32) {
    %c0_i32 = arith.constant 0 : i32
    %c0_i32_0 = arith.constant 0 : i32
    return %arg0, %c0_i32 : i32, i32
  }
  func.func @transform_1(%arg0: i32) -> (i32, i32) {
    %c0_i32 = arith.constant 0 : i32
    %c0_i32_0 = arith.constant 0 : i32
    %c0_i32_1 = arith.constant 0 : i32
    return %c0_i32, %c0_i32_0 : i32, i32
  }
  func.func @transform_2(%arg0: i32) -> (i32, i32) {
    %c0_i32 = arith.constant 0 : i32
    %c0_i32_0 = arith.constant 0 : i32
    %c0_i32_1 = arith.constant 0 : i32
    return %c0_i32, %c0_i32_0 : i32, i32
  }
  func.func @transform_3(%arg0: i32) -> (i32, i32) {
    %c0_i32 = arith.constant 0 : i32
    %c0_i32_0 = arith.constant 0 : i32
    %c0_i32_1 = arith.constant 0 : i32
    return %c0_i32, %c0_i32_0 : i32, i32
  }
  func.func @transform_4(%arg0: i32) -> (i32, i32) {
    %c0_i32 = arith.constant 0 : i32
    %c0_i32_0 = arith.constant 0 : i32
    %c0_i32_1 = arith.constant 0 : i32
    return %c0_i32, %c0_i32_0 : i32, i32
  }
  func.func @transform_5(%arg0: i32) -> (i32, i32) {
    %c0_i32 = arith.constant 0 : i32
    %c0_i32_0 = arith.constant 0 : i32
    %c0_i32_1 = arith.constant 0 : i32
    return %c0_i32, %c0_i32_0 : i32, i32
  }
  func.func @transform_6(%arg0: i32) -> (i32, i32) {
    %c0_i32 = arith.constant 0 : i32
    %c0_i32_0 = arith.constant 0 : i32
    %c0_i32_1 = arith.constant 0 : i32
    return %c0_i32, %c0_i32_0 : i32, i32
  }
  func.func @transform_7(%arg0: i32) -> (i32, i32) {
    %c0_i32 = arith.constant 0 : i32
    %c0_i32_0 = arith.constant 0 : i32
    %c0_i32_1 = arith.constant 0 : i32
    return %c0_i32, %c0_i32_0 : i32, i32
  }
  func.func @transform_8(%arg0: i32) -> (i32, i32) {
    %c0_i32 = arith.constant 0 : i32
    %c0_i32_0 = arith.constant 0 : i32
    return %arg0, %c0_i32 : i32, i32
  }
}

</mosaic_0001>

<bundles_post_ra>
// kernel: generator_forward.1
= control target key start
LH: loop header
LB: loop body
LE: loop exit
PB: predicated region body
PF: predicated region fallthrough
CT: control target
= control target key end

     0   :  { %v8049_v0 = vmov 0.0   ;;  %vm8050_vm0 = vmmov 0   ;;  %v8051_v26 = vmov 0   ;;  %s10654_s1 = inlined_call_operand.vmem [shape: bf16[128,128], index: 1, kind: input, shape index: {}]   ;;  %s10655_s3 = inlined_call_operand.vmem [shape: bf16[128,256], index: 3, kind: input, shape index: {}]   ;;  %s10656_s0 = inlined_call_operand.vmem [shape: bf16[8,128], index: 0, kind: input, shape index: {}]   ;;  %s10657_s4 = inlined_call_operand.vmem [shape: bf16[256,512], index: 4, kind: input, shape index: {}]   ;;  %s10658_s2 = inlined_call_operand.vmem [shape: f32[1,128], index: 2, kind: input, shape index: {}]   ;;  %s10659_s5 = inlined_call_operand.vmem [shape: bf16[512,1024], index: 5, kind: input, shape index: {}]   ;;  %s10660_s6 = inlined_call_operand.vmem [shape: bf16[1024,896], index: 6, kind: input, shape index: {}]   ;;  %s10661_s7 = inlined_call_operand.vmem [shape: f32[1,896], index: 7, kind: input, shape index: {}]   ;;  %s10662_s8 = inlined_call_operand.vmem [shape: f32[8,896], index: 8, kind: output, shape index: {}]  }
   0x1   :  { %7199 = vmatprep.subr.bf16.mxu0 %v8049_v0  ;;  %v7222_v1 = vld [vmem:[%s10654_s1 + $0x38] sm:$0xff]   ;;  %7215 = vmatprep.mubr.msk.bf16.mxu0 %vm8050_vm0, %v8049_v0  ;;  %v7223_v2 = vld [vmem:[%s10654_s1 + $0x30] sm:$0xff]   ;;  %v7224_v3 = vld [vmem:[%s10654_s1 + $0x28] sm:$0xff]  }
   0x2   :  { %7200 = vmatpush3.bf16.msra.mxu0 %v7222_v1  ;;  %v7225_v4 = vld [vmem:[%s10654_s1 + $0x20] sm:$0xff]   ;;  %v7230_v5 = vld [vmem:[%s10655_s3 + $0x74] ss:$8 sps:$4 sm:$0xff]   ;;  %v7232_v6 = vld [vmem:[%s10655_s3 + $0x70] ss:$8 sps:$4 sm:$0xff]   ;;  %278 = vmatprep.mubr.bf16.mxu1 %v8051_v26 }
   0x3   :  { %7201 = vmatprep.subr.bf16.mxu0 %v8049_v0  ;;  %246 = vmatprep.subr.bf16.mxu1 %v7230_v5  ;;  %v7226_v7 = vld [vmem:[%s10654_s1 + $0x18] sm:$0xff]   ;;  %v7227_v8 = vld [vmem:[%s10654_s1 + $0x10] sm:$0xff]   ;;  %v7228_v9 = vld [vmem:[%s10654_s1 + $0x8] sm:$0xff]  }
   0x4   :  { %247 = vmatpush1.bf16.msra.mxu1 %v7232_v6  ;;  %v7229_v10 = vld [vmem:[%s10654_s1] sm:$0xff]   ;;  %v7236_v14 = vld [vmem:[%s10655_s3 + $0x54] ss:$8 sps:$4 sm:$0xff]   ;;  %v7238_v15 = vld [vmem:[%s10655_s3 + $0x50] ss:$8 sps:$4 sm:$0xff]  }
   0x5   :  { %v30_v11 = vld [vmem:[%s10656_s0] sm:$0xf]  ;;  %v7233_v12 = vld [vmem:[%s10655_s3 + $0x64] ss:$8 sps:$4 sm:$0xff]   ;;  %v7242_v18 = vld [vmem:[%s10655_s3 + $0x34] ss:$8 sps:$4 sm:$0xff]  }
   0x6   :  { %7202 = vmatpush3.bf16.msra.mxu0 %v7223_v2  ;;  %v7235_v13 = vld [vmem:[%s10655_s3 + $0x60] ss:$8 sps:$4 sm:$0xff]   ;;  %248 = vmatprep.subr.bf16.mxu1 %v7233_v12  ;;  %v7239_v16 = vld [vmem:[%s10655_s3 + $0x44] ss:$8 sps:$4 sm:$0xff]   ;;  %v7244_v19 = vld [vmem:[%s10655_s3 + $0x30] ss:$8 sps:$4 sm:$0xff]  }
   0x7   :  { %7203 = vmatprep.subr.bf16.mxu0 %v8049_v0  ;;  %v7241_v17 = vld [vmem:[%s10655_s3 + $0x40] ss:$8 sps:$4 sm:$0xff]   ;;  %v7245_v20 = vld [vmem:[%s10655_s3 + $0x24] ss:$8 sps:$4 sm:$0xff]   ;;  %v7248_v22 = vld [vmem:[%s10655_s3 + $0x14] ss:$8 sps:$4 sm:$0xff]  }
   0x8   :  { %249 = vmatpush1.bf16.msra.mxu1 %v7235_v13  ;;  %v7247_v21 = vld [vmem:[%s10655_s3 + $0x20] ss:$8 sps:$4 sm:$0xff]   ;;  %v7250_v23 = vld [vmem:[%s10655_s3 + $0x10] ss:$8 sps:$4 sm:$0xff]   ;;  %v7251_v24 = vld [vmem:[%s10655_s3 + $0x4] ss:$8 sps:$4 sm:$0xff]  }
   0x9   :  { %250 = vmatprep.subr.bf16.mxu1 %v7236_v14  ;;  %v7253_v25 = vld [vmem:[%s10655_s3] ss:$8 sps:$4 sm:$0xff]   ;;  %v7256_v28 = vld [vmem:[%s10657_s4 + $0xe4] ss:$16 sps:$4 sm:$0xff]   ;;  %v7259_v29 = vld [vmem:[%s10657_s4 + $0xec] ss:$16 sps:$4 sm:$0xff]  }
   0xa   :  { %7204 = vmatpush3.bf16.msra.mxu0 %v7224_v3  ;;  %v7254_v27 = vld [vmem:[%s10657_s4 + $0xe0] ss:$16 sps:$4 sm:$0xff]   ;;  %v7262_v30 = vld [vmem:[%s10657_s4 + $0xc4] ss:$16 sps:$4 sm:$0xff]   ;;  %v7257_v58 = vld [vmem:[%s10657_s4 + $0xe8] ss:$16 sps:$4 sm:$0xff]  }
   0xb   :  { %7205 = vmatprep.subr.bf16.mxu0 %v8049_v0  ;;  %v7260_v31 = vld [vmem:[%s10657_s4 + $0xc0] ss:$16 sps:$4 sm:$0xff]   ;;  %v7268_v32 = vld [vmem:[%s10657_s4 + $0xa4] ss:$16 sps:$4 sm:$0xff]   ;;  %v7265_v60 = vld [vmem:[%s10657_s4 + $0xcc] ss:$16 sps:$4 sm:$0xff]  }
   0xc   :  { %251 = vmatpush1.bf16.msra.mxu1 %v7238_v15  ;;  %v7266_v33 = vld [vmem:[%s10657_s4 + $0xa0] ss:$16 sps:$4 sm:$0xff]   ;;  %v7274_v34 = vld [vmem:[%s10657_s4 + $0x84] ss:$16 sps:$4 sm:$0xff]   ;;  %v7263_v61 = vld [vmem:[%s10657_s4 + $0xc8] ss:$16 sps:$4 sm:$0xff]  }
   0xd   :  { %252 = vmatprep.subr.bf16.mxu1 %v7239_v16  ;;  %v7272_v35 = vld [vmem:[%s10657_s4 + $0x80] ss:$16 sps:$4 sm:$0xff]   ;;  %v7280_v36 = vld [vmem:[%s10657_s4 + $0x64] ss:$16 sps:$4 sm:$0xff]   ;;  %v7271_v62 = vld [vmem:[%s10657_s4 + $0xac] ss:$16 sps:$4 sm:$0xff]  }
   0xe   :  { %7206 = vmatpush3.bf16.msra.mxu0 %v7225_v4  ;;  %v7278_v37 = vld [vmem:[%s10657_s4 + $0x60] ss:$16 sps:$4 sm:$0xff]   ;;  %v7286_v38 = vld [vmem:[%s10657_s4 + $0x44] ss:$16 sps:$4 sm:$0xff]   ;;  %v7269_v63 = vld [vmem:[%s10657_s4 + $0xa8] ss:$16 sps:$4 sm:$0xff]  }
   0xf   :  { %7207 = vmatprep.subr.bf16.mxu0 %v8049_v0  ;;  %v7284_v39 = vld [vmem:[%s10657_s4 + $0x40] ss:$16 sps:$4 sm:$0xff]   ;;  %v7292_v40 = vld [vmem:[%s10657_s4 + $0x24] ss:$16 sps:$4 sm:$0xff]   ;;  %v7275_v1 = vld [vmem:[%s10657_s4 + $0x88] ss:$16 sps:$4 sm:$0xff]  }
  0x10   :  { %253 = vmatpush1.bf16.msra.mxu1 %v7241_v17  ;;  %v7290_v41 = vld [vmem:[%s10657_s4 + $0x20] ss:$16 sps:$4 sm:$0xff]   ;;  %v7298_v42 = vld [vmem:[%s10657_s4 + $0x4] ss:$16 sps:$4 sm:$0xff]   ;;  %v7283_v2 = vld [vmem:[%s10657_s4 + $0x6c] ss:$16 sps:$4 sm:$0xff]  }
  0x11   :  { %254 = vmatprep.subr.bf16.mxu1 %v7242_v18  ;;  %v7296_v43 = vld [vmem:[%s10657_s4] ss:$16 sps:$4 sm:$0xff]   ;;  %v7304_v44 = vld [vmem:[%s10657_s4 + $0x1e4] ss:$16 sps:$4 sm:$0xff]   ;;  %v7281_v3 = vld [vmem:[%s10657_s4 + $0x68] ss:$16 sps:$4 sm:$0xff]  }
  0x12   :  { %7208 = vmatpush3.bf16.msra.mxu0 %v7226_v7  ;;  %v7302_v45 = vld [vmem:[%s10657_s4 + $0x1e0] ss:$16 sps:$4 sm:$0xff]   ;;  %v7289_v4 = vld [vmem:[%s10657_s4 + $0x4c] ss:$16 sps:$4 sm:$0xff]   ;;  %v7287_v5 = vld [vmem:[%s10657_s4 + $0x48] ss:$16 sps:$4 sm:$0xff]  }
  0x13   :  { %7209 = vmatprep.subr.bf16.mxu0 %v8049_v0  ;;  %v6287_v46 = vld [vmem:[%s10658_s2] ss:$0 sm:$0xff]  ;;  %v7295_v6 = vld [vmem:[%s10657_s4 + $0x2c] ss:$16 sps:$4 sm:$0xff]   ;;  %v7293_v7 = vld [vmem:[%s10657_s4 + $0x28] ss:$16 sps:$4 sm:$0xff]  }
  0x14   :  { %255 = vmatpush1.bf16.msra.mxu1 %v7244_v19  ;;  %v7310_v12 = vld [vmem:[%s10657_s4 + $0x1c4] ss:$16 sps:$4 sm:$0xff]   ;;  %v7313_v13 = vld [vmem:[%s10657_s4 + $0x1cc] ss:$16 sps:$4 sm:$0xff]   ;;  %v7308_v14 = vld [vmem:[%s10657_s4 + $0x1c0] ss:$16 sps:$4 sm:$0xff]  }
  0x15   :  { %256 = vmatprep.subr.bf16.mxu1 %v7245_v20  ;;  %v7311_v15 = vld [vmem:[%s10657_s4 + $0x1c8] ss:$16 sps:$4 sm:$0xff]   ;;  %v7316_v16 = vld [vmem:[%s10657_s4 + $0x1a4] ss:$16 sps:$4 sm:$0xff]   ;;  %v7319_v17 = vld [vmem:[%s10657_s4 + $0x1ac] ss:$16 sps:$4 sm:$0xff]  }
  0x16   :  { %7210 = vmatpush3.bf16.msra.mxu0 %v7227_v8  ;;  %v7301_v8 = vld [vmem:[%s10657_s4 + $0xc] ss:$16 sps:$4 sm:$0xff]   ;;  %v7314_v18 = vld [vmem:[%s10657_s4 + $0x1a0] ss:$16 sps:$4 sm:$0xff]   ;;  %v7317_v19 = vld [vmem:[%s10657_s4 + $0x1a8] ss:$16 sps:$4 sm:$0xff]  }
  0x17   :  { %7211 = vmatprep.subr.bf16.mxu0 %v8049_v0  ;;  %v7322_v20 = vld [vmem:[%s10657_s4 + $0x184] ss:$16 sps:$4 sm:$0xff]   ;;  %v7326_v26 = vld [vmem:[%s10657_s4 + $0x160] ss:$16 sps:$4 sm:$0xff]  }
  0x18   :  { %257 = vmatpush1.bf16.msra.mxu1 %v7247_v21  ;;  %v7325_v21 = vld [vmem:[%s10657_s4 + $0x18c] ss:$16 sps:$4 sm:$0xff]  }
  0x19   :  { %258 = vmatprep.subr.bf16.mxu1 %v7248_v22  ;;  %v7320_v22 = vld [vmem:[%s10657_s4 + $0x180] ss:$16 sps:$4 sm:$0xff]  }
  0x1a   :  { %7212 = vmatpush3.bf16.msra.mxu0 %v7228_v9  ;;  %v7299_v9 = vld [vmem:[%s10657_s4 + $0x8] ss:$16 sps:$4 sm:$0xff]  }
  0x1b   :  { %7213 = vmatprep.subr.bf16.mxu0 %v8049_v0  ;;  %v7277_v0 = vld [vmem:[%s10657_s4 + $0x8c] ss:$16 sps:$4 sm:$0xff]  }
  0x1c   :  { %259 = vmatpush1.bf16.msra.mxu1 %v7250_v23  ;;  %v7323_v23 = vld [vmem:[%s10657_s4 + $0x188] ss:$16 sps:$4 sm:$0xff]  }
  0x1d   :  { %260 = vmatprep.subr.bf16.mxu1 %v7251_v24  ;;  %v7328_v24 = vld [vmem:[%s10657_s4 + $0x164] ss:$16 sps:$4 sm:$0xff]  }
  0x1e   :  { %7214 = vmatpush3.bf16.msra.mxu0 %v7229_v10  ;;  %v7307_v10 = vld [vmem:[%s10657_s4 + $0x1ec] ss:$16 sps:$4 sm:$0xff]  }
  0x1f   :  { %687 = vmatprep.subr.bf16.mxu0 %v7256_v28  ;;  %v7334_v28 = vld [vmem:[%s10657_s4 + $0x144] ss:$16 sps:$4 sm:$0xff]  }
  0x20   :  { %261 = vmatpush1.bf16.msra.mxu1 %v7253_v25  ;;  %v7331_v25 = vld [vmem:[%s10657_s4 + $0x16c] ss:$16 sps:$4 sm:$0xff]  }
  0x21   :  { %7216 = vmatmul.mubr.bf16.vlgmr.msra.gmra.mxu0 %v30_v11  ;;  %728 = vmatprep.subr.bf16.mxu1 %v7259_v29  ;;  %v7305_v11 = vld [vmem:[%s10657_s4 + $0x1e8] ss:$16 sps:$4 sm:$0xff]   ;;  %v7337_v29 = vld [vmem:[%s10657_s4 + $0x14c] ss:$16 sps:$4 sm:$0xff]  }
  0x22   :  { %688 = vmatpush1.bf16.msra.mxu0 %v7254_v27  ;;  %v7329_v27 = vld [vmem:[%s10657_s4 + $0x168] ss:$16 sps:$4 sm:$0xff]  }
  0x23   :  { %689 = vmatprep.subr.bf16.mxu0 %v7262_v30  ;;  %v7332_v30 = vld [vmem:[%s10657_s4 + $0x140] ss:$16 sps:$4 sm:$0xff]  }
  0x26   :  { %690 = vmatpush1.bf16.msra.mxu0 %v7260_v31  ;;  %v7335_v31 = vld [vmem:[%s10657_s4 + $0x148] ss:$16 sps:$4 sm:$0xff]  }
  0x27   :  { %691 = vmatprep.subr.bf16.mxu0 %v7268_v32  ;;  %v7340_v32 = vld [vmem:[%s10657_s4 + $0x124] ss:$16 sps:$4 sm:$0xff]  }
  0x2a   :  { %692 = vmatpush1.bf16.msra.mxu0 %v7266_v33  ;;  %v7343_v33 = vld [vmem:[%s10657_s4 + $0x12c] ss:$16 sps:$4 sm:$0xff]  }
  0x2b   :  { %693 = vmatprep.subr.bf16.mxu0 %v7274_v34  ;;  %v7338_v34 = vld [vmem:[%s10657_s4 + $0x120] ss:$16 sps:$4 sm:$0xff]  }
  0x2e   :  { %694 = vmatpush1.bf16.msra.mxu0 %v7272_v35  ;;  %v7341_v35 = vld [vmem:[%s10657_s4 + $0x128] ss:$16 sps:$4 sm:$0xff]  }
  0x2f   :  { %695 = vmatprep.subr.bf16.mxu0 %v7280_v36  ;;  %v7346_v36 = vld [vmem:[%s10657_s4 + $0x104] ss:$16 sps:$4 sm:$0xff]  }
  0x32   :  { %696 = vmatpush1.bf16.msra.mxu0 %v7278_v37  ;;  %v7349_v37 = vld [vmem:[%s10657_s4 + $0x10c] ss:$16 sps:$4 sm:$0xff]  }
  0x33   :  { %697 = vmatprep.subr.bf16.mxu0 %v7286_v38  ;;  %v7344_v38 = vld [vmem:[%s10657_s4 + $0x100] ss:$16 sps:$4 sm:$0xff]  }
  0x36   :  { %698 = vmatpush1.bf16.msra.mxu0 %v7284_v39  ;;  %v7347_v39 = vld [vmem:[%s10657_s4 + $0x108] ss:$16 sps:$4 sm:$0xff]  }
  0x37   :  { %699 = vmatprep.subr.bf16.mxu0 %v7292_v40  ;;  %v857_v40 = vld [vmem:[%s10659_s5 + $0x1c0] sm:$0xff] }
  0x3a   :  { %700 = vmatpush1.bf16.msra.mxu0 %v7290_v41  ;;  %v861_v41 = vld [vmem:[%s10659_s5 + $0x1e0] sm:$0xff] }
  0x3b   :  { %701 = vmatprep.subr.bf16.mxu0 %v7298_v42  ;;  %v985_v42 = vld [vmem:[%s10659_s5 + $0x5c0] sm:$0xff] }
  0x3e   :  { %702 = vmatpush1.bf16.msra.mxu0 %v7296_v43  ;;  %v6439_v43 = vcombine.low %v857_v40, %v861_v41 }
  0x3f   :  { %703 = vmatprep.subr.bf16.mxu0 %v7304_v44  ;;  %v6440_v44 = vcombine.high %v857_v40, %v861_v41  ;;  %v809_v40 = vld [vmem:[%s10659_s5 + $0x40] sm:$0xff] }
  0x40   :  { %v813_v41 = vld [vmem:[%s10659_s5 + $0x60] sm:$0xff] }
  0x42   :  { %704 = vmatpush2.bf16.msra.mxu0 %v7302_v45  ;;  %v989_v45 = vld [vmem:[%s10659_s5 + $0x5e0] sm:$0xff] }
  0x43   :  { %705 = vmatprep.subr.bf16.mxu0 %v7310_v12 }
  0x46   :  { %706 = vmatpush2.bf16.msra.mxu0 %v7308_v14 }
  0x47   :  { %707 = vmatprep.subr.bf16.mxu0 %v7316_v16  ;;  %v833_v16 = vld [vmem:[%s10659_s5 + $0x100] sm:$0xff] }
  0x4a   :  { %708 = vmatpush2.bf16.msra.mxu0 %v7314_v18  ;;  %v961_v18 = vld [vmem:[%s10659_s5 + $0x500] sm:$0xff] }
  0x4b   :  { %709 = vmatprep.subr.bf16.mxu0 %v7322_v20 }
  0x4e   :  { %710 = vmatpush2.bf16.msra.mxu0 %v7320_v22 }
  0x4f   :  { %711 = vmatprep.subr.bf16.mxu0 %v7328_v24  ;;  %v825_v24 = vld [vmem:[%s10659_s5 + $0xc0] sm:$0xff] }
  0x52   :  { %712 = vmatpush2.bf16.msra.mxu0 %v7326_v26  ;;  %v953_v26 = vld [vmem:[%s10659_s5 + $0x4c0] sm:$0xff] }
  0x53   :  { %713 = vmatprep.subr.bf16.mxu0 %v7334_v28 }
  0x56   :  { %714 = vmatpush2.bf16.msra.mxu0 %v7332_v30 }
  0x57   :  { %715 = vmatprep.subr.bf16.mxu0 %v7340_v32  ;;  %v817_v32 = vld [vmem:[%s10659_s5 + $0x80] sm:$0xff] }
  0x5a   :  { %716 = vmatpush2.bf16.msra.mxu0 %v7338_v34  ;;  %v945_v34 = vld [vmem:[%s10659_s5 + $0x480] sm:$0xff] }
  0x5b   :  { %717 = vmatprep.subr.bf16.mxu0 %v7346_v36 }
  0x5e   :  { %718 = vmatpush2.bf16.msra.mxu0 %v7344_v38 }
  0x5f   :  { %2337 = vmatprep.subr.bf16.mxu0 %v6440_v44 }
  0xe1   :  { %v136_v47 = vpop.f32.mrf.mxu0 }
  0xe2   :  { %v137_v48 = vadd.f32 %v6287_v46, %v136_v47  ;;  %v6567_v46 = vcombine.low %v985_v42, %v989_v45  ;;  %v6568_v47 = vcombine.high %v985_v42, %v989_v45  ;;  %v937_v42 = vld [vmem:[%s10659_s5 + $0x440] sm:$0xff] }
  0xe3   :  { %v7217_v49 = vpop.f32.mrf.mxu0 }
  0xe4   :  { %v143_v50 = vmul.f32 1.442695, %v137_v48  ;;  %vm142_vm1 = vcmp.gt.f32.partialorder %v137_v48, 0.0 }
  0xe5   :  { %v139_v51 = vpop.f32.mrf.mxu0 }
  0xe6   :  { %7990 = vpow2.f32 %v143_v50 }
  0xe7   :  { %v7218_v52 = vpop.f32.mrf.mxu0 }
  0xf3   :  { %v7991_v53 = vpop.eup %7990 }
  0xf4   :  { %v6296_v54 = vadd.f32 -1.0, %v7991_v53 }
  0xf6   :  { %v146_v55 = vmul.f32 1.6732632, %v6296_v54 }
  0xf8   :  { %v147_v56 = vsel %vm142_vm1, %v137_v48, %v146_v55 }
  0xf9   :  { %v148_v57 = vmul.f32 1.050701, %v147_v56 }
  0xfb   :  { %v149_v59 = vpack.c.bf16 %v148_v57, %v148_v57 }
  0xfd   :  { %279 = vmatmul.mubr.bf16.vlgmr.msra.gmra.mxu1 %v149_v59 }
  0xfe   :  { %729 = vmatpush1.bf16.msra.mxu1 %v7257_v58 }
  0xff   :  { %730 = vmatprep.subr.bf16.mxu1 %v7265_v60 }
 0x102   :  { %731 = vmatpush1.bf16.msra.mxu1 %v7263_v61 }
 0x103   :  { %732 = vmatprep.subr.bf16.mxu1 %v7271_v62 }
 0x106   :  { %733 = vmatpush1.bf16.msra.mxu1 %v7269_v63  ;;  %v849_v63 = vld [vmem:[%s10659_s5 + $0x180] sm:$0xff] }
 0x107   :  { %734 = vmatprep.subr.bf16.mxu1 %v7277_v0 }
 0x10a   :  { %735 = vmatpush1.bf16.msra.mxu1 %v7275_v1  ;;  %v853_v1 = vld [vmem:[%s10659_s5 + $0x1a0] sm:$0xff] }
 0x10b   :  { %736 = vmatprep.subr.bf16.mxu1 %v7283_v2  ;;  %v977_v2 = vld [vmem:[%s10659_s5 + $0x580] sm:$0xff]  ;;  %v6431_v12 = vcombine.low %v849_v63, %v853_v1 }
 0x10e   :  { %737 = vmatpush1.bf16.msra.mxu1 %v7281_v3  ;;  %v981_v3 = vld [vmem:[%s10659_s5 + $0x5a0] sm:$0xff] }
 0x10f   :  { %738 = vmatprep.subr.bf16.mxu1 %v7289_v4 }
 0x112   :  { %739 = vmatpush1.bf16.msra.mxu1 %v7287_v5 }
 0x113   :  { %740 = vmatprep.subr.bf16.mxu1 %v7295_v6  ;;  %v6432_v6 = vcombine.high %v849_v63, %v853_v1 }
 0x116   :  { %741 = vmatpush1.bf16.msra.mxu1 %v7293_v7  ;;  %v6560_v7 = vcombine.high %v977_v2, %v981_v3 }
 0x117   :  { %742 = vmatprep.subr.bf16.mxu1 %v7301_v8  ;;  %v841_v8 = vld [vmem:[%s10659_s5 + $0x140] sm:$0xff] }
 0x11a   :  { %743 = vmatpush1.bf16.msra.mxu1 %v7299_v9  ;;  %v845_v9 = vld [vmem:[%s10659_s5 + $0x160] sm:$0xff] }
 0x11b   :  { %744 = vmatprep.subr.bf16.mxu1 %v7307_v10  ;;  %v969_v10 = vld [vmem:[%s10659_s5 + $0x540] sm:$0xff]  ;;  %v6424_v14 = vcombine.high %v841_v8, %v845_v9  ;;  %v6423_v20 = vcombine.low %v841_v8, %v845_v9 }
 0x11e   :  { %745 = vmatpush2.bf16.msra.mxu1 %v7305_v11  ;;  %v973_v11 = vld [vmem:[%s10659_s5 + $0x560] sm:$0xff] }
 0x11f   :  { %746 = vmatprep.subr.bf16.mxu1 %v7313_v13  ;;  %v6559_v13 = vcombine.low %v977_v2, %v981_v3  ;;  %v913_v2 = vld [vmem:[%s10659_s5 + $0x380] sm:$0xff] }
 0x120   :  { %v917_v3 = vld [vmem:[%s10659_s5 + $0x3a0] sm:$0xff] }
 0x122   :  { %747 = vmatpush2.bf16.msra.mxu1 %v7311_v15  ;;  %v6552_v15 = vcombine.high %v969_v10, %v973_v11 }
 0x123   :  { %748 = vmatprep.subr.bf16.mxu1 %v7319_v17  ;;  %v837_v17 = vld [vmem:[%s10659_s5 + $0x120] sm:$0xff] }
 0x124   :  { %v6416_v22 = vcombine.high %v833_v16, %v837_v17  ;;  %v6415_v28 = vcombine.low %v833_v16, %v837_v17 }
 0x126   :  { %749 = vmatpush2.bf16.msra.mxu1 %v7317_v19  ;;  %v965_v19 = vld [vmem:[%s10659_s5 + $0x520] sm:$0xff] }
 0x127   :  { %750 = vmatprep.subr.bf16.mxu1 %v7325_v21  ;;  %v6551_v21 = vcombine.low %v969_v10, %v973_v11  ;;  %v905_v10 = vld [vmem:[%s10659_s5 + $0x340] sm:$0xff] }
 0x128   :  { %v909_v11 = vld [vmem:[%s10659_s5 + $0x360] sm:$0xff] }
 0x12a   :  { %751 = vmatpush2.bf16.msra.mxu1 %v7323_v23  ;;  %v6544_v23 = vcombine.high %v961_v18, %v965_v19 }
 0x12b   :  { %752 = vmatprep.subr.bf16.mxu1 %v7331_v25  ;;  %v829_v25 = vld [vmem:[%s10659_s5 + $0xe0] sm:$0xff] }
 0x12c   :  { %v6408_v30 = vcombine.high %v825_v24, %v829_v25  ;;  %v6407_v36 = vcombine.low %v825_v24, %v829_v25 }
 0x12e   :  { %753 = vmatpush2.bf16.msra.mxu1 %v7329_v27  ;;  %v957_v27 = vld [vmem:[%s10659_s5 + $0x4e0] sm:$0xff] }
 0x12f   :  { %754 = vmatprep.subr.bf16.mxu1 %v7337_v29  ;;  %v6543_v29 = vcombine.low %v961_v18, %v965_v19  ;;  %v897_v18 = vld [vmem:[%s10659_s5 + $0x300] sm:$0xff] }
 0x130   :  { %v901_v19 = vld [vmem:[%s10659_s5 + $0x320] sm:$0xff] }
 0x132   :  { %755 = vmatpush2.bf16.msra.mxu1 %v7335_v31  ;;  %v6536_v31 = vcombine.high %v953_v26, %v957_v27 }
 0x133   :  { %756 = vmatprep.subr.bf16.mxu1 %v7343_v33  ;;  %v821_v33 = vld [vmem:[%s10659_s5 + $0xa0] sm:$0xff] }
 0x134   :  { %v6400_v38 = vcombine.high %v817_v32, %v821_v33  ;;  %v6399_v44 = vcombine.low %v817_v32, %v821_v33 }
 0x136   :  { %757 = vmatpush2.bf16.msra.mxu1 %v7341_v35  ;;  %v949_v35 = vld [vmem:[%s10659_s5 + $0x4a0] sm:$0xff] }
 0x137   :  { %758 = vmatprep.subr.bf16.mxu1 %v7349_v37  ;;  %v6535_v37 = vcombine.low %v953_v26, %v957_v27  ;;  %v6527_v45 = vcombine.low %v945_v34, %v949_v35  ;;  %v889_v26 = vld [vmem:[%s10659_s5 + $0x2c0] sm:$0xff] }
 0x138   :  { %v893_v27 = vld [vmem:[%s10659_s5 + $0x2e0] sm:$0xff] }
 0x13a   :  { %759 = vmatpush2.bf16.msra.mxu1 %v7347_v39  ;;  %v6528_v39 = vcombine.high %v945_v34, %v949_v35  ;;  %v881_v34 = vld [vmem:[%s10659_s5 + $0x280] sm:$0xff] }
 0x13b   :  { %2378 = vmatprep.subr.bf16.mxu1 %v6568_v47  ;;  %v885_v35 = vld [vmem:[%s10659_s5 + $0x2a0] sm:$0xff] }
 0x1bd   :  { %v280_v48 = vpop.f32.mrf.mxu1 }
 0x1be   :  { %v289_v49 = vmul.f32 1.442695, %v280_v48  ;;  %vm287_vm2 = vcmp.gt.f32.partialorder %v280_v48, 0.0 }
 0x1bf   :  { %v282_v50 = vpop.f32.mrf.mxu1 }
 0x1c0   :  { %7992 = vpow2.f32 %v289_v49  ;;  %v291_v51 = vmul.f32 1.442695, %v282_v50  ;;  %vm288_vm3 = vcmp.gt.f32.partialorder %v282_v50, 0.0  ;;  %v805_v49 = vld [vmem:[%s10659_s5 + $0x20] sm:$0xff] }
 0x1c1   :  { %v284_v52 = vpop.f32.mrf.mxu1 }
 0x1c2   :  { %7994 = vpow2.f32 %v291_v51  ;;  %v933_v51 = vld [vmem:[%s10659_s5 + $0x420] sm:$0xff]  ;;  %v6391_v52 = vcombine.low %v809_v40, %v813_v41 }
 0x1c3   :  { %v285_v53 = vpop.f32.mrf.mxu1 }
 0x1cd   :  { %v7993_v54 = vpop.eup %7992 }
 0x1ce   :  { %v6313_v55 = vadd.f32 -1.0, %v7993_v54 }
 0x1cf   :  { %v7995_v56 = vpop.eup %7994 }
 0x1d0   :  { %v295_v57 = vmul.f32 1.6732632, %v6313_v55  ;;  %v6314_v58 = vadd.f32 -1.0, %v7995_v56  ;;  %v921_v56 = vld [vmem:[%s10659_s5 + $0x3c0] sm:$0xff] }
 0x1d2   :  { %v297_v59 = vsel %vm287_vm2, %v280_v48, %v295_v57  ;;  %v296_v60 = vmul.f32 1.6732632, %v6314_v58  ;;  %v801_v48 = vld [vmem:[%s10659_s5] sm:$0xff] }
 0x1d3   :  { %v299_v61 = vmul.f32 1.050701, %v297_v59  ;;  %v6384_v54 = vcombine.high %v801_v48, %v805_v49  ;;  %v925_v57 = vld [vmem:[%s10659_s5 + $0x3e0] sm:$0xff] }
 0x1d4   :  { %v298_v62 = vsel %vm288_vm3, %v282_v50, %v296_v60  ;;  %v929_v50 = vld [vmem:[%s10659_s5 + $0x400] sm:$0xff]  ;;  %v6383_v60 = vcombine.low %v801_v48, %v805_v49 }
 0x1d5   :  { %v300_v0 = vmul.f32 1.050701, %v298_v62  ;;  %v301_v5 = vpack.c.bf16 %v299_v61, %v299_v61  ;;  %v6512_v55 = vcombine.high %v929_v50, %v933_v51  ;;  %v1049_v58 = vld [vmem:[%s10659_s5 + $0x7c0] sm:$0xff]  ;;  %v6511_v61 = vcombine.low %v929_v50, %v933_v51 }
 0x1d6   :  { %v1053_v59 = vld [vmem:[%s10659_s5 + $0x7e0] sm:$0xff]  ;;  %v6504_v62 = vcombine.high %v921_v56, %v925_v57 }
 0x1d7   :  { %v302_v4 = vpack.c.bf16 %v300_v0, %v300_v0  ;;  %v6632_v63 = vcombine.high %v1049_v58, %v1053_v59  ;;  %v6503_v0 = vcombine.low %v921_v56, %v925_v57  ;;  %v6631_v1 = vcombine.low %v1049_v58, %v1053_v59  ;;  %v865_v50 = vld [vmem:[%s10659_s5 + $0x200] sm:$0xff]  ;;  %v8562_v58 = vld [vmem:[%s10659_s5 + $0x1c8] sm:$0xff] }
 0x1d8   :  { %v869_v51 = vld [vmem:[%s10659_s5 + $0x220] sm:$0xff]  ;;  %v8567_v59 = vld [vmem:[%s10659_s5 + $0x1e8] sm:$0xff] }
 0x1d9   :  { %719 = vmatprep.mubr.bf16.mxu0 %v302_v4  ;;  %760 = vmatprep.mubr.bf16.mxu1 %v302_v4  ;;  %v1041_v4 = vld [vmem:[%s10659_s5 + $0x780] sm:$0xff] }
 0x1da   :  { %720 = vmatmul.mubr.bf16.vlgmr.msra.gmra.mxu0 %v301_v5  ;;  %761 = vmatmul.mubr.bf16.vlgmr.msra.gmra.mxu1 %v301_v5  ;;  %v6496_v5 = vcombine.high %v913_v2, %v917_v3 }
 0x1db   :  { %2338 = vmatpush1.bf16.msra.mxu0 %v6439_v43  ;;  %2379 = vmatpush1.bf16.msra.mxu1 %v6567_v46  ;;  %v941_v43 = vld [vmem:[%s10659_s5 + $0x460] sm:$0xff]  ;;  %v6392_v46 = vcombine.high %v809_v40, %v813_v41 }
 0x1dc   :  { %2339 = vmatprep.subr.bf16.mxu0 %v6432_v6  ;;  %2380 = vmatprep.subr.bf16.mxu1 %v6560_v7  ;;  %v6520_v47 = vcombine.high %v937_v42, %v941_v43  ;;  %v6519_v53 = vcombine.low %v937_v42, %v941_v43  ;;  %v1045_v6 = vld [vmem:[%s10659_s5 + $0x7a0] sm:$0xff]  ;;  %v6495_v7 = vcombine.low %v913_v2, %v917_v3 }
 0x1dd   :  { %v6623_v8 = vcombine.low %v1041_v4, %v1045_v6  ;;  %v6624_v9 = vcombine.high %v1041_v4, %v1045_v6  ;;  %v873_v42 = vld [vmem:[%s10659_s5 + $0x240] sm:$0xff] }
 0x1de   :  { %v877_v43 = vld [vmem:[%s10659_s5 + $0x260] sm:$0xff] }
 0x1df   :  { %2340 = vmatpush1.bf16.msra.mxu0 %v6431_v12  ;;  %2381 = vmatpush1.bf16.msra.mxu1 %v6559_v13  ;;  %v1033_v12 = vld [vmem:[%s10659_s5 + $0x740] sm:$0xff]  ;;  %v6488_v13 = vcombine.high %v905_v10, %v909_v11 }
 0x1e0   :  { %2341 = vmatprep.subr.bf16.mxu0 %v6424_v14  ;;  %2382 = vmatprep.subr.bf16.mxu1 %v6552_v15  ;;  %v1037_v14 = vld [vmem:[%s10659_s5 + $0x760] sm:$0xff]  ;;  %v6487_v15 = vcombine.low %v905_v10, %v909_v11 }
 0x1e1   :  { %v6615_v16 = vcombine.low %v1033_v12, %v1037_v14  ;;  %v6616_v17 = vcombine.high %v1033_v12, %v1037_v14 }
 0x1e3   :  { %2342 = vmatpush1.bf16.msra.mxu0 %v6423_v20  ;;  %2383 = vmatpush1.bf16.msra.mxu1 %v6551_v21  ;;  %v1025_v20 = vld [vmem:[%s10659_s5 + $0x700] sm:$0xff]  ;;  %v6480_v21 = vcombine.high %v897_v18, %v901_v19 }
 0x1e4   :  { %2343 = vmatprep.subr.bf16.mxu0 %v6416_v22  ;;  %2384 = vmatprep.subr.bf16.mxu1 %v6544_v23  ;;  %v1029_v22 = vld [vmem:[%s10659_s5 + $0x720] sm:$0xff]  ;;  %v6479_v23 = vcombine.low %v897_v18, %v901_v19 }
 0x1e5   :  { %v6607_v24 = vcombine.low %v1025_v20, %v1029_v22  ;;  %v6608_v25 = vcombine.high %v1025_v20, %v1029_v22 }
 0x1e7   :  { %2344 = vmatpush1.bf16.msra.mxu0 %v6415_v28  ;;  %2385 = vmatpush1.bf16.msra.mxu1 %v6543_v29  ;;  %v1017_v28 = vld [vmem:[%s10659_s5 + $0x6c0] sm:$0xff]  ;;  %v6472_v29 = vcombine.high %v889_v26, %v893_v27 }
 0x1e8   :  { %2345 = vmatprep.subr.bf16.mxu0 %v6408_v30  ;;  %2386 = vmatprep.subr.bf16.mxu1 %v6536_v31  ;;  %v1021_v30 = vld [vmem:[%s10659_s5 + $0x6e0] sm:$0xff]  ;;  %v6471_v31 = vcombine.low %v889_v26, %v893_v27 }
 0x1e9   :  { %v6599_v32 = vcombine.low %v1017_v28, %v1021_v30  ;;  %v6600_v33 = vcombine.high %v1017_v28, %v1021_v30 }
 0x1eb   :  { %2346 = vmatpush1.bf16.msra.mxu0 %v6407_v36  ;;  %2387 = vmatpush1.bf16.msra.mxu1 %v6535_v37  ;;  %v1009_v36 = vld [vmem:[%s10659_s5 + $0x680] sm:$0xff]  ;;  %v6464_v37 = vcombine.high %v881_v34, %v885_v35 }
 0x1ec   :  { %2347 = vmatprep.subr.bf16.mxu0 %v6400_v38  ;;  %2388 = vmatprep.subr.bf16.mxu1 %v6528_v39  ;;  %v1013_v38 = vld [vmem:[%s10659_s5 + $0x6a0] sm:$0xff]  ;;  %v6463_v39 = vcombine.low %v881_v34, %v885_v35  ;;  %v850_v34 = vld [vmem:[%s10659_s5 + $0x188] sm:$0xff] }
 0x1ed   :  { %v6591_v40 = vcombine.low %v1009_v36, %v1013_v38  ;;  %v6592_v41 = vcombine.high %v1009_v36, %v1013_v38  ;;  %v854_v35 = vld [vmem:[%s10659_s5 + $0x1a8] sm:$0xff] }
 0x1ee   :  { %v982_v38 = vld [vmem:[%s10659_s5 + $0x5a8] sm:$0xff] }
 0x1ef   :  { %2348 = vmatpush1.bf16.msra.mxu0 %v6399_v44  ;;  %2389 = vmatpush1.bf16.msra.mxu1 %v6527_v45  ;;  %v1001_v44 = vld [vmem:[%s10659_s5 + $0x640] sm:$0xff]  ;;  %v6456_v45 = vcombine.high %v873_v42, %v877_v43 }
 0x1f0   :  { %2349 = vmatprep.subr.bf16.mxu0 %v6392_v46  ;;  %2390 = vmatprep.subr.bf16.mxu1 %v6520_v47  ;;  %v1005_v46 = vld [vmem:[%s10659_s5 + $0x660] sm:$0xff]  ;;  %v6455_v47 = vcombine.low %v873_v42, %v877_v43  ;;  %v6434_v42 = vcombine.high %v850_v34, %v854_v35  ;;  %v842_v43 = vld [vmem:[%s10659_s5 + $0x148] sm:$0xff] }
 0x1f1   :  { %v6583_v48 = vcombine.low %v1001_v44, %v1005_v46  ;;  %v6584_v49 = vcombine.high %v1001_v44, %v1005_v46  ;;  %v846_v44 = vld [vmem:[%s10659_s5 + $0x168] sm:$0xff] }
 0x1f2   :  { %v970_v46 = vld [vmem:[%s10659_s5 + $0x548] sm:$0xff] }
 0x1f3   :  { %2350 = vmatpush1.bf16.msra.mxu0 %v6391_v52  ;;  %2391 = vmatpush1.bf16.msra.mxu1 %v6519_v53  ;;  %v993_v52 = vld [vmem:[%s10659_s5 + $0x600] sm:$0xff]  ;;  %v6448_v53 = vcombine.high %v865_v50, %v869_v51 }
 0x1f4   :  { %2351 = vmatprep.subr.bf16.mxu0 %v6384_v54  ;;  %2392 = vmatprep.subr.bf16.mxu1 %v6512_v55  ;;  %v997_v54 = vld [vmem:[%s10659_s5 + $0x620] sm:$0xff]  ;;  %v6447_v55 = vcombine.low %v865_v50, %v869_v51  ;;  %v6426_v50 = vcombine.high %v842_v43, %v846_v44 }
 0x1f5   :  { %v6575_v56 = vcombine.low %v993_v52, %v997_v54  ;;  %v6576_v57 = vcombine.high %v993_v52, %v997_v54  ;;  %v834_v52 = vld [vmem:[%s10659_s5 + $0x108] sm:$0xff] }
 0x1f6   :  { %v962_v54 = vld [vmem:[%s10659_s5 + $0x508] sm:$0xff] }
 0x1f7   :  { %2352 = vmatpush1.bf16.msra.mxu0 %v6383_v60  ;;  %2393 = vmatpush1.bf16.msra.mxu1 %v6511_v61  ;;  %v8572_v60 = vld [vmem:[%s10659_s5 + $0x5c8] sm:$0xff]  ;;  %v6442_v61 = vcombine.high %v8562_v58, %v8567_v59 }
 0x1f8   :  { %2353 = vmatprep.subr.bf16.mxu0 %v6504_v62  ;;  %2394 = vmatprep.subr.bf16.mxu1 %v6632_v63  ;;  %v8579_v62 = vld [vmem:[%s10659_s5 + $0x5e8] sm:$0xff]  ;;  %v6441_v63 = vcombine.low %v8562_v58, %v8567_v59 }
 0x1fb   :  { %2354 = vmatpush2.bf16.msra.mxu0 %v6503_v0  ;;  %2395 = vmatpush2.bf16.msra.mxu1 %v6631_v1  ;;  %v6569_v0 = vcombine.low %v8572_v60, %v8579_v62  ;;  %v6570_v1 = vcombine.high %v8572_v60, %v8579_v62  ;;  %v826_v60 = vld [vmem:[%s10659_s5 + $0xc8] sm:$0xff] }
 0x1fc   :  { %2355 = vmatprep.subr.bf16.mxu0 %v6496_v5  ;;  %2396 = vmatprep.subr.bf16.mxu1 %v6624_v9  ;;  %v954_v62 = vld [vmem:[%s10659_s5 + $0x4c8] sm:$0xff] }
 0x1ff   :  { %2356 = vmatpush2.bf16.msra.mxu0 %v6495_v7  ;;  %2397 = vmatpush2.bf16.msra.mxu1 %v6623_v8 }
 0x200   :  { %2357 = vmatprep.subr.bf16.mxu0 %v6488_v13  ;;  %2398 = vmatprep.subr.bf16.mxu1 %v6616_v17 }
 0x203   :  { %2358 = vmatpush2.bf16.msra.mxu0 %v6487_v15  ;;  %2399 = vmatpush2.bf16.msra.mxu1 %v6615_v16 }
 0x204   :  { %2359 = vmatprep.subr.bf16.mxu0 %v6480_v21  ;;  %2400 = vmatprep.subr.bf16.mxu1 %v6608_v25 }
 0x207   :  { %2360 = vmatpush2.bf16.msra.mxu0 %v6479_v23  ;;  %2401 = vmatpush2.bf16.msra.mxu1 %v6607_v24 }
 0x208   :  { %2361 = vmatprep.subr.bf16.mxu0 %v6472_v29  ;;  %2402 = vmatprep.subr.bf16.mxu1 %v6600_v33 }
 0x20b   :  { %2362 = vmatpush2.bf16.msra.mxu0 %v6471_v31  ;;  %2403 = vmatpush2.bf16.msra.mxu1 %v6599_v32 }
 0x20c   :  { %2363 = vmatprep.subr.bf16.mxu0 %v6464_v37  ;;  %2404 = vmatprep.subr.bf16.mxu1 %v6592_v41  ;;  %v978_v37 = vld [vmem:[%s10659_s5 + $0x588] sm:$0xff] }
 0x20f   :  { %2364 = vmatpush2.bf16.msra.mxu0 %v6463_v39  ;;  %2405 = vmatpush2.bf16.msra.mxu1 %v6591_v40 }
 0x210   :  { %2365 = vmatprep.subr.bf16.mxu0 %v6456_v45  ;;  %2406 = vmatprep.subr.bf16.mxu1 %v6584_v49  ;;  %v6562_v45 = vcombine.high %v978_v37, %v982_v38  ;;  %v6561_v49 = vcombine.low %v978_v37, %v982_v38  ;;  %v914_v37 = vld [vmem:[%s10659_s5 + $0x388] sm:$0xff] }
 0x211   :  { %v918_v38 = vld [vmem:[%s10659_s5 + $0x3a8] sm:$0xff] }
 0x213   :  { %2366 = vmatpush2.bf16.msra.mxu0 %v6455_v47  ;;  %2407 = vmatpush2.bf16.msra.mxu1 %v6583_v48  ;;  %v974_v47 = vld [vmem:[%s10659_s5 + $0x568] sm:$0xff]  ;;  %v6433_v48 = vcombine.low %v850_v34, %v854_v35 }
 0x214   :  { %2367 = vmatprep.subr.bf16.mxu0 %v6448_v53  ;;  %2408 = vmatprep.subr.bf16.mxu1 %v6576_v57  ;;  %v6554_v51 = vcombine.high %v970_v46, %v974_v47  ;;  %v838_v53 = vld [vmem:[%s10659_s5 + $0x128] sm:$0xff]  ;;  %v6553_v57 = vcombine.low %v970_v46, %v974_v47  ;;  %v6498_v46 = vcombine.high %v914_v37, %v918_v38 }
 0x215   :  { %v6418_v58 = vcombine.high %v834_v52, %v838_v53 }
 0x217   :  { %2368 = vmatpush2.bf16.msra.mxu0 %v6447_v55  ;;  %2409 = vmatpush2.bf16.msra.mxu1 %v6575_v56  ;;  %v966_v55 = vld [vmem:[%s10659_s5 + $0x528] sm:$0xff]  ;;  %v6425_v56 = vcombine.low %v842_v43, %v846_v44 }
 0x218   :  { %2419 = vmatprep.subr.bf16.mxu0 %v6442_v61  ;;  %2460 = vmatprep.subr.bf16.mxu1 %v6570_v1  ;;  %v6546_v59 = vcombine.high %v962_v54, %v966_v55  ;;  %v830_v61 = vld [vmem:[%s10659_s5 + $0xe8] sm:$0xff]  ;;  %v6545_v1 = vcombine.low %v962_v54, %v966_v55 }
 0x219   :  { %v1046_v43 = vld [vmem:[%s10659_s5 + $0x7a8] sm:$0xff] }
 0x29a   :  { %v721_v2 = vpop.f32.mrf.mxu0  ;;  %v762_v3 = vpop.f32.mrf.mxu1 }
 0x29b   :  { %v773_v4 = vmul.f32 1.442695, %v721_v2  ;;  %v777_v5 = vmul.f32 1.442695, %v762_v3  ;;  %vm769_vm4 = vcmp.gt.f32.partialorder %v721_v2, 0.0  ;;  %vm771_vm5 = vcmp.gt.f32.partialorder %v762_v3, 0.0 }
 0x29c   :  { %v723_v6 = vpop.f32.mrf.mxu0  ;;  %v764_v7 = vpop.f32.mrf.mxu1 }
 0x29d   :  { %7996 = vpow2.f32 %v773_v4  ;;  %v775_v8 = vmul.f32 1.442695, %v723_v6  ;;  %v779_v9 = vmul.f32 1.442695, %v764_v7  ;;  %vm770_vm6 = vcmp.gt.f32.partialorder %v723_v6, 0.0  ;;  %v818_v4 = vld [vmem:[%s10659_s5 + $0x88] sm:$0xff] }
 0x29e   :  { %7998 = vpow2.f32 %v777_v5  ;;  %v725_v10 = vpop.f32.mrf.mxu0  ;;  %v766_v11 = vpop.f32.mrf.mxu1  ;;  %vm772_vm7 = vcmp.gt.f32.partialorder %v764_v7, 0.0  ;;  %v822_v5 = vld [vmem:[%s10659_s5 + $0xa8] sm:$0xff] }
 0x29f   :  { %8000 = vpow2.f32 %v775_v8  ;;  %v6409_v8 = vcombine.low %v826_v60, %v830_v61  ;;  %v6402_v10 = vcombine.high %v818_v4, %v822_v5 }
 0x2a0   :  { %8002 = vpow2.f32 %v779_v9  ;;  %v726_v12 = vpop.f32.mrf.mxu0  ;;  %v767_v13 = vpop.f32.mrf.mxu1 }
 0x2a1   :  { %v810_v12 = vld [vmem:[%s10659_s5 + $0x48] sm:$0xff] }
 0x2a2   :  { %v814_v13 = vld [vmem:[%s10659_s5 + $0x68] sm:$0xff] }
 0x2aa   :  { %v7997_v14 = vpop.eup %7996 }
 0x2ab   :  { %v7999_v15 = vpop.eup %7998  ;;  %v6379_v16 = vadd.f32 -1.0, %v7997_v14  ;;  %v938_v14 = vld [vmem:[%s10659_s5 + $0x448] sm:$0xff] }
 0x2ac   :  { %v8001_v17 = vpop.eup %8000  ;;  %v6381_v18 = vadd.f32 -1.0, %v7999_v15  ;;  %v942_v15 = vld [vmem:[%s10659_s5 + $0x468] sm:$0xff] }
 0x2ad   :  { %v8003_v19 = vpop.eup %8002  ;;  %v785_v20 = vmul.f32 1.6732632, %v6379_v16  ;;  %v6380_v21 = vadd.f32 -1.0, %v8001_v17  ;;  %v6401_v16 = vcombine.low %v818_v4, %v822_v5 }
 0x2ae   :  { %v787_v22 = vmul.f32 1.6732632, %v6381_v18  ;;  %v6382_v23 = vadd.f32 -1.0, %v8003_v19  ;;  %v6394_v18 = vcombine.high %v810_v12, %v814_v13  ;;  %v6522_v19 = vcombine.high %v938_v14, %v942_v15 }
 0x2af   :  { %v789_v24 = vsel %vm769_vm4, %v721_v2, %v785_v20  ;;  %v786_v25 = vmul.f32 1.6732632, %v6380_v21  ;;  %v6410_v2 = vcombine.high %v826_v60, %v830_v61  ;;  %v802_v20 = vld [vmem:[%s10659_s5 + $0x8] sm:$0xff] }
 0x2b0   :  { %v791_v26 = vsel %vm771_vm5, %v762_v3, %v787_v22  ;;  %v788_v27 = vmul.f32 1.6732632, %v6382_v23  ;;  %v793_v28 = vmul.f32 1.050701, %v789_v24  ;;  %v806_v21 = vld [vmem:[%s10659_s5 + $0x28] sm:$0xff]  ;;  %v6393_v24 = vcombine.low %v810_v12, %v814_v13 }
 0x2b1   :  { %v790_v29 = vsel %vm770_vm6, %v723_v6, %v786_v25  ;;  %v795_v30 = vmul.f32 1.050701, %v791_v26  ;;  %v946_v6 = vld [vmem:[%s10659_s5 + $0x488] sm:$0xff]  ;;  %v6521_v25 = vcombine.low %v938_v14, %v942_v15  ;;  %v6386_v26 = vcombine.high %v802_v20, %v806_v21 }
 0x2b2   :  { %v794_v31 = vmul.f32 1.050701, %v790_v29  ;;  %v792_v32 = vsel %vm772_vm7, %v764_v7, %v788_v27  ;;  %v8601_v39 = vpack.c.bf16 %v793_v28, %v793_v28  ;;  %v950_v7 = vld [vmem:[%s10659_s5 + $0x4a8] sm:$0xff] }
 0x2b3   :  { %v796_v33 = vmul.f32 1.050701, %v792_v32  ;;  %v8605_v41 = vpack.c.bf16 %v795_v30, %v795_v30  ;;  %v6530_v11 = vcombine.high %v946_v6, %v950_v7  ;;  %v6529_v17 = vcombine.low %v946_v6, %v950_v7  ;;  %v930_v22 = vld [vmem:[%s10659_s5 + $0x408] sm:$0xff] }
 0x2b4   :  { %v8593_v36 = vpack.c.bf16 %v794_v31, %v794_v31  ;;  %v934_v23 = vld [vmem:[%s10659_s5 + $0x428] sm:$0xff]  ;;  %v6385_v32 = vcombine.low %v802_v20, %v806_v21 }
 0x2b5   :  { %v8603_v40 = vpack.c.bf16 %v796_v33, %v796_v33  ;;  %v6514_v27 = vcombine.high %v930_v22, %v934_v23  ;;  %v922_v28 = vld [vmem:[%s10659_s5 + $0x3c8] sm:$0xff]  ;;  %v6513_v33 = vcombine.low %v930_v22, %v934_v23 }
 0x2b6   :  { %2369 = vmatprep.mubr.bf16.mxu0 %v8593_v36  ;;  %v926_v29 = vld [vmem:[%s10659_s5 + $0x3e8] sm:$0xff] }
 0x2b7   :  { %2410 = vmatprep.mubr.bf16.mxu1 %v8603_v40  ;;  %2370 = vmatmul.mubr.bf16.vlgmr.msra.gmra.mxu0 %v8601_v39  ;;  %v1050_v30 = vld [vmem:[%s10659_s5 + $0x7c8] sm:$0xff]  ;;  %v6506_v34 = vcombine.high %v922_v28, %v926_v29  ;;  %v6505_v44 = vcombine.low %v922_v28, %v926_v29 }
 0x2b8   :  { %2411 = vmatmul.mubr.bf16.vlgmr.msra.gmra.mxu1 %v8605_v41  ;;  %2420 = vmatpush1.bf16.msra.mxu0 %v6441_v63  ;;  %v958_v63 = vld [vmem:[%s10659_s5 + $0x4e8] sm:$0xff] }
 0x2b9   :  { %2461 = vmatpush1.bf16.msra.mxu1 %v6569_v0  ;;  %2451 = vmatprep.mubr.bf16.mxu0 %v8593_v36  ;;  %v6417_v0 = vcombine.low %v834_v52, %v838_v53  ;;  %v6538_v3 = vcombine.high %v954_v62, %v958_v63  ;;  %v6537_v9 = vcombine.low %v954_v62, %v958_v63  ;;  %v1054_v31 = vld [vmem:[%s10659_s5 + $0x7e8] sm:$0xff] }
 0x2ba   :  { %2492 = vmatprep.mubr.bf16.mxu1 %v8603_v40  ;;  %2421 = vmatprep.subr.bf16.mxu0 %v6434_v42  ;;  %v6634_v35 = vcombine.high %v1050_v30, %v1054_v31  ;;  %v1042_v42 = vld [vmem:[%s10659_s5 + $0x788] sm:$0xff]  ;;  %v6497_v52 = vcombine.low %v914_v37, %v918_v38 }
 0x2bb   :  { %2462 = vmatprep.subr.bf16.mxu1 %v6562_v45  ;;  %v6633_v45 = vcombine.low %v1050_v30, %v1054_v31  ;;  %v6626_v47 = vcombine.high %v1042_v42, %v1046_v43  ;;  %v6625_v53 = vcombine.low %v1042_v42, %v1046_v43 }
 0x2bc   :  { %2422 = vmatpush1.bf16.msra.mxu0 %v6433_v48  ;;  %v906_v48 = vld [vmem:[%s10659_s5 + $0x348] sm:$0xff] }
 0x2bd   :  { %2463 = vmatpush1.bf16.msra.mxu1 %v6561_v49  ;;  %2423 = vmatprep.subr.bf16.mxu0 %v6426_v50  ;;  %v910_v49 = vld [vmem:[%s10659_s5 + $0x368] sm:$0xff] }
 0x2be   :  { %2464 = vmatprep.subr.bf16.mxu1 %v6554_v51  ;;  %v1034_v50 = vld [vmem:[%s10659_s5 + $0x748] sm:$0xff]  ;;  %v6490_v54 = vcombine.high %v906_v48, %v910_v49  ;;  %v6489_v60 = vcombine.low %v906_v48, %v910_v49  ;;  %v983_v48 = vld [vmem:[%s10659_s5 + $0x5b0] sm:$0xff] }
 0x2bf   :  { %v1038_v51 = vld [vmem:[%s10659_s5 + $0x768] sm:$0xff] }
 0x2c0   :  { %2424 = vmatpush1.bf16.msra.mxu0 %v6425_v56  ;;  %v6618_v55 = vcombine.high %v1034_v50, %v1038_v51  ;;  %v898_v56 = vld [vmem:[%s10659_s5 + $0x308] sm:$0xff]  ;;  %v6617_v61 = vcombine.low %v1034_v50, %v1038_v51  ;;  %v843_v51 = vld [vmem:[%s10659_s5 + $0x150] sm:$0xff] }
 0x2c1   :  { %2465 = vmatpush1.bf16.msra.mxu1 %v6553_v57  ;;  %2425 = vmatprep.subr.bf16.mxu0 %v6418_v58  ;;  %v902_v57 = vld [vmem:[%s10659_s5 + $0x328] sm:$0xff] }
 0x2c2   :  { %2466 = vmatprep.subr.bf16.mxu1 %v6546_v59  ;;  %v1026_v58 = vld [vmem:[%s10659_s5 + $0x708] sm:$0xff]  ;;  %v6482_v62 = vcombine.high %v898_v56, %v902_v57  ;;  %v6481_v4 = vcombine.low %v898_v56, %v902_v57  ;;  %v835_v57 = vld [vmem:[%s10659_s5 + $0x110] sm:$0xff] }
 0x2c3   :  { %v1030_v59 = vld [vmem:[%s10659_s5 + $0x728] sm:$0xff] }
 0x2c4   :  { %2426 = vmatpush1.bf16.msra.mxu0 %v6417_v0  ;;  %v6610_v63 = vcombine.high %v1026_v58, %v1030_v59  ;;  %v890_v0 = vld [vmem:[%s10659_s5 + $0x2c8] sm:$0xff]  ;;  %v6609_v5 = vcombine.low %v1026_v58, %v1030_v59  ;;  %v839_v58 = vld [vmem:[%s10659_s5 + $0x130] sm:$0xff] }
 0x2c5   :  { %2467 = vmatpush1.bf16.msra.mxu1 %v6545_v1  ;;  %2427 = vmatprep.subr.bf16.mxu0 %v6410_v2  ;;  %v894_v1 = vld [vmem:[%s10659_s5 + $0x2e8] sm:$0xff] }
 0x2c6   :  { %2468 = vmatprep.subr.bf16.mxu1 %v6538_v3  ;;  %v1018_v2 = vld [vmem:[%s10659_s5 + $0x6c8] sm:$0xff]  ;;  %v6474_v6 = vcombine.high %v890_v0, %v894_v1  ;;  %v6473_v12 = vcombine.low %v890_v0, %v894_v1  ;;  %v827_v1 = vld [vmem:[%s10659_s5 + $0xd0] sm:$0xff] }
 0x2c7   :  { %v1022_v3 = vld [vmem:[%s10659_s5 + $0x6e8] sm:$0xff] }
 0x2c8   :  { %2428 = vmatpush1.bf16.msra.mxu0 %v6409_v8  ;;  %v6602_v7 = vcombine.high %v1018_v2, %v1022_v3  ;;  %v882_v8 = vld [vmem:[%s10659_s5 + $0x288] sm:$0xff]  ;;  %v6601_v13 = vcombine.low %v1018_v2, %v1022_v3  ;;  %v831_v2 = vld [vmem:[%s10659_s5 + $0xf0] sm:$0xff] }
 0x2c9   :  { %2469 = vmatpush1.bf16.msra.mxu1 %v6537_v9  ;;  %2429 = vmatprep.subr.bf16.mxu0 %v6402_v10  ;;  %v886_v9 = vld [vmem:[%s10659_s5 + $0x2a8] sm:$0xff] }
 0x2ca   :  { %2470 = vmatprep.subr.bf16.mxu1 %v6530_v11  ;;  %v1010_v10 = vld [vmem:[%s10659_s5 + $0x688] sm:$0xff]  ;;  %v6466_v14 = vcombine.high %v882_v8, %v886_v9  ;;  %v6465_v20 = vcombine.low %v882_v8, %v886_v9  ;;  %v6419_v8 = vcombine.low %v835_v57, %v839_v58  ;;  %v819_v9 = vld [vmem:[%s10659_s5 + $0x90] sm:$0xff] }
 0x2cb   :  { %v1014_v11 = vld [vmem:[%s10659_s5 + $0x6a8] sm:$0xff] }
 0x2cc   :  { %2430 = vmatpush1.bf16.msra.mxu0 %v6401_v16  ;;  %v6594_v15 = vcombine.high %v1010_v10, %v1014_v11  ;;  %v874_v16 = vld [vmem:[%s10659_s5 + $0x248] sm:$0xff]  ;;  %v6593_v21 = vcombine.low %v1010_v10, %v1014_v11  ;;  %v823_v10 = vld [vmem:[%s10659_s5 + $0xb0] sm:$0xff] }
 0x2cd   :  { %2471 = vmatpush1.bf16.msra.mxu1 %v6529_v17  ;;  %2431 = vmatprep.subr.bf16.mxu0 %v6394_v18  ;;  %v878_v17 = vld [vmem:[%s10659_s5 + $0x268] sm:$0xff] }
 0x2ce   :  { %2472 = vmatprep.subr.bf16.mxu1 %v6522_v19  ;;  %v1002_v18 = vld [vmem:[%s10659_s5 + $0x648] sm:$0xff]  ;;  %v6458_v22 = vcombine.high %v874_v16, %v878_v17  ;;  %v6457_v28 = vcombine.low %v874_v16, %v878_v17  ;;  %v6411_v16 = vcombine.low %v827_v1, %v831_v2  ;;  %v811_v17 = vld [vmem:[%s10659_s5 + $0x50] sm:$0xff] }
 0x2cf   :  { %v1006_v19 = vld [vmem:[%s10659_s5 + $0x668] sm:$0xff] }
 0x2d0   :  { %2432 = vmatpush1.bf16.msra.mxu0 %v6393_v24  ;;  %v6586_v23 = vcombine.high %v1002_v18, %v1006_v19  ;;  %v866_v24 = vld [vmem:[%s10659_s5 + $0x208] sm:$0xff]  ;;  %v6585_v29 = vcombine.low %v1002_v18, %v1006_v19  ;;  %v815_v18 = vld [vmem:[%s10659_s5 + $0x70] sm:$0xff] }
 0x2d1   :  { %2473 = vmatpush1.bf16.msra.mxu1 %v6521_v25  ;;  %2433 = vmatprep.subr.bf16.mxu0 %v6386_v26  ;;  %v870_v25 = vld [vmem:[%s10659_s5 + $0x228] sm:$0xff] }
 0x2d2   :  { %2474 = vmatprep.subr.bf16.mxu1 %v6514_v27  ;;  %v994_v26 = vld [vmem:[%s10659_s5 + $0x608] sm:$0xff]  ;;  %v6450_v30 = vcombine.high %v866_v24, %v870_v25  ;;  %v6449_v37 = vcombine.low %v866_v24, %v870_v25  ;;  %v6403_v24 = vcombine.low %v819_v9, %v823_v10  ;;  %v803_v25 = vld [vmem:[%s10659_s5 + $0x10] sm:$0xff] }
 0x2d3   :  { %v998_v27 = vld [vmem:[%s10659_s5 + $0x628] sm:$0xff] }
 0x2d4   :  { %2434 = vmatpush1.bf16.msra.mxu0 %v6385_v32  ;;  %v6578_v31 = vcombine.high %v994_v26, %v998_v27  ;;  %v859_v32 = vld [vmem:[%s10659_s5 + $0x1d0] sm:$0xff]  ;;  %v6577_v38 = vcombine.low %v994_v26, %v998_v27 }
 0x2d5   :  { %2475 = vmatpush1.bf16.msra.mxu1 %v6513_v33  ;;  %2435 = vmatprep.subr.bf16.mxu0 %v6506_v34  ;;  %v863_v33 = vld [vmem:[%s10659_s5 + $0x1f0] sm:$0xff] }
 0x2d6   :  { %2476 = vmatprep.subr.bf16.mxu1 %v6634_v35  ;;  %v987_v34 = vld [vmem:[%s10659_s5 + $0x5d0] sm:$0xff]  ;;  %v6444_v42 = vcombine.high %v859_v32, %v863_v33 }
 0x2d7   :  { %v991_v35 = vld [vmem:[%s10659_s5 + $0x5f0] sm:$0xff] }
 0x2d8   :  { %2436 = vmatpush2.bf16.msra.mxu0 %v6505_v44  ;;  %v6572_v43 = vcombine.high %v987_v34, %v991_v35  ;;  %v851_v44 = vld [vmem:[%s10659_s5 + $0x190] sm:$0xff]  ;;  %v6571_v49 = vcombine.low %v987_v34, %v991_v35 }
 0x2d9   :  { %2477 = vmatpush2.bf16.msra.mxu1 %v6633_v45  ;;  %2437 = vmatprep.subr.bf16.mxu0 %v6498_v46  ;;  %v855_v45 = vld [vmem:[%s10659_s5 + $0x1b0] sm:$0xff]  ;;  %v6443_v46 = vcombine.low %v859_v32, %v863_v33  ;;  %v6395_v32 = vcombine.low %v811_v17, %v815_v18 }
 0x2da   :  { %2478 = vmatprep.subr.bf16.mxu1 %v6626_v47  ;;  %v979_v47 = vld [vmem:[%s10659_s5 + $0x590] sm:$0xff]  ;;  %v6436_v50 = vcombine.high %v851_v44, %v855_v45  ;;  %v6435_v56 = vcombine.low %v851_v44, %v855_v45 }
 0x2db   :  { %v6563_v59 = vcombine.low %v979_v47, %v983_v48  ;;  %v807_v26 = vld [vmem:[%s10659_s5 + $0x30] sm:$0xff] }
 0x2dc   :  { %2438 = vmatpush2.bf16.msra.mxu0 %v6497_v52  ;;  %v847_v52 = vld [vmem:[%s10659_s5 + $0x170] sm:$0xff]  ;;  %v6387_v44 = vcombine.low %v803_v25, %v807_v26 }
 0x2dd   :  { %2479 = vmatpush2.bf16.msra.mxu1 %v6625_v53  ;;  %2439 = vmatprep.subr.bf16.mxu0 %v6490_v54  ;;  %v971_v53 = vld [vmem:[%s10659_s5 + $0x550] sm:$0xff]  ;;  %v6564_v54 = vcombine.high %v979_v47, %v983_v48  ;;  %v6427_v0 = vcombine.low %v843_v51, %v847_v52 }
 0x2de   :  { %2480 = vmatprep.subr.bf16.mxu1 %v6618_v55  ;;  %v975_v55 = vld [vmem:[%s10659_s5 + $0x570] sm:$0xff] }
 0x2df   :  { %v6555_v3 = vcombine.low %v971_v53, %v975_v55  ;;  %v923_v33 = vld [vmem:[%s10659_s5 + $0x3d0] sm:$0xff] }
 0x2e0   :  { %2440 = vmatpush2.bf16.msra.mxu0 %v6489_v60  ;;  %v6428_v60 = vcombine.high %v843_v51, %v847_v52  ;;  %v927_v34 = vld [vmem:[%s10659_s5 + $0x3f0] sm:$0xff] }
 0x2e1   :  { %2481 = vmatpush2.bf16.msra.mxu1 %v6617_v61  ;;  %2441 = vmatprep.subr.bf16.mxu0 %v6482_v62  ;;  %v963_v61 = vld [vmem:[%s10659_s5 + $0x510] sm:$0xff]  ;;  %v6556_v62 = vcombine.high %v971_v53, %v975_v55  ;;  %v6508_v48 = vcombine.high %v923_v33, %v927_v34  ;;  %v6507_v52 = vcombine.low %v923_v33, %v927_v34 }
 0x2e2   :  { %2482 = vmatprep.subr.bf16.mxu1 %v6610_v63  ;;  %v967_v63 = vld [vmem:[%s10659_s5 + $0x530] sm:$0xff] }
 0x2e3   :  { %v6547_v11 = vcombine.low %v963_v61, %v967_v63  ;;  %v915_v45 = vld [vmem:[%s10659_s5 + $0x390] sm:$0xff] }
 0x2e4   :  { %2442 = vmatpush2.bf16.msra.mxu0 %v6481_v4  ;;  %v6420_v4 = vcombine.high %v835_v57, %v839_v58  ;;  %v1047_v51 = vld [vmem:[%s10659_s5 + $0x7b0] sm:$0xff] }
 0x2e5   :  { %2483 = vmatpush2.bf16.msra.mxu1 %v6609_v5  ;;  %2443 = vmatprep.subr.bf16.mxu0 %v6474_v6  ;;  %v955_v5 = vld [vmem:[%s10659_s5 + $0x4d0] sm:$0xff]  ;;  %v6548_v6 = vcombine.high %v963_v61, %v967_v63 }
 0x2e6   :  { %2484 = vmatprep.subr.bf16.mxu1 %v6602_v7  ;;  %v959_v7 = vld [vmem:[%s10659_s5 + $0x4f0] sm:$0xff] }
 0x2e7   :  { %v6539_v19 = vcombine.low %v955_v5, %v959_v7  ;;  %v911_v57 = vld [vmem:[%s10659_s5 + $0x370] sm:$0xff] }
 0x2e8   :  { %2444 = vmatpush2.bf16.msra.mxu0 %v6473_v12  ;;  %v6412_v12 = vcombine.high %v827_v1, %v831_v2  ;;  %v1035_v58 = vld [vmem:[%s10659_s5 + $0x750] sm:$0xff] }
 0x2e9   :  { %2485 = vmatpush2.bf16.msra.mxu1 %v6601_v13  ;;  %2445 = vmatprep.subr.bf16.mxu0 %v6466_v14  ;;  %v947_v13 = vld [vmem:[%s10659_s5 + $0x490] sm:$0xff]  ;;  %v6540_v14 = vcombine.high %v955_v5, %v959_v7 }
 0x2ea   :  { %2486 = vmatprep.subr.bf16.mxu1 %v6594_v15  ;;  %v951_v15 = vld [vmem:[%s10659_s5 + $0x4b0] sm:$0xff] }
 0x2eb   :  { %v6531_v27 = vcombine.low %v947_v13, %v951_v15  ;;  %v899_v61 = vld [vmem:[%s10659_s5 + $0x310] sm:$0xff] }
 0x2ec   :  { %2446 = vmatpush2.bf16.msra.mxu0 %v6465_v20  ;;  %v6404_v20 = vcombine.high %v819_v9, %v823_v10  ;;  %v1027_v1 = vld [vmem:[%s10659_s5 + $0x710] sm:$0xff] }
 0x2ed   :  { %2487 = vmatpush2.bf16.msra.mxu1 %v6593_v21  ;;  %2447 = vmatprep.subr.bf16.mxu0 %v6458_v22  ;;  %v939_v21 = vld [vmem:[%s10659_s5 + $0x450] sm:$0xff]  ;;  %v6532_v22 = vcombine.high %v947_v13, %v951_v15 }
 0x2ee   :  { %2488 = vmatprep.subr.bf16.mxu1 %v6586_v23  ;;  %v943_v23 = vld [vmem:[%s10659_s5 + $0x470] sm:$0xff] }
 0x2ef   :  { %v6523_v35 = vcombine.low %v939_v21, %v943_v23  ;;  %v1031_v2 = vld [vmem:[%s10659_s5 + $0x730] sm:$0xff] }
 0x2f0   :  { %2448 = vmatpush2.bf16.msra.mxu0 %v6457_v28  ;;  %v6396_v28 = vcombine.high %v811_v17, %v815_v18  ;;  %v891_v5 = vld [vmem:[%s10659_s5 + $0x2d0] sm:$0xff]  ;;  %v6611_v15 = vcombine.low %v1027_v1, %v1031_v2 }
 0x2f1   :  { %2489 = vmatpush2.bf16.msra.mxu1 %v6585_v29  ;;  %2449 = vmatprep.subr.bf16.mxu0 %v6450_v30  ;;  %v931_v29 = vld [vmem:[%s10659_s5 + $0x410] sm:$0xff]  ;;  %v6524_v30 = vcombine.high %v939_v21, %v943_v23 }
 0x2f2   :  { %2490 = vmatprep.subr.bf16.mxu1 %v6578_v31  ;;  %v935_v31 = vld [vmem:[%s10659_s5 + $0x430] sm:$0xff] }
 0x2f3   :  { %v6515_v47 = vcombine.low %v931_v29, %v935_v31  ;;  %v1019_v9 = vld [vmem:[%s10659_s5 + $0x6d0] sm:$0xff] }
 0x2f4   :  { %2450 = vmatpush2.bf16.msra.mxu0 %v6449_v37  ;;  %v6388_v37 = vcombine.high %v803_v25, %v807_v26  ;;  %v1023_v10 = vld [vmem:[%s10659_s5 + $0x6f0] sm:$0xff] }
 0x2f5   :  { %2491 = vmatpush2.bf16.msra.mxu1 %v6577_v38  ;;  %2501 = vmatprep.subr.bf16.mxu0 %v6444_v42  ;;  %v1051_v38 = vld [vmem:[%s10659_s5 + $0x7d0] sm:$0xff]  ;;  %v6516_v42 = vcombine.high %v931_v29, %v935_v31  ;;  %v6603_v23 = vcombine.low %v1019_v9, %v1023_v10 }
 0x2f6   :  { %2542 = vmatprep.subr.bf16.mxu1 %v6572_v43  ;;  %v1055_v43 = vld [vmem:[%s10659_s5 + $0x7f0] sm:$0xff] }
 0x2f7   :  { %2452 = vmatmul.mubr.bf16.vlgmr.msra.gmra.mxu0 %v8601_v39  ;;  %v6635_v53 = vcombine.low %v1051_v38, %v1055_v43  ;;  %v883_v13 = vld [vmem:[%s10659_s5 + $0x290] sm:$0xff] }
 0x2f8   :  { %2493 = vmatmul.mubr.bf16.vlgmr.msra.gmra.mxu1 %v8605_v41  ;;  %2502 = vmatpush1.bf16.msra.mxu0 %v6443_v46  ;;  %v919_v46 = vld [vmem:[%s10659_s5 + $0x3b0] sm:$0xff] }
 0x2f9   :  { %2533 = vmatprep.mubr.bf16.mxu0 %v8593_v36  ;;  %2543 = vmatpush1.bf16.msra.mxu1 %v6571_v49  ;;  %v1043_v49 = vld [vmem:[%s10659_s5 + $0x790] sm:$0xff] }
 0x2fa   :  { %2574 = vmatprep.mubr.bf16.mxu1 %v8603_v40  ;;  %2503 = vmatprep.subr.bf16.mxu0 %v6436_v50  ;;  %v6636_v50 = vcombine.high %v1051_v38, %v1055_v43  ;;  %v6628_v55 = vcombine.high %v1043_v49, %v1047_v51  ;;  %v6627_v63 = vcombine.low %v1043_v49, %v1047_v51  ;;  %v1011_v17 = vld [vmem:[%s10659_s5 + $0x690] sm:$0xff]  ;;  %v860_v38 = vld [vmem:[%s10659_s5 + $0x1d8] sm:$0xff] }
 0x2fb   :  { %2544 = vmatprep.subr.bf16.mxu1 %v6564_v54  ;;  %v6500_v54 = vcombine.high %v915_v45, %v919_v46  ;;  %v1015_v18 = vld [vmem:[%s10659_s5 + $0x6b0] sm:$0xff]  ;;  %v852_v51 = vld [vmem:[%s10659_s5 + $0x198] sm:$0xff] }
 0x2fc   :  { %2504 = vmatpush1.bf16.msra.mxu0 %v6435_v56  ;;  %v907_v56 = vld [vmem:[%s10659_s5 + $0x350] sm:$0xff]  ;;  %v6595_v31 = vcombine.low %v1011_v17, %v1015_v18 }
 0x2fd   :  { %2545 = vmatpush1.bf16.msra.mxu1 %v6563_v59  ;;  %2505 = vmatprep.subr.bf16.mxu0 %v6428_v60  ;;  %v1039_v59 = vld [vmem:[%s10659_s5 + $0x770] sm:$0xff]  ;;  %v6499_v60 = vcombine.low %v915_v45, %v919_v46  ;;  %v988_v45 = vld [vmem:[%s10659_s5 + $0x5d8] sm:$0xff] }
 0x2fe   :  { %2546 = vmatprep.subr.bf16.mxu1 %v6556_v62  ;;  %v903_v62 = vld [vmem:[%s10659_s5 + $0x330] sm:$0xff]  ;;  %v6619_v7 = vcombine.low %v1035_v58, %v1039_v59  ;;  %v992_v46 = vld [vmem:[%s10659_s5 + $0x5f8] sm:$0xff] }
 0x2ff   :  { %v875_v21 = vld [vmem:[%s10659_s5 + $0x250] sm:$0xff] }
 0x300   :  { %2506 = vmatpush1.bf16.msra.mxu0 %v6427_v0  ;;  %v6492_v0 = vcombine.high %v907_v56, %v911_v57  ;;  %v1003_v25 = vld [vmem:[%s10659_s5 + $0x650] sm:$0xff] }
 0x301   :  { %2547 = vmatpush1.bf16.msra.mxu1 %v6555_v3  ;;  %2507 = vmatprep.subr.bf16.mxu0 %v6420_v4  ;;  %v6620_v3 = vcombine.high %v1035_v58, %v1039_v59  ;;  %v6491_v4 = vcombine.low %v907_v56, %v911_v57  ;;  %v1007_v26 = vld [vmem:[%s10659_s5 + $0x670] sm:$0xff]  ;;  %v844_v57 = vld [vmem:[%s10659_s5 + $0x158] sm:$0xff]  ;;  %v6573_v59 = vcombine.low %v988_v45, %v992_v46 }
 0x302   :  { %2548 = vmatprep.subr.bf16.mxu1 %v6548_v6  ;;  %v895_v6 = vld [vmem:[%s10659_s5 + $0x2f0] sm:$0xff]  ;;  %v6587_v43 = vcombine.low %v1003_v25, %v1007_v26  ;;  %v848_v58 = vld [vmem:[%s10659_s5 + $0x178] sm:$0xff] }
 0x303   :  { %v867_v29 = vld [vmem:[%s10659_s5 + $0x210] sm:$0xff] }
 0x304   :  { %2508 = vmatpush1.bf16.msra.mxu0 %v6419_v8  ;;  %v6484_v8 = vcombine.high %v899_v61, %v903_v62  ;;  %v995_v33 = vld [vmem:[%s10659_s5 + $0x610] sm:$0xff] }
 0x305   :  { %2549 = vmatpush1.bf16.msra.mxu1 %v6547_v11  ;;  %2509 = vmatprep.subr.bf16.mxu0 %v6412_v12  ;;  %v6612_v11 = vcombine.high %v1027_v1, %v1031_v2  ;;  %v6483_v12 = vcombine.low %v899_v61, %v903_v62  ;;  %v999_v34 = vld [vmem:[%s10659_s5 + $0x630] sm:$0xff]  ;;  %v976_v61 = vld [vmem:[%s10659_s5 + $0x578] sm:$0xff] }
 0x306   :  { %2550 = vmatprep.subr.bf16.mxu1 %v6540_v14  ;;  %v887_v14 = vld [vmem:[%s10659_s5 + $0x2b0] sm:$0xff]  ;;  %v6579_v49 = vcombine.low %v995_v33, %v999_v34  ;;  %v836_v1 = vld [vmem:[%s10659_s5 + $0x118] sm:$0xff] }
 0x307   :  { %v840_v2 = vld [vmem:[%s10659_s5 + $0x138] sm:$0xff] }
 0x308   :  { %2510 = vmatpush1.bf16.msra.mxu0 %v6411_v16  ;;  %v6476_v16 = vcombine.high %v891_v5, %v895_v6 }
 0x309   :  { %2551 = vmatpush1.bf16.msra.mxu1 %v6539_v19  ;;  %2511 = vmatprep.subr.bf16.mxu0 %v6404_v20  ;;  %v6604_v19 = vcombine.high %v1019_v9, %v1023_v10  ;;  %v6475_v20 = vcombine.low %v891_v5, %v895_v6  ;;  %v964_v6 = vld [vmem:[%s10659_s5 + $0x518] sm:$0xff]  ;;  %v6422_v10 = vcombine.high %v836_v1, %v840_v2 }
 0x30a   :  { %2552 = vmatprep.subr.bf16.mxu1 %v6532_v22  ;;  %v879_v22 = vld [vmem:[%s10659_s5 + $0x270] sm:$0xff] }
 0x30c   :  { %2512 = vmatpush1.bf16.msra.mxu0 %v6403_v24  ;;  %v6468_v24 = vcombine.high %v883_v13, %v887_v14 }
 0x30d   :  { %2553 = vmatpush1.bf16.msra.mxu1 %v6531_v27  ;;  %2513 = vmatprep.subr.bf16.mxu0 %v6396_v28  ;;  %v6596_v27 = vcombine.high %v1011_v17, %v1015_v18  ;;  %v6467_v28 = vcombine.low %v883_v13, %v887_v14  ;;  %v960_v13 = vld [vmem:[%s10659_s5 + $0x4f8] sm:$0xff]  ;;  %v6421_v14 = vcombine.low %v836_v1, %v840_v2 }
 0x30e   :  { %2554 = vmatprep.subr.bf16.mxu1 %v6524_v30  ;;  %v871_v30 = vld [vmem:[%s10659_s5 + $0x230] sm:$0xff]  ;;  %v1040_v1 = vld [vmem:[%s10659_s5 + $0x778] sm:$0xff] }
 0x310   :  { %2514 = vmatpush1.bf16.msra.mxu0 %v6395_v32  ;;  %v6460_v32 = vcombine.high %v875_v21, %v879_v22 }
 0x311   :  { %2555 = vmatpush1.bf16.msra.mxu1 %v6523_v35  ;;  %2515 = vmatprep.subr.bf16.mxu0 %v6388_v37  ;;  %v6588_v35 = vcombine.high %v1003_v25, %v1007_v26  ;;  %v6459_v37 = vcombine.low %v875_v21, %v879_v22  ;;  %v952_v21 = vld [vmem:[%s10659_s5 + $0x4b8] sm:$0xff] }
 0x312   :  { %2556 = vmatprep.subr.bf16.mxu1 %v6516_v42  ;;  %v864_v42 = vld [vmem:[%s10659_s5 + $0x1f8] sm:$0xff] }
 0x313   :  { %v6445_v56 = vcombine.low %v860_v38, %v864_v42 }
 0x314   :  { %2516 = vmatpush1.bf16.msra.mxu0 %v6387_v44  ;;  %v6452_v44 = vcombine.high %v867_v29, %v871_v30 }
 0x315   :  { %2557 = vmatpush1.bf16.msra.mxu1 %v6515_v47  ;;  %2517 = vmatprep.subr.bf16.mxu0 %v6508_v48  ;;  %v6580_v47 = vcombine.high %v995_v33, %v999_v34  ;;  %v6451_v48 = vcombine.low %v867_v29, %v871_v30  ;;  %v944_v29 = vld [vmem:[%s10659_s5 + $0x478] sm:$0xff] }
 0x316   :  { %2558 = vmatprep.subr.bf16.mxu1 %v6636_v50  ;;  %v6446_v50 = vcombine.high %v860_v38, %v864_v42  ;;  %v936_v38 = vld [vmem:[%s10659_s5 + $0x438] sm:$0xff] }
 0x318   :  { %2518 = vmatpush2.bf16.msra.mxu0 %v6507_v52  ;;  %v856_v52 = vld [vmem:[%s10659_s5 + $0x1b8] sm:$0xff] }
 0x319   :  { %2559 = vmatpush2.bf16.msra.mxu1 %v6635_v53  ;;  %2519 = vmatprep.subr.bf16.mxu0 %v6500_v54  ;;  %v6574_v53 = vcombine.high %v988_v45, %v992_v46  ;;  %v980_v54 = vld [vmem:[%s10659_s5 + $0x598] sm:$0xff]  ;;  %v6438_v62 = vcombine.high %v852_v51, %v856_v52 }
 0x31a   :  { %2560 = vmatprep.subr.bf16.mxu1 %v6628_v55  ;;  %v984_v55 = vld [vmem:[%s10659_s5 + $0x5b8] sm:$0xff] }
 0x31c   :  { %2520 = vmatpush2.bf16.msra.mxu0 %v6499_v60  ;;  %v972_v60 = vld [vmem:[%s10659_s5 + $0x558] sm:$0xff] }
 0x31d   :  { %2561 = vmatpush2.bf16.msra.mxu1 %v6627_v63  ;;  %2521 = vmatprep.subr.bf16.mxu0 %v6492_v0  ;;  %v6566_v63 = vcombine.high %v980_v54, %v984_v55  ;;  %v6437_v0 = vcombine.low %v852_v51, %v856_v52  ;;  %v6558_v5 = vcombine.high %v972_v60, %v976_v61  ;;  %v916_v51 = vld [vmem:[%s10659_s5 + $0x398] sm:$0xff] }
 0x31e   :  { %2562 = vmatprep.subr.bf16.mxu1 %v6620_v3  ;;  %v6565_v3 = vcombine.low %v980_v54, %v984_v55  ;;  %v6557_v9 = vcombine.low %v972_v60, %v976_v61  ;;  %v920_v52 = vld [vmem:[%s10659_s5 + $0x3b8] sm:$0xff] }
 0x31f   :  { %v6502_v60 = vcombine.high %v916_v51, %v920_v52  ;;  %v908_v61 = vld [vmem:[%s10659_s5 + $0x358] sm:$0xff]  ;;  %v6501_v2 = vcombine.low %v916_v51, %v920_v52  ;;  %v7350_v52 = vld [vmem:[%s10660_s6 + $0x188] ss:$28 sps:$4 sm:$0xff]  }
 0x320   :  { %2522 = vmatpush2.bf16.msra.mxu0 %v6491_v4  ;;  %v6430_v4 = vcombine.high %v844_v57, %v848_v58 }
 0x321   :  { %2563 = vmatpush2.bf16.msra.mxu1 %v6619_v7  ;;  %2523 = vmatprep.subr.bf16.mxu0 %v6484_v8  ;;  %v968_v7 = vld [vmem:[%s10659_s5 + $0x538] sm:$0xff]  ;;  %v6429_v8 = vcombine.low %v844_v57, %v848_v58 }
 0x322   :  { %2564 = vmatprep.subr.bf16.mxu1 %v6612_v11  ;;  %v6550_v11 = vcombine.high %v964_v6, %v968_v7  ;;  %v6549_v17 = vcombine.low %v964_v6, %v968_v7  ;;  %v1048_v57 = vld [vmem:[%s10659_s5 + $0x7b8] sm:$0xff] }
 0x323   :  { %v900_v6 = vld [vmem:[%s10659_s5 + $0x318] sm:$0xff] }
 0x324   :  { %2524 = vmatpush2.bf16.msra.mxu0 %v6483_v12  ;;  %v956_v12 = vld [vmem:[%s10659_s5 + $0x4d8] sm:$0xff] }
 0x325   :  { %2565 = vmatpush2.bf16.msra.mxu1 %v6611_v15  ;;  %2525 = vmatprep.subr.bf16.mxu0 %v6476_v16  ;;  %v820_v15 = vld [vmem:[%s10659_s5 + $0x98] sm:$0xff]  ;;  %v6541_v25 = vcombine.low %v956_v12, %v960_v13 }
 0x326   :  { %2566 = vmatprep.subr.bf16.mxu1 %v6604_v19  ;;  %v824_v16 = vld [vmem:[%s10659_s5 + $0xb8] sm:$0xff]  ;;  %v6542_v19 = vcombine.high %v956_v12, %v960_v13 }
 0x327   :  { %v6406_v26 = vcombine.high %v820_v15, %v824_v16  ;;  %v6405_v30 = vcombine.low %v820_v15, %v824_v16  ;;  %v904_v7 = vld [vmem:[%s10659_s5 + $0x338] sm:$0xff] }
 0x328   :  { %2526 = vmatpush2.bf16.msra.mxu0 %v6475_v20  ;;  %v948_v20 = vld [vmem:[%s10659_s5 + $0x498] sm:$0xff]  ;;  %v6486_v12 = vcombine.high %v900_v6, %v904_v7  ;;  %v6485_v16 = vcombine.low %v900_v6, %v904_v7 }
 0x329   :  { %2567 = vmatpush2.bf16.msra.mxu1 %v6603_v23  ;;  %2527 = vmatprep.subr.bf16.mxu0 %v6468_v24  ;;  %v812_v23 = vld [vmem:[%s10659_s5 + $0x58] sm:$0xff]  ;;  %v6533_v33 = vcombine.low %v948_v20, %v952_v21 }
 0x32a   :  { %2568 = vmatprep.subr.bf16.mxu1 %v6596_v27  ;;  %v816_v24 = vld [vmem:[%s10659_s5 + $0x78] sm:$0xff]  ;;  %v6534_v27 = vcombine.high %v948_v20, %v952_v21 }
 0x32b   :  { %v6398_v34 = vcombine.high %v812_v23, %v816_v24  ;;  %v6397_v42 = vcombine.low %v812_v23, %v816_v24  ;;  %v1020_v13 = vld [vmem:[%s10659_s5 + $0x6d8] sm:$0xff] }
 0x32c   :  { %2528 = vmatpush2.bf16.msra.mxu0 %v6467_v28  ;;  %v940_v28 = vld [vmem:[%s10659_s5 + $0x458] sm:$0xff] }
 0x32d   :  { %2569 = vmatpush2.bf16.msra.mxu1 %v6595_v31  ;;  %2529 = vmatprep.subr.bf16.mxu0 %v6460_v32  ;;  %v804_v31 = vld [vmem:[%s10659_s5 + $0x18] sm:$0xff]  ;;  %v6525_v45 = vcombine.low %v940_v28, %v944_v29 }
 0x32e   :  { %2570 = vmatprep.subr.bf16.mxu1 %v6588_v35  ;;  %v808_v32 = vld [vmem:[%s10659_s5 + $0x38] sm:$0xff]  ;;  %v6526_v35 = vcombine.high %v940_v28, %v944_v29 }
 0x32f   :  { %v6390_v46 = vcombine.high %v804_v31, %v808_v32  ;;  %v1012_v21 = vld [vmem:[%s10659_s5 + $0x698] sm:$0xff] }
 0x330   :  { %2530 = vmatpush2.bf16.msra.mxu0 %v6459_v37  ;;  %v932_v37 = vld [vmem:[%s10659_s5 + $0x418] sm:$0xff] }
 0x331   :  { %2571 = vmatpush2.bf16.msra.mxu1 %v6587_v43  ;;  %2531 = vmatprep.subr.bf16.mxu0 %v6452_v44  ;;  %v924_v43 = vld [vmem:[%s10659_s5 + $0x3d8] sm:$0xff] }
 0x332   :  { %2572 = vmatprep.subr.bf16.mxu1 %v6580_v47  ;;  %v928_v44 = vld [vmem:[%s10659_s5 + $0x3f8] sm:$0xff]  ;;  %v6518_v47 = vcombine.high %v932_v37, %v936_v38 }
 0x333   :  { %v6510_v54 = vcombine.high %v924_v43, %v928_v44  ;;  %v6509_v58 = vcombine.low %v924_v43, %v928_v44  ;;  %v1004_v29 = vld [vmem:[%s10659_s5 + $0x658] sm:$0xff] }
 0x334   :  { %2532 = vmatpush2.bf16.msra.mxu0 %v6451_v48  ;;  %v1052_v48 = vld [vmem:[%s10659_s5 + $0x7d8] sm:$0xff] }
 0x335   :  { %2573 = vmatpush2.bf16.msra.mxu1 %v6579_v49  ;;  %2583 = vmatprep.subr.bf16.mxu0 %v6446_v50  ;;  %v1056_v49 = vld [vmem:[%s10659_s5 + $0x7f8] sm:$0xff]  ;;  %v6389_v50 = vcombine.low %v804_v31, %v808_v32 }
 0x336   :  { %2624 = vmatprep.subr.bf16.mxu1 %v6574_v53  ;;  %v6517_v53 = vcombine.low %v932_v37, %v936_v38  ;;  %v6638_v55 = vcombine.high %v1052_v48, %v1056_v49  ;;  %v996_v38 = vld [vmem:[%s10659_s5 + $0x618] sm:$0xff] }
 0x337   :  { %2534 = vmatmul.mubr.bf16.vlgmr.msra.gmra.mxu0 %v8601_v39  ;;  %v7359_v7 = vld [vmem:[%s10660_s6 + $0xe0] ss:$28 sps:$4 sm:$0xff]  }
 0x338   :  { %2575 = vmatmul.mubr.bf16.vlgmr.msra.gmra.mxu1 %v8605_v41  ;;  %2584 = vmatpush1.bf16.msra.mxu0 %v6445_v56  ;;  %v1044_v56 = vld [vmem:[%s10659_s5 + $0x798] sm:$0xff] }
 0x339   :  { %2615 = vmatprep.mubr.bf16.mxu0 %v8593_v36  ;;  %2625 = vmatpush1.bf16.msra.mxu1 %v6573_v59  ;;  %v828_v36 = vld [vmem:[%s10659_s5 + $0xd8] sm:$0xff]  ;;  %v6637_v59 = vcombine.low %v1052_v48, %v1056_v49  ;;  %v7352_v48 = vld [vmem:[%s10660_s6 + $0x18c] ss:$28 sps:$4 sm:$0xff]  }
 0x33a   :  { %2656 = vmatprep.mubr.bf16.mxu1 %v8603_v40  ;;  %2585 = vmatprep.subr.bf16.mxu0 %v6438_v62  ;;  %v832_v40 = vld [vmem:[%s10659_s5 + $0xf8] sm:$0xff]  ;;  %v6630_v62 = vcombine.high %v1044_v56, %v1048_v57 }
 0x33b   :  { %2626 = vmatprep.subr.bf16.mxu1 %v6566_v63  ;;  %v6414_v18 = vcombine.high %v828_v36, %v832_v40  ;;  %v6413_v22 = vcombine.low %v828_v36, %v832_v40  ;;  %v912_v63 = vld [vmem:[%s10659_s5 + $0x378] sm:$0xff] }
 0x33c   :  { %2586 = vmatpush1.bf16.msra.mxu0 %v6437_v0  ;;  %v1036_v0 = vld [vmem:[%s10659_s5 + $0x758] sm:$0xff]  ;;  %v6493_v40 = vcombine.low %v908_v61, %v912_v63 }
 0x33d   :  { %2627 = vmatpush1.bf16.msra.mxu1 %v6565_v3  ;;  %2587 = vmatprep.subr.bf16.mxu0 %v6430_v4  ;;  %v6629_v3 = vcombine.low %v1044_v56, %v1048_v57  ;;  %v6494_v4 = vcombine.high %v908_v61, %v912_v63  ;;  %v1032_v36 = vld [vmem:[%s10659_s5 + $0x738] sm:$0xff]  ;;  %v7353_v56 = vld [vmem:[%s10660_s6 + $0x150] ss:$28 sps:$4 sm:$0xff]  }
 0x33e   :  { %2628 = vmatprep.subr.bf16.mxu1 %v6558_v5  ;;  %v6622_v5 = vcombine.high %v1036_v0, %v1040_v1  ;;  %v7380_v61 = vld [vmem:[%s10660_s6 + $0x4d0] ss:$28 sps:$4 sm:$0xff]   ;;  %v7388_v63 = vld [vmem:[%s10660_s6 + $0x49c] ss:$28 sps:$4 sm:$0xff]  }
 0x340   :  { %2588 = vmatpush1.bf16.msra.mxu0 %v6429_v8  ;;  %v1028_v8 = vld [vmem:[%s10659_s5 + $0x718] sm:$0xff] }
 0x341   :  { %2629 = vmatpush1.bf16.msra.mxu1 %v6557_v9  ;;  %2589 = vmatprep.subr.bf16.mxu0 %v6422_v10  ;;  %v892_v9 = vld [vmem:[%s10659_s5 + $0x2d8] sm:$0xff]  ;;  %v6614_v15 = vcombine.high %v1028_v8, %v1032_v36 }
 0x342   :  { %2630 = vmatprep.subr.bf16.mxu1 %v6550_v11  ;;  %v896_v10 = vld [vmem:[%s10659_s5 + $0x2f8] sm:$0xff]  ;;  %v6621_v11 = vcombine.low %v1036_v0, %v1040_v1  ;;  %v7361_v1 = vld [vmem:[%s10660_s6 + $0xe4] ss:$28 sps:$4 sm:$0xff]  }
 0x343   :  { %v6478_v20 = vcombine.high %v892_v9, %v896_v10  ;;  %v6477_v24 = vcombine.low %v892_v9, %v896_v10  ;;  %v7362_v9 = vld [vmem:[%s10660_s6 + $0xa8] ss:$28 sps:$4 sm:$0xff]  }
 0x344   :  { %2590 = vmatpush1.bf16.msra.mxu0 %v6421_v14  ;;  %v1024_v14 = vld [vmem:[%s10659_s5 + $0x6f8] sm:$0xff]  ;;  %v7400_v10 = vld [vmem:[%s10660_s6 + $0x42c] ss:$28 sps:$4 sm:$0xff]  }
 0x345   :  { %2631 = vmatpush1.bf16.msra.mxu1 %v6549_v17  ;;  %2591 = vmatprep.subr.bf16.mxu0 %v6414_v18  ;;  %v884_v17 = vld [vmem:[%s10659_s5 + $0x298] sm:$0xff]  ;;  %v6606_v23 = vcombine.high %v1020_v13, %v1024_v14 }
 0x346   :  { %2632 = vmatprep.subr.bf16.mxu1 %v6542_v19  ;;  %v888_v18 = vld [vmem:[%s10659_s5 + $0x2b8] sm:$0xff]  ;;  %v6613_v19 = vcombine.low %v1028_v8, %v1032_v36  ;;  %v7394_v8 = vld [vmem:[%s10660_s6 + $0x464] ss:$28 sps:$4 sm:$0xff]   ;;  %v7364_v36 = vld [vmem:[%s10660_s6 + $0xac] ss:$28 sps:$4 sm:$0xff]  }
 0x347   :  { %v6470_v28 = vcombine.high %v884_v17, %v888_v18  ;;  %v6469_v32 = vcombine.low %v884_v17, %v888_v18  ;;  %v7368_v17 = vld [vmem:[%s10660_s6 + $0x38] ss:$28 sps:$4 sm:$0xff]  }
 0x348   :  { %2592 = vmatpush1.bf16.msra.mxu0 %v6413_v22  ;;  %v1016_v22 = vld [vmem:[%s10659_s5 + $0x6b8] sm:$0xff] }
 0x349   :  { %2633 = vmatpush1.bf16.msra.mxu1 %v6541_v25  ;;  %2593 = vmatprep.subr.bf16.mxu0 %v6406_v26  ;;  %v876_v25 = vld [vmem:[%s10659_s5 + $0x258] sm:$0xff]  ;;  %v6598_v31 = vcombine.high %v1012_v21, %v1016_v22 }
 0x34a   :  { %2634 = vmatprep.subr.bf16.mxu1 %v6534_v27  ;;  %v880_v26 = vld [vmem:[%s10659_s5 + $0x278] sm:$0xff]  ;;  %v6605_v27 = vcombine.low %v1020_v13, %v1024_v14  ;;  %v7365_v13 = vld [vmem:[%s10660_s6 + $0x70] ss:$28 sps:$4 sm:$0xff]  }
 0x34b   :  { %v6462_v37 = vcombine.high %v876_v25, %v880_v26  ;;  %v6461_v44 = vcombine.low %v876_v25, %v880_v26  ;;  %v7406_v14 = vld [vmem:[%s10660_s6 + $0x3f4] ss:$28 sps:$4 sm:$0xff]   ;;  %v7412_v18 = vld [vmem:[%s10660_s6 + $0x3bc] ss:$28 sps:$4 sm:$0xff]   ;;  %v7418_v25 = vld [vmem:[%s10660_s6 + $0x384] ss:$28 sps:$4 sm:$0xff]  }
 0x34c   :  { %2594 = vmatpush1.bf16.msra.mxu0 %v6405_v30  ;;  %v1008_v30 = vld [vmem:[%s10659_s5 + $0x678] sm:$0xff] }
 0x34d   :  { %2635 = vmatpush1.bf16.msra.mxu1 %v6533_v33  ;;  %2595 = vmatprep.subr.bf16.mxu0 %v6398_v34  ;;  %v868_v33 = vld [vmem:[%s10659_s5 + $0x218] sm:$0xff]  ;;  %v6590_v43 = vcombine.high %v1004_v29, %v1008_v30 }
 0x34e   :  { %2636 = vmatprep.subr.bf16.mxu1 %v6526_v35  ;;  %v872_v34 = vld [vmem:[%s10659_s5 + $0x238] sm:$0xff]  ;;  %v6597_v35 = vcombine.low %v1012_v21, %v1016_v22  ;;  %v7373_v22 = vld [vmem:[%s10660_s6 + $0x4] ss:$28 sps:$4 sm:$0xff]  }
 0x34f   :  { %v6453_v49 = vcombine.low %v868_v33, %v872_v34 }
 0x350   :  { %2596 = vmatpush1.bf16.msra.mxu0 %v6397_v42  ;;  %v1000_v42 = vld [vmem:[%s10659_s5 + $0x638] sm:$0xff] }
 0x351   :  { %2637 = vmatpush1.bf16.msra.mxu1 %v6525_v45  ;;  %2597 = vmatprep.subr.bf16.mxu0 %v6390_v46  ;;  %v6589_v45 = vcombine.low %v1004_v29, %v1008_v30  ;;  %v6454_v46 = vcombine.high %v868_v33, %v872_v34  ;;  %v6581_v51 = vcombine.low %v996_v38, %v1000_v42  ;;  %v7416_v30 = vld [vmem:[%s10660_s6 + $0x380] ss:$28 sps:$4 sm:$0xff]   ;;  %v7424_v33 = vld [vmem:[%s10660_s6 + $0x6cc] ss:$28 sps:$4 sm:$0xff]  }
 0x352   :  { %2638 = vmatprep.subr.bf16.mxu1 %v6518_v47  ;;  %v6582_v47 = vcombine.high %v996_v38, %v1000_v42  ;;  %v7427_v38 = vld [vmem:[%s10660_s6 + $0x694] ss:$28 sps:$4 sm:$0xff]  }
 0x353   :  { %v7383_v42 = vld [vmem:[%s10660_s6 + $0x310] ss:$28 sps:$4 sm:$0xff]  }
 0x354   :  { %2598 = vmatpush1.bf16.msra.mxu0 %v6389_v50  ;;  %v7376_v50 = vld [vmem:[%s10660_s6 + $0x50c] ss:$28 sps:$4 sm:$0xff]  }
 0x355   :  { %2639 = vmatpush1.bf16.msra.mxu1 %v6517_v53  ;;  %2599 = vmatprep.subr.bf16.mxu0 %v6510_v54  ;;  %v7355_v53 = vld [vmem:[%s10660_s6 + $0x154] ss:$28 sps:$4 sm:$0xff]   ;;  %v7374_v54 = vld [vmem:[%s10660_s6 + $0x508] ss:$28 sps:$4 sm:$0xff]  }
 0x356   :  { %2640 = vmatprep.subr.bf16.mxu1 %v6638_v55  ;;  %v7382_v55 = vld [vmem:[%s10660_s6 + $0x4d4] ss:$28 sps:$4 sm:$0xff]  }
 0x358   :  { %2600 = vmatpush2.bf16.msra.mxu0 %v6509_v58  ;;  %v7358_v58 = vld [vmem:[%s10660_s6 + $0x11c] ss:$28 sps:$4 sm:$0xff]  }
 0x359   :  { %2641 = vmatpush2.bf16.msra.mxu1 %v6637_v59  ;;  %2601 = vmatprep.subr.bf16.mxu0 %v6502_v60 }
 0x35a   :  { %2642 = vmatprep.subr.bf16.mxu1 %v6630_v62 }
 0x35c   :  { %2602 = vmatpush2.bf16.msra.mxu0 %v6501_v2 }
 0x35d   :  { %2643 = vmatpush2.bf16.msra.mxu1 %v6629_v3  ;;  %2603 = vmatprep.subr.bf16.mxu0 %v6494_v4 }
 0x35e   :  { %2644 = vmatprep.subr.bf16.mxu1 %v6622_v5  ;;  %v7386_v5 = vld [vmem:[%s10660_s6 + $0x498] ss:$28 sps:$4 sm:$0xff]  }
 0x360   :  { %2604 = vmatpush2.bf16.msra.mxu0 %v6493_v40  ;;  %v7392_v40 = vld [vmem:[%s10660_s6 + $0x460] ss:$28 sps:$4 sm:$0xff]  }
 0x361   :  { %2645 = vmatpush2.bf16.msra.mxu1 %v6621_v11  ;;  %2605 = vmatprep.subr.bf16.mxu0 %v6486_v12  ;;  %v7367_v11 = vld [vmem:[%s10660_s6 + $0x74] ss:$28 sps:$4 sm:$0xff]   ;;  %v7398_v12 = vld [vmem:[%s10660_s6 + $0x428] ss:$28 sps:$4 sm:$0xff]  }
 0x362   :  { %2646 = vmatprep.subr.bf16.mxu1 %v6614_v15  ;;  %v7370_v15 = vld [vmem:[%s10660_s6 + $0x3c] ss:$28 sps:$4 sm:$0xff]  }
 0x364   :  { %2606 = vmatpush2.bf16.msra.mxu0 %v6485_v16  ;;  %v7404_v16 = vld [vmem:[%s10660_s6 + $0x3f0] ss:$28 sps:$4 sm:$0xff]  }
 0x365   :  { %2647 = vmatpush2.bf16.msra.mxu1 %v6613_v19  ;;  %2607 = vmatprep.subr.bf16.mxu0 %v6478_v20 }
 0x366   :  { %2648 = vmatprep.subr.bf16.mxu1 %v6606_v23  ;;  %v7410_v23 = vld [vmem:[%s10660_s6 + $0x3b8] ss:$28 sps:$4 sm:$0xff]  }
 0x368   :  { %2608 = vmatpush2.bf16.msra.mxu0 %v6477_v24  ;;  %v7371_v24 = vld [vmem:[%s10660_s6] ss:$28 sps:$4 sm:$0xff]  }
 0x369   :  { %2649 = vmatpush2.bf16.msra.mxu1 %v6605_v27  ;;  %2609 = vmatprep.subr.bf16.mxu0 %v6470_v28  ;;  %v7379_v27 = vld [vmem:[%s10660_s6 + $0x34c] ss:$28 sps:$4 sm:$0xff]  }
 0x36a   :  { %2650 = vmatprep.subr.bf16.mxu1 %v6598_v31 }
 0x36c   :  { %2610 = vmatpush2.bf16.msra.mxu0 %v6469_v32  ;;  %v7377_v32 = vld [vmem:[%s10660_s6 + $0x348] ss:$28 sps:$4 sm:$0xff]  }
 0x36d   :  { %2651 = vmatpush2.bf16.msra.mxu1 %v6597_v35  ;;  %2611 = vmatprep.subr.bf16.mxu0 %v6462_v37  ;;  %v7385_v35 = vld [vmem:[%s10660_s6 + $0x314] ss:$28 sps:$4 sm:$0xff]   ;;  %v7422_v37 = vld [vmem:[%s10660_s6 + $0x6c8] ss:$28 sps:$4 sm:$0xff]  }
 0x36e   :  { %2652 = vmatprep.subr.bf16.mxu1 %v6590_v43  ;;  %v7391_v43 = vld [vmem:[%s10660_s6 + $0x2dc] ss:$28 sps:$4 sm:$0xff]  }
 0x370   :  { %2612 = vmatpush2.bf16.msra.mxu0 %v6461_v44  ;;  %v7425_v44 = vld [vmem:[%s10660_s6 + $0x690] ss:$28 sps:$4 sm:$0xff]  }
 0x371   :  { %2653 = vmatpush2.bf16.msra.mxu1 %v6589_v45  ;;  %2613 = vmatprep.subr.bf16.mxu0 %v6454_v46  ;;  %v7430_v45 = vld [vmem:[%s10660_s6 + $0x65c] ss:$28 sps:$4 sm:$0xff]  }
 0x372   :  { %2654 = vmatprep.subr.bf16.mxu1 %v6582_v47  ;;  %v7389_v46 = vld [vmem:[%s10660_s6 + $0x2d8] ss:$28 sps:$4 sm:$0xff]   ;;  %v7397_v47 = vld [vmem:[%s10660_s6 + $0x2a4] ss:$28 sps:$4 sm:$0xff]  }
 0x374   :  { %2614 = vmatpush2.bf16.msra.mxu0 %v6453_v49  ;;  %v7433_v49 = vld [vmem:[%s10660_s6 + $0x624] ss:$28 sps:$4 sm:$0xff]  }
 0x375   :  { %2655 = vmatpush2.bf16.msra.mxu1 %v6581_v51  ;;  %5582 = vmatprep.subr.bf16.mxu0 %v7352_v48  ;;  %v7428_v48 = vld [vmem:[%s10660_s6 + $0x658] ss:$28 sps:$4 sm:$0xff]   ;;  %v7403_v51 = vld [vmem:[%s10660_s6 + $0x26c] ss:$28 sps:$4 sm:$0xff]  }
 0x376   :  { %5623 = vmatprep.subr.bf16.mxu1 %v7376_v50  ;;  %v7395_v50 = vld [vmem:[%s10660_s6 + $0x2a0] ss:$28 sps:$4 sm:$0xff]  }
 0x377   :  { %2616 = vmatmul.mubr.bf16.vlgmr.msra.gmra.mxu0 %v8601_v39  ;;  %v2371_v57 = vpop.f32.mrf.mxu0  ;;  %v7356_v39 = vld [vmem:[%s10660_s6 + $0x118] ss:$28 sps:$4 sm:$0xff]  }
 0x378   :  { %2657 = vmatmul.mubr.bf16.vlgmr.msra.gmra.mxu1 %v8605_v41  ;;  %v2412_v59 = vpop.f32.mrf.mxu1  ;;  %5583 = vmatpush1.bf16.msra.mxu0 %v7350_v52  ;;  %v7431_v52 = vld [vmem:[%s10660_s6 + $0x620] ss:$28 sps:$4 sm:$0xff]  }
 0x379   :  { %v2373_v60 = vpop.f32.mrf.mxu0  ;;  %5584 = vmatprep.subr.bf16.mxu0 %v7355_v53  ;;  %5624 = vmatpush1.bf16.msra.mxu1 %v7374_v54  ;;  %v9259_v20 = vadd.f32 %v2412_v59, %v2371_v57  ;;  %v7436_v53 = vld [vmem:[%s10660_s6 + $0x5ec] ss:$28 sps:$4 sm:$0xff]  }
 0x37a   :  { %v2414_v62 = vpop.f32.mrf.mxu1  ;;  %5625 = vmatprep.subr.bf16.mxu1 %v7382_v55  ;;  %v7401_v55 = vld [vmem:[%s10660_s6 + $0x268] ss:$28 sps:$4 sm:$0xff]  }
 0x37b   :  { %v2415_v41 = vadd.f32 %v2414_v62, %v2373_v60  ;;  %v2375_v0 = vpop.f32.mrf.mxu0  ;;  %v2673_v28 = vmul.f32 1.442695, %v9259_v20  ;;  %v7434_v57 = vld [vmem:[%s10660_s6 + $0x5e8] ss:$28 sps:$4 sm:$0xff]   ;;  %v7407_v60 = vld [vmem:[%s10660_s6 + $0x230] ss:$28 sps:$4 sm:$0xff]  }
 0x37c   :  { %v2416_v2 = vpop.f32.mrf.mxu1  ;;  %5585 = vmatpush1.bf16.msra.mxu0 %v7353_v56  ;;  %v7409_v56 = vld [vmem:[%s10660_s6 + $0x234] ss:$28 sps:$4 sm:$0xff]   ;;  %vm2665_vm9 = vcmp.gt.f32.partialorder %v9259_v20, 0.0  ;;  %v7421_v0 = vld [vmem:[%s10660_s6 + $0x1c4] ss:$28 sps:$4 sm:$0xff]  }
 0x37d   :  { %v2675_v3 = vmul.f32 1.442695, %v2415_v41  ;;  %v2376_v4 = vpop.f32.mrf.mxu0  ;;  %5586 = vmatprep.subr.bf16.mxu0 %v7358_v58  ;;  %5626 = vmatpush1.bf16.msra.mxu1 %v7380_v61  ;;  %vm2666_vm8 = vcmp.gt.f32.partialorder %v2415_v41, 0.0  ;;  %v7439_v58 = vld [vmem:[%s10660_s6 + $0x5b4] ss:$28 sps:$4 sm:$0xff]  }
 0x37e   :  { %v2417_v6 = vpop.f32.mrf.mxu1  ;;  %5627 = vmatprep.subr.bf16.mxu1 %v7388_v63  ;;  %v7415_v61 = vld [vmem:[%s10660_s6 + $0x1fc] ss:$28 sps:$4 sm:$0xff]   ;;  %v7437_v62 = vld [vmem:[%s10660_s6 + $0x5b0] ss:$28 sps:$4 sm:$0xff]  }
 0x37f   :  { %8004 = vpow2.f32 %v2675_v3  ;;  %v7445_v3 = vld [vmem:[%s10660_s6 + $0x544] ss:$28 sps:$4 sm:$0xff]  }
 0x380   :  { %5587 = vmatpush1.bf16.msra.mxu0 %v7356_v39  ;;  %8006 = vpow2.f32 %v2673_v28  ;;  %v7442_v39 = vld [vmem:[%s10660_s6 + $0x57c] ss:$28 sps:$4 sm:$0xff]   ;;  %v7458_v28 = vld [vmem:[%s10660_s6 + $0x7a8] ss:$28 sps:$4 sm:$0xff]  }
 0x381   :  { %5588 = vmatprep.subr.bf16.mxu0 %v7361_v1  ;;  %5628 = vmatpush1.bf16.msra.mxu1 %v7386_v5  ;;  %v7440_v1 = vld [vmem:[%s10660_s6 + $0x578] ss:$28 sps:$4 sm:$0xff]   ;;  %v7419_v4 = vld [vmem:[%s10660_s6 + $0x1c0] ss:$28 sps:$4 sm:$0xff]  }
 0x382   :  { %5629 = vmatprep.subr.bf16.mxu1 %v7394_v8  ;;  %v7443_v6 = vld [vmem:[%s10660_s6 + $0x540] ss:$28 sps:$4 sm:$0xff]   ;;  %v7496_v8 = vld [vmem:[%s10660_s6 + $0xc0c] ss:$28 sps:$4 sm:$0xff]  }
 0x384   :  { %5589 = vmatpush1.bf16.msra.mxu0 %v7359_v7  ;;  %v7448_v7 = vld [vmem:[%s10660_s6 + $0x88c] ss:$28 sps:$4 sm:$0xff]  }
 0x385   :  { %5590 = vmatprep.subr.bf16.mxu0 %v7364_v36  ;;  %5630 = vmatpush1.bf16.msra.mxu1 %v7392_v40  ;;  %v7446_v36 = vld [vmem:[%s10660_s6 + $0x888] ss:$28 sps:$4 sm:$0xff]  }
 0x386   :  { %5631 = vmatprep.subr.bf16.mxu1 %v7400_v10  ;;  %v7449_v10 = vld [vmem:[%s10660_s6 + $0x850] ss:$28 sps:$4 sm:$0xff]  }
 0x388   :  { %5591 = vmatpush1.bf16.msra.mxu0 %v7362_v9  ;;  %v7451_v9 = vld [vmem:[%s10660_s6 + $0x854] ss:$28 sps:$4 sm:$0xff]  }
 0x389   :  { %5592 = vmatprep.subr.bf16.mxu0 %v7367_v11  ;;  %5632 = vmatpush1.bf16.msra.mxu1 %v7398_v12 }
 0x38a   :  { %5633 = vmatprep.subr.bf16.mxu1 %v7406_v14 }
 0x38c   :  { %v8005_v19 = vpop.eup %8004  ;;  %5593 = vmatpush1.bf16.msra.mxu0 %v7365_v13 }
 0x38d   :  { %v6640_v21 = vadd.f32 -1.0, %v8005_v19  ;;  %5594 = vmatprep.subr.bf16.mxu0 %v7370_v15  ;;  %5634 = vmatpush1.bf16.msra.mxu1 %v7404_v16  ;;  %v8007_v54 = vpop.eup %8006  ;;  %v7454_v15 = vld [vmem:[%s10660_s6 + $0x81c] ss:$28 sps:$4 sm:$0xff]  }
 0x38e   :  { %5635 = vmatprep.subr.bf16.mxu1 %v7412_v18  ;;  %v6639_v59 = vadd.f32 -1.0, %v8007_v54 }
 0x38f   :  { %v2698_v26 = vmul.f32 1.6732632, %v6640_v21 }
 0x390   :  { %5595 = vmatpush1.bf16.msra.mxu0 %v7368_v17  ;;  %v2697_v63 = vmul.f32 1.6732632, %v6639_v59  ;;  %v7478_v59 = vld [vmem:[%s10660_s6 + $0x9dc] ss:$28 sps:$4 sm:$0xff]  }
 0x391   :  { %v2706_v29 = vsel %vm2666_vm8, %v2415_v41, %v2698_v26  ;;  %5596 = vmatprep.subr.bf16.mxu0 %v7373_v22  ;;  %5636 = vmatpush1.bf16.msra.mxu1 %v7410_v23  ;;  %v7413_v41 = vld [vmem:[%s10660_s6 + $0x1f8] ss:$28 sps:$4 sm:$0xff]   ;;  %v7455_v26 = vld [vmem:[%s10660_s6 + $0x7e0] ss:$28 sps:$4 sm:$0xff]  }
 0x392   :  { %v2714_v31 = vmul.f32 1.050701, %v2706_v29  ;;  %5637 = vmatprep.subr.bf16.mxu1 %v7418_v25  ;;  %v2705_v2 = vsel %vm2665_vm9, %v9259_v20, %v2697_v63  ;;  %v7452_v20 = vld [vmem:[%s10660_s6 + $0x818] ss:$28 sps:$4 sm:$0xff]   ;;  %v7514_v63 = vld [vmem:[%s10660_s6 + $0xb64] ss:$28 sps:$4 sm:$0xff]  }
 0x393   :  { %v2713_v5 = vmul.f32 1.050701, %v2705_v2  ;;  %v7463_v29 = vld [vmem:[%s10660_s6 + $0x774] ss:$28 sps:$4 sm:$0xff]   ;;  %v7520_v2 = vld [vmem:[%s10660_s6 + $0xb2c] ss:$28 sps:$4 sm:$0xff]  }
 0x394   :  { %v9286_v34 = vpack.c.bf16 %v2714_v31, %v2714_v31  ;;  %5597 = vmatpush1.bf16.msra.mxu0 %v7371_v24  ;;  %v7457_v24 = vld [vmem:[%s10660_s6 + $0x7e4] ss:$28 sps:$4 sm:$0xff]   ;;  %v7466_v31 = vld [vmem:[%s10660_s6 + $0x73c] ss:$28 sps:$4 sm:$0xff]  }
 0x395   :  { %5598 = vmatprep.subr.bf16.mxu0 %v7379_v27  ;;  %5638 = vmatpush1.bf16.msra.mxu1 %v7416_v30  ;;  %v9387_v40 = vpack.c.bf16 %v2713_v5, %v2713_v5  ;;  %v7460_v27 = vld [vmem:[%s10660_s6 + $0x7ac] ss:$28 sps:$4 sm:$0xff]   ;;  %v7487_v5 = vld [vmem:[%s10660_s6 + $0x934] ss:$28 sps:$4 sm:$0xff]  }
 0x396   :  { %5614 = vmatprep.mubr.bf16.mxu0 %v9286_v34  ;;  %5639 = vmatprep.subr.bf16.mxu1 %v7424_v33  ;;  %v7461_v30 = vld [vmem:[%s10660_s6 + $0x770] ss:$28 sps:$4 sm:$0xff]   ;;  %v7464_v33 = vld [vmem:[%s10660_s6 + $0x738] ss:$28 sps:$4 sm:$0xff]  }
 0x398   :  { %5599 = vmatpush2.bf16.msra.mxu0 %v7377_v32 }
 0x399   :  { %5600 = vmatprep.subr.bf16.mxu0 %v7385_v35  ;;  %5640 = vmatpush2.bf16.msra.mxu1 %v7422_v37 }
 0x39a   :  { %5641 = vmatprep.subr.bf16.mxu1 %v7427_v38 }
 0x39c   :  { %5601 = vmatpush2.bf16.msra.mxu0 %v7383_v42 }
 0x39d   :  { %5602 = vmatprep.subr.bf16.mxu0 %v7391_v43  ;;  %5642 = vmatpush2.bf16.msra.mxu1 %v7425_v44  ;;  %v7469_v43 = vld [vmem:[%s10660_s6 + $0x704] ss:$28 sps:$4 sm:$0xff]  }
 0x39e   :  { %5643 = vmatprep.subr.bf16.mxu1 %v7430_v45  ;;  %v7467_v44 = vld [vmem:[%s10660_s6 + $0x700] ss:$28 sps:$4 sm:$0xff]  }
 0x3a0   :  { %5603 = vmatpush2.bf16.msra.mxu0 %v7389_v46 }
 0x3a1   :  { %5604 = vmatprep.subr.bf16.mxu0 %v7397_v47  ;;  %5644 = vmatpush2.bf16.msra.mxu1 %v7428_v48 }
 0x3a2   :  { %5645 = vmatprep.subr.bf16.mxu1 %v7433_v49  ;;  %v7472_v49 = vld [vmem:[%s10660_s6 + $0xa4c] ss:$28 sps:$4 sm:$0xff]  }
 0x3a4   :  { %5605 = vmatpush2.bf16.msra.mxu0 %v7395_v50 }
 0x3a5   :  { %5606 = vmatprep.subr.bf16.mxu0 %v7403_v51  ;;  %5646 = vmatpush2.bf16.msra.mxu1 %v7431_v52  ;;  %v7470_v51 = vld [vmem:[%s10660_s6 + $0xa48] ss:$28 sps:$4 sm:$0xff]  }
 0x3a6   :  { %5647 = vmatprep.subr.bf16.mxu1 %v7436_v53  ;;  %v7494_v52 = vld [vmem:[%s10660_s6 + $0xc08] ss:$28 sps:$4 sm:$0xff]  }
 0x3a8   :  { %5607 = vmatpush2.bf16.msra.mxu0 %v7401_v55  ;;  %v7475_v55 = vld [vmem:[%s10660_s6 + $0xa14] ss:$28 sps:$4 sm:$0xff]  }
 0x3a9   :  { %5608 = vmatprep.subr.bf16.mxu0 %v7409_v56  ;;  %5648 = vmatpush2.bf16.msra.mxu1 %v7434_v57  ;;  %v7502_v56 = vld [vmem:[%s10660_s6 + $0xbd4] ss:$28 sps:$4 sm:$0xff]  }
 0x3aa   :  { %5649 = vmatprep.subr.bf16.mxu1 %v7439_v58  ;;  %v7473_v57 = vld [vmem:[%s10660_s6 + $0xa10] ss:$28 sps:$4 sm:$0xff]  }
 0x3ab   :  { %v7500_v58 = vld [vmem:[%s10660_s6 + $0xbd0] ss:$28 sps:$4 sm:$0xff]  }
 0x3ac   :  { %5609 = vmatpush2.bf16.msra.mxu0 %v7407_v60  ;;  %v7508_v60 = vld [vmem:[%s10660_s6 + $0xb9c] ss:$28 sps:$4 sm:$0xff]  }
 0x3ad   :  { %5610 = vmatprep.subr.bf16.mxu0 %v7415_v61  ;;  %5650 = vmatpush2.bf16.msra.mxu1 %v7437_v62  ;;  %v7476_v61 = vld [vmem:[%s10660_s6 + $0x9d8] ss:$28 sps:$4 sm:$0xff]  }
 0x3ae   :  { %5651 = vmatprep.subr.bf16.mxu1 %v7442_v39  ;;  %v7506_v62 = vld [vmem:[%s10660_s6 + $0xb98] ss:$28 sps:$4 sm:$0xff]   ;;  %v7481_v39 = vld [vmem:[%s10660_s6 + $0x9a4] ss:$28 sps:$4 sm:$0xff]  }
 0x3b0   :  { %5611 = vmatpush2.bf16.msra.mxu0 %v7413_v41  ;;  %v7479_v41 = vld [vmem:[%s10660_s6 + $0x9a0] ss:$28 sps:$4 sm:$0xff]  }
 0x3b1   :  { %5612 = vmatprep.subr.bf16.mxu0 %v7421_v0  ;;  %5652 = vmatpush2.bf16.msra.mxu1 %v7440_v1  ;;  %v7512_v0 = vld [vmem:[%s10660_s6 + $0xb60] ss:$28 sps:$4 sm:$0xff]   ;;  %v7484_v1 = vld [vmem:[%s10660_s6 + $0x96c] ss:$28 sps:$4 sm:$0xff]  }
 0x3b2   :  { %5653 = vmatprep.subr.bf16.mxu1 %v7445_v3  ;;  %v7482_v3 = vld [vmem:[%s10660_s6 + $0x968] ss:$28 sps:$4 sm:$0xff]  }
 0x3b4   :  { %5613 = vmatpush2.bf16.msra.mxu0 %v7419_v4  ;;  %v7518_v4 = vld [vmem:[%s10660_s6 + $0xb28] ss:$28 sps:$4 sm:$0xff]  }
 0x3b5   :  { %5654 = vmatpush2.bf16.msra.mxu1 %v7443_v6  ;;  %5664 = vmatprep.subr.bf16.mxu0 %v7448_v7  ;;  %v7526_v6 = vld [vmem:[%s10660_s6 + $0xaf4] ss:$28 sps:$4 sm:$0xff]  }
 0x3b6   :  { %5705 = vmatprep.subr.bf16.mxu1 %v7496_v8  ;;  %v7485_v7 = vld [vmem:[%s10660_s6 + $0x930] ss:$28 sps:$4 sm:$0xff]  }
 0x3b7   :  { %v2453_v11 = vpop.f32.mrf.mxu0  ;;  %5615 = vmatmul.mubr.bf16.vlgmr.msra.gmra.mxu0 %v9387_v40  ;;  %v7524_v8 = vld [vmem:[%s10660_s6 + $0xaf0] ss:$28 sps:$4 sm:$0xff]  }
 0x3b8   :  { %v2494_v12 = vpop.f32.mrf.mxu1  ;;  %5665 = vmatpush1.bf16.msra.mxu0 %v7446_v36  ;;  %v7490_v36 = vld [vmem:[%s10660_s6 + $0x8fc] ss:$28 sps:$4 sm:$0xff]  }
 0x3b9   :  { %v2495_v13 = vadd.f32 %v2494_v12, %v2453_v11  ;;  %v2455_v14 = vpop.f32.mrf.mxu0  ;;  %5666 = vmatprep.subr.bf16.mxu0 %v7451_v9  ;;  %v7532_v9 = vld [vmem:[%s10660_s6 + $0xabc] ss:$28 sps:$4 sm:$0xff]   ;;  %v7493_v12 = vld [vmem:[%s10660_s6 + $0x8c4] ss:$28 sps:$4 sm:$0xff]  }
 0x3ba   :  { %v2496_v16 = vpop.f32.mrf.mxu1  ;;  %v7530_v11 = vld [vmem:[%s10660_s6 + $0xab8] ss:$28 sps:$4 sm:$0xff]  }
 0x3bb   :  { %v2677_v17 = vmul.f32 1.442695, %v2495_v13  ;;  %v2497_v18 = vadd.f32 %v2496_v16, %v2455_v14  ;;  %v2457_v19 = vpop.f32.mrf.mxu0  ;;  %vm2667_vm10 = vcmp.gt.f32.partialorder %v2495_v13, 0.0  ;;  %v7491_v14 = vld [vmem:[%s10660_s6 + $0x8c0] ss:$28 sps:$4 sm:$0xff]  }
 0x3bc   :  { %v2498_v21 = vpop.f32.mrf.mxu1  ;;  %5667 = vmatpush1.bf16.msra.mxu0 %v7449_v10  ;;  %v7488_v10 = vld [vmem:[%s10660_s6 + $0x8f8] ss:$28 sps:$4 sm:$0xff]  }
 0x3bd   :  { %8008 = vpow2.f32 %v2677_v17  ;;  %v2679_v22 = vmul.f32 1.442695, %v2497_v18  ;;  %v2458_v23 = vpop.f32.mrf.mxu0  ;;  %5668 = vmatprep.subr.bf16.mxu0 %v7454_v15  ;;  %vm2668_vm11 = vcmp.gt.f32.partialorder %v2497_v18, 0.0  ;;  %v7536_v15 = vld [vmem:[%s10660_s6 + $0xa80] ss:$28 sps:$4 sm:$0xff]  }
 0x3be   :  { %v2499_v25 = vpop.f32.mrf.mxu1  ;;  %v7499_v16 = vld [vmem:[%s10660_s6 + $0x194] ss:$28 sps:$4 sm:$0xff]   ;;  %v7544_v17 = vld [vmem:[%s10660_s6 + $0xdcc] ss:$28 sps:$4 sm:$0xff]  }
 0x3bf   :  { %8010 = vpow2.f32 %v2679_v22  ;;  %v7550_v19 = vld [vmem:[%s10660_s6 + $0xd94] ss:$28 sps:$4 sm:$0xff]   ;;  %v7556_v25 = vld [vmem:[%s10660_s6 + $0xd5c] ss:$28 sps:$4 sm:$0xff]  }
 0x3c0   :  { %5669 = vmatpush1.bf16.msra.mxu0 %v7452_v20  ;;  %v7548_v22 = vld [vmem:[%s10660_s6 + $0xd90] ss:$28 sps:$4 sm:$0xff]  }
 0x3c1   :  { %5670 = vmatprep.subr.bf16.mxu0 %v7457_v24 }
 0x3c4   :  { %5671 = vmatpush1.bf16.msra.mxu0 %v7455_v26 }
 0x3c5   :  { %5672 = vmatprep.subr.bf16.mxu0 %v7460_v27 }
 0x3c8   :  { %5673 = vmatpush1.bf16.msra.mxu0 %v7458_v28 }
 0x3c9   :  { %5674 = vmatprep.subr.bf16.mxu0 %v7463_v29 }
 0x3ca   :  { %v8009_v32 = vpop.eup %8008 }
 0x3cb   :  { %v6641_v35 = vadd.f32 -1.0, %v8009_v32 }
 0x3cc   :  { %v8011_v37 = vpop.eup %8010  ;;  %5675 = vmatpush1.bf16.msra.mxu0 %v7461_v30 }
 0x3cd   :  { %v2699_v38 = vmul.f32 1.6732632, %v6641_v35  ;;  %v6642_v42 = vadd.f32 -1.0, %v8011_v37  ;;  %5676 = vmatprep.subr.bf16.mxu0 %v7466_v31  ;;  %v7554_v31 = vld [vmem:[%s10660_s6 + $0xd58] ss:$28 sps:$4 sm:$0xff]  }
 0x3ce   :  { %v7562_v35 = vld [vmem:[%s10660_s6 + $0xd24] ss:$28 sps:$4 sm:$0xff]  }
 0x3cf   :  { %v2707_v45 = vsel %vm2667_vm10, %v2495_v13, %v2699_v38  ;;  %v2700_v46 = vmul.f32 1.6732632, %v6642_v42  ;;  %v7538_v13 = vld [vmem:[%s10660_s6 + $0xa84] ss:$28 sps:$4 sm:$0xff]   ;;  %v7568_v42 = vld [vmem:[%s10660_s6 + $0xcec] ss:$28 sps:$4 sm:$0xff]  }
 0x3d0   :  { %5677 = vmatpush1.bf16.msra.mxu0 %v7464_v33  ;;  %v2715_v47 = vmul.f32 1.050701, %v2707_v45  ;;  %v7560_v38 = vld [vmem:[%s10660_s6 + $0xd20] ss:$28 sps:$4 sm:$0xff]   ;;  %v7572_v45 = vld [vmem:[%s10660_s6 + $0xcb0] ss:$28 sps:$4 sm:$0xff]  }
 0x3d1   :  { %v2708_v48 = vsel %vm2668_vm11, %v2497_v18, %v2700_v46  ;;  %5678 = vmatprep.subr.bf16.mxu0 %v7469_v43  ;;  %v7542_v18 = vld [vmem:[%s10660_s6 + $0xdc8] ss:$28 sps:$4 sm:$0xff]   ;;  %v7580_v46 = vld [vmem:[%s10660_s6 + $0xc7c] ss:$28 sps:$4 sm:$0xff]  }
 0x3d2   :  { %v2716_v50 = vmul.f32 1.050701, %v2708_v48  ;;  %v9443_v54 = vpack.c.bf16 %v2715_v47, %v2715_v47  ;;  %v7566_v43 = vld [vmem:[%s10660_s6 + $0xce8] ss:$28 sps:$4 sm:$0xff]  }
 0x3d4   :  { %v9441_v53 = vpack.c.bf16 %v2716_v50, %v2716_v50  ;;  %5679 = vmatpush1.bf16.msra.mxu0 %v7467_v44  ;;  %v7574_v44 = vld [vmem:[%s10660_s6 + $0xcb4] ss:$28 sps:$4 sm:$0xff]  }
 0x3d5   :  { %5680 = vmatprep.subr.bf16.mxu0 %v7472_v49  ;;  %v7578_v50 = vld [vmem:[%s10660_s6 + $0xc78] ss:$28 sps:$4 sm:$0xff]  }
 0x3d6   :  { %5655 = vmatprep.mubr.bf16.mxu1 %v9441_v53 }
 0x3d7   :  { %5656 = vmatmul.mubr.bf16.vlgmr.msra.gmra.mxu1 %v9443_v54 }
 0x3d8   :  { %5681 = vmatpush2.bf16.msra.mxu0 %v7470_v51  ;;  %5706 = vmatpush1.bf16.msra.mxu1 %v7494_v52 }
 0x3d9   :  { %5682 = vmatprep.subr.bf16.mxu0 %v7475_v55  ;;  %5707 = vmatprep.subr.bf16.mxu1 %v7502_v56  ;;  %v7586_v55 = vld [vmem:[%s10660_s6 + $0xc44] ss:$28 sps:$4 sm:$0xff]  }
 0x3dc   :  { %5683 = vmatpush2.bf16.msra.mxu0 %v7473_v57  ;;  %5708 = vmatpush1.bf16.msra.mxu1 %v7500_v58  ;;  %v7584_v58 = vld [vmem:[%s10660_s6 + $0xc40] ss:$28 sps:$4 sm:$0xff]  }
 0x3dd   :  { %5684 = vmatprep.subr.bf16.mxu0 %v7478_v59  ;;  %5709 = vmatprep.subr.bf16.mxu1 %v7508_v60 }
 0x3e0   :  { %5685 = vmatpush2.bf16.msra.mxu0 %v7476_v61  ;;  %5710 = vmatpush1.bf16.msra.mxu1 %v7506_v62  ;;  %v7592_v61 = vld [vmem:[%s10660_s6 + $0x514] ss:$28 sps:$4 sm:$0xff]  }
 0x3e1   :  { %5686 = vmatprep.subr.bf16.mxu0 %v7481_v39  ;;  %5711 = vmatprep.subr.bf16.mxu1 %v7514_v63  ;;  %v7497_v63 = vld [vmem:[%s10660_s6 + $0x190] ss:$28 sps:$4 sm:$0xff]  }
 0x3e4   :  { %5687 = vmatpush2.bf16.msra.mxu0 %v7479_v41  ;;  %5712 = vmatpush1.bf16.msra.mxu1 %v7512_v0  ;;  %v7505_v0 = vld [vmem:[%s10660_s6 + $0x15c] ss:$28 sps:$4 sm:$0xff]  }
 0x3e5   :  { %5688 = vmatprep.subr.bf16.mxu0 %v7484_v1  ;;  %5713 = vmatprep.subr.bf16.mxu1 %v7520_v2  ;;  %v7503_v1 = vld [vmem:[%s10660_s6 + $0x158] ss:$28 sps:$4 sm:$0xff]   ;;  %v7511_v2 = vld [vmem:[%s10660_s6 + $0x124] ss:$28 sps:$4 sm:$0xff]  }
 0x3e8   :  { %5689 = vmatpush2.bf16.msra.mxu0 %v7482_v3  ;;  %5714 = vmatpush1.bf16.msra.mxu1 %v7518_v4  ;;  %v7509_v3 = vld [vmem:[%s10660_s6 + $0x120] ss:$28 sps:$4 sm:$0xff]   ;;  %v7517_v4 = vld [vmem:[%s10660_s6 + $0xec] ss:$28 sps:$4 sm:$0xff]  }
 0x3e9   :  { %5690 = vmatprep.subr.bf16.mxu0 %v7487_v5  ;;  %5715 = vmatprep.subr.bf16.mxu1 %v7526_v6  ;;  %v7515_v5 = vld [vmem:[%s10660_s6 + $0xe8] ss:$28 sps:$4 sm:$0xff]   ;;  %v7523_v6 = vld [vmem:[%s10660_s6 + $0xb4] ss:$28 sps:$4 sm:$0xff]  }
 0x3ec   :  { %5691 = vmatpush2.bf16.msra.mxu0 %v7485_v7  ;;  %5716 = vmatpush1.bf16.msra.mxu1 %v7524_v8  ;;  %v7521_v7 = vld [vmem:[%s10660_s6 + $0xb0] ss:$28 sps:$4 sm:$0xff]   ;;  %v7529_v8 = vld [vmem:[%s10660_s6 + $0x7c] ss:$28 sps:$4 sm:$0xff]  }
 0x3ed   :  { %5692 = vmatprep.subr.bf16.mxu0 %v7490_v36  ;;  %5717 = vmatprep.subr.bf16.mxu1 %v7532_v9  ;;  %v7527_v36 = vld [vmem:[%s10660_s6 + $0x78] ss:$28 sps:$4 sm:$0xff]   ;;  %v7535_v9 = vld [vmem:[%s10660_s6 + $0x44] ss:$28 sps:$4 sm:$0xff]  }
 0x3f0   :  { %5693 = vmatpush2.bf16.msra.mxu0 %v7488_v10  ;;  %5718 = vmatpush1.bf16.msra.mxu1 %v7530_v11  ;;  %v7533_v10 = vld [vmem:[%s10660_s6 + $0x40] ss:$28 sps:$4 sm:$0xff]   ;;  %v7541_v11 = vld [vmem:[%s10660_s6 + $0xc] ss:$28 sps:$4 sm:$0xff]  }
 0x3f1   :  { %5694 = vmatprep.subr.bf16.mxu0 %v7493_v12  ;;  %5719 = vmatprep.subr.bf16.mxu1 %v7538_v13  ;;  %v7539_v12 = vld [vmem:[%s10660_s6 + $0x8] ss:$28 sps:$4 sm:$0xff]   ;;  %v7547_v13 = vld [vmem:[%s10660_s6 + $0x354] ss:$28 sps:$4 sm:$0xff]  }
 0x3f4   :  { %5695 = vmatpush2.bf16.msra.mxu0 %v7491_v14  ;;  %5720 = vmatpush1.bf16.msra.mxu1 %v7536_v15  ;;  %v7545_v14 = vld [vmem:[%s10660_s6 + $0x350] ss:$28 sps:$4 sm:$0xff]   ;;  %v7553_v15 = vld [vmem:[%s10660_s6 + $0x31c] ss:$28 sps:$4 sm:$0xff]  }
 0x3f5   :  { %5746 = vmatprep.subr.bf16.mxu0 %v7499_v16  ;;  %5721 = vmatprep.subr.bf16.mxu1 %v7544_v17 }
 0x3f7   :  { %v2535_v20 = vpop.f32.mrf.mxu0 }
 0x3f8   :  { %v2576_v21 = vpop.f32.mrf.mxu1  ;;  %5722 = vmatpush2.bf16.msra.mxu1 %v7542_v18  ;;  %v7551_v18 = vld [vmem:[%s10660_s6 + $0x318] ss:$28 sps:$4 sm:$0xff]  }
 0x3f9   :  { %v2577_v23 = vadd.f32 %v2576_v21, %v2535_v20  ;;  %v2537_v24 = vpop.f32.mrf.mxu0  ;;  %5723 = vmatprep.subr.bf16.mxu1 %v7550_v19  ;;  %v7559_v21 = vld [vmem:[%s10660_s6 + $0x2e4] ss:$28 sps:$4 sm:$0xff]  }
 0x3fa   :  { %v2578_v26 = vpop.f32.mrf.mxu1 }
 0x3fb   :  { %v2681_v27 = vmul.f32 1.442695, %v2577_v23  ;;  %v2579_v28 = vadd.f32 %v2578_v26, %v2537_v24  ;;  %v2539_v29 = vpop.f32.mrf.mxu0  ;;  %vm2669_vm12 = vcmp.gt.f32.partialorder %v2577_v23, 0.0 }
 0x3fc   :  { %v2580_v30 = vpop.f32.mrf.mxu1  ;;  %5724 = vmatpush2.bf16.msra.mxu1 %v7548_v22 }
 0x3fd   :  { %8012 = vpow2.f32 %v2681_v27  ;;  %v2683_v32 = vmul.f32 1.442695, %v2579_v28  ;;  %v2540_v33 = vpop.f32.mrf.mxu0  ;;  %5725 = vmatprep.subr.bf16.mxu1 %v7556_v25  ;;  %vm2670_vm13 = vcmp.gt.f32.partialorder %v2579_v28, 0.0  ;;  %v7557_v27 = vld [vmem:[%s10660_s6 + $0x2e0] ss:$28 sps:$4 sm:$0xff]  }
 0x3fe   :  { %v2581_v37 = vpop.f32.mrf.mxu1  ;;  %v7565_v30 = vld [vmem:[%s10660_s6 + $0x2ac] ss:$28 sps:$4 sm:$0xff]   ;;  %v7571_v33 = vld [vmem:[%s10660_s6 + $0x274] ss:$28 sps:$4 sm:$0xff]  }
 0x3ff   :  { %8014 = vpow2.f32 %v2683_v32  ;;  %v7563_v32 = vld [vmem:[%s10660_s6 + $0x2a8] ss:$28 sps:$4 sm:$0xff]   ;;  %v7577_v37 = vld [vmem:[%s10660_s6 + $0x23c] ss:$28 sps:$4 sm:$0xff]  }
 0x400   :  { %5726 = vmatpush2.bf16.msra.mxu1 %v7554_v31 }
 0x401   :  { %5727 = vmatprep.subr.bf16.mxu1 %v7562_v35  ;;  %v7569_v35 = vld [vmem:[%s10660_s6 + $0x270] ss:$28 sps:$4 sm:$0xff]  }
 0x404   :  { %5728 = vmatpush2.bf16.msra.mxu1 %v7560_v38  ;;  %v7575_v38 = vld [vmem:[%s10660_s6 + $0x238] ss:$28 sps:$4 sm:$0xff]  }
 0x405   :  { %5729 = vmatprep.subr.bf16.mxu1 %v7568_v42  ;;  %v7583_v42 = vld [vmem:[%s10660_s6 + $0x204] ss:$28 sps:$4 sm:$0xff]  }
 0x408   :  { %5730 = vmatpush2.bf16.msra.mxu1 %v7566_v43 }
 0x409   :  { %5731 = vmatprep.subr.bf16.mxu1 %v7574_v44 }
 0x40a   :  { %v8013_v47 = vpop.eup %8012 }
 0x40b   :  { %v6643_v48 = vadd.f32 -1.0, %v8013_v47 }
 0x40c   :  { %v8015_v49 = vpop.eup %8014  ;;  %5732 = vmatpush2.bf16.msra.mxu1 %v7572_v45 }
 0x40d   :  { %v2701_v51 = vmul.f32 1.6732632, %v6643_v48  ;;  %v6644_v52 = vadd.f32 -1.0, %v8015_v49  ;;  %5733 = vmatprep.subr.bf16.mxu1 %v7580_v46  ;;  %v7581_v46 = vld [vmem:[%s10660_s6 + $0x200] ss:$28 sps:$4 sm:$0xff]  }
 0x40e   :  { %v7589_v49 = vld [vmem:[%s10660_s6 + $0x1cc] ss:$28 sps:$4 sm:$0xff]  }
 0x40f   :  { %v2709_v56 = vsel %vm2669_vm12, %v2577_v23, %v2701_v51  ;;  %v2702_v57 = vmul.f32 1.6732632, %v6644_v52  ;;  %v7587_v52 = vld [vmem:[%s10660_s6 + $0x1c8] ss:$28 sps:$4 sm:$0xff]  }
 0x410   :  { %5734 = vmatpush2.bf16.msra.mxu1 %v7578_v50  ;;  %v2717_v59 = vmul.f32 1.050701, %v2709_v56 }
 0x411   :  { %v2710_v60 = vsel %vm2670_vm13, %v2579_v28, %v2702_v57  ;;  %5735 = vmatprep.subr.bf16.mxu1 %v7586_v55  ;;  %v7595_v57 = vld [vmem:[%s10660_s6 + $0x894] ss:$28 sps:$4 sm:$0xff]  }
 0x412   :  { %v2718_v62 = vmul.f32 1.050701, %v2710_v60  ;;  %v9590_v41 = vpack.c.bf16 %v2717_v59, %v2717_v59  ;;  %v7590_v60 = vld [vmem:[%s10660_s6 + $0x510] ss:$28 sps:$4 sm:$0xff]  }
 0x414   :  { %v9585_v39 = vpack.c.bf16 %v2718_v62, %v2718_v62  ;;  %5736 = vmatpush2.bf16.msra.mxu1 %v7584_v58 }
 0x415   :  { %5787 = vmatprep.subr.bf16.mxu1 %v7592_v61  ;;  %v7593_v61 = vld [vmem:[%s10660_s6 + $0x890] ss:$28 sps:$4 sm:$0xff]  }
 0x416   :  { %5696 = vmatprep.mubr.bf16.mxu0 %v9585_v39 }
 0x417   :  { %5697 = vmatmul.mubr.bf16.vlgmr.msra.gmra.mxu0 %v9590_v41 }
 0x418   :  { %5747 = vmatpush1.bf16.msra.mxu0 %v7497_v63  ;;  %5778 = vmatprep.mubr.bf16.mxu0 %v9286_v34  ;;  %v7598_v63 = vld [vmem:[%s10660_s6 + $0x4dc] ss:$28 sps:$4 sm:$0xff]  }
 0x419   :  { %5748 = vmatprep.subr.bf16.mxu0 %v7505_v0  ;;  %v7601_v0 = vld [vmem:[%s10660_s6 + $0x85c] ss:$28 sps:$4 sm:$0xff]  }
 0x41c   :  { %5749 = vmatpush1.bf16.msra.mxu0 %v7503_v1  ;;  %v7596_v1 = vld [vmem:[%s10660_s6 + $0x4d8] ss:$28 sps:$4 sm:$0xff]  }
 0x41d   :  { %5750 = vmatprep.subr.bf16.mxu0 %v7511_v2  ;;  %v7599_v2 = vld [vmem:[%s10660_s6 + $0x858] ss:$28 sps:$4 sm:$0xff]  }
 0x420   :  { %5751 = vmatpush1.bf16.msra.mxu0 %v7509_v3  ;;  %v7604_v3 = vld [vmem:[%s10660_s6 + $0x4a4] ss:$28 sps:$4 sm:$0xff]  }
 0x421   :  { %5752 = vmatprep.subr.bf16.mxu0 %v7517_v4  ;;  %v7607_v4 = vld [vmem:[%s10660_s6 + $0x824] ss:$28 sps:$4 sm:$0xff]  }
 0x424   :  { %5753 = vmatpush1.bf16.msra.mxu0 %v7515_v5  ;;  %v7602_v5 = vld [vmem:[%s10660_s6 + $0x4a0] ss:$28 sps:$4 sm:$0xff]  }
 0x425   :  { %5754 = vmatprep.subr.bf16.mxu0 %v7523_v6  ;;  %v7605_v6 = vld [vmem:[%s10660_s6 + $0x820] ss:$28 sps:$4 sm:$0xff]  }
 0x428   :  { %5755 = vmatpush1.bf16.msra.mxu0 %v7521_v7  ;;  %v7610_v7 = vld [vmem:[%s10660_s6 + $0x46c] ss:$28 sps:$4 sm:$0xff]  }
 0x429   :  { %5756 = vmatprep.subr.bf16.mxu0 %v7529_v8  ;;  %v7613_v8 = vld [vmem:[%s10660_s6 + $0x7ec] ss:$28 sps:$4 sm:$0xff]  }
 0x42c   :  { %5757 = vmatpush1.bf16.msra.mxu0 %v7527_v36  ;;  %v7608_v36 = vld [vmem:[%s10660_s6 + $0x468] ss:$28 sps:$4 sm:$0xff]  }
 0x42d   :  { %5758 = vmatprep.subr.bf16.mxu0 %v7535_v9  ;;  %v7611_v9 = vld [vmem:[%s10660_s6 + $0x7e8] ss:$28 sps:$4 sm:$0xff]  }
 0x430   :  { %5759 = vmatpush1.bf16.msra.mxu0 %v7533_v10  ;;  %v7616_v10 = vld [vmem:[%s10660_s6 + $0x434] ss:$28 sps:$4 sm:$0xff]  }
 0x431   :  { %5760 = vmatprep.subr.bf16.mxu0 %v7541_v11  ;;  %v7619_v11 = vld [vmem:[%s10660_s6 + $0x7b4] ss:$28 sps:$4 sm:$0xff]  }
 0x434   :  { %5761 = vmatpush1.bf16.msra.mxu0 %v7539_v12  ;;  %v7614_v12 = vld [vmem:[%s10660_s6 + $0x430] ss:$28 sps:$4 sm:$0xff]  }
 0x435   :  { %5762 = vmatprep.subr.bf16.mxu0 %v7547_v13  ;;  %v7617_v13 = vld [vmem:[%s10660_s6 + $0x7b0] ss:$28 sps:$4 sm:$0xff]  }
 0x437   :  { %v2617_v16 = vpop.f32.mrf.mxu0 }
 0x438   :  { %5763 = vmatpush2.bf16.msra.mxu0 %v7545_v14  ;;  %v2658_v17 = vpop.f32.mrf.mxu1  ;;  %v7622_v14 = vld [vmem:[%s10660_s6 + $0x3fc] ss:$28 sps:$4 sm:$0xff]  }
 0x439   :  { %v2659_v19 = vadd.f32 %v2658_v17, %v2617_v16  ;;  %v2619_v20 = vpop.f32.mrf.mxu0  ;;  %5764 = vmatprep.subr.bf16.mxu0 %v7553_v15  ;;  %v7625_v15 = vld [vmem:[%s10660_s6 + $0x77c] ss:$28 sps:$4 sm:$0xff]  }
 0x43a   :  { %v2660_v22 = vpop.f32.mrf.mxu1  ;;  %v7620_v16 = vld [vmem:[%s10660_s6 + $0x3f8] ss:$28 sps:$4 sm:$0xff]  }
 0x43b   :  { %v2685_v23 = vmul.f32 1.442695, %v2659_v19  ;;  %v2661_v24 = vadd.f32 %v2660_v22, %v2619_v20  ;;  %v2621_v25 = vpop.f32.mrf.mxu0  ;;  %vm2671_vm14 = vcmp.gt.f32.partialorder %v2659_v19, 0.0  ;;  %v7623_v17 = vld [vmem:[%s10660_s6 + $0x778] ss:$28 sps:$4 sm:$0xff]  }
 0x43c   :  { %5765 = vmatpush2.bf16.msra.mxu0 %v7551_v18  ;;  %v2662_v26 = vpop.f32.mrf.mxu1  ;;  %v7628_v18 = vld [vmem:[%s10660_s6 + $0x3c4] ss:$28 sps:$4 sm:$0xff]   ;;  %v7634_v22 = vld [vmem:[%s10660_s6 + $0x38c] ss:$28 sps:$4 sm:$0xff]  }
 0x43d   :  { %8016 = vpow2.f32 %v2685_v23  ;;  %v2687_v28 = vmul.f32 1.442695, %v2661_v24  ;;  %v2622_v29 = vpop.f32.mrf.mxu0  ;;  %5766 = vmatprep.subr.bf16.mxu0 %v7559_v21  ;;  %vm2672_vm15 = vcmp.gt.f32.partialorder %v2661_v24, 0.0  ;;  %v7626_v20 = vld [vmem:[%s10660_s6 + $0x3c0] ss:$28 sps:$4 sm:$0xff]  }
 0x43e   :  { %v2663_v31 = vpop.f32.mrf.mxu1  ;;  %v7629_v21 = vld [vmem:[%s10660_s6 + $0x740] ss:$28 sps:$4 sm:$0xff]   ;;  %v7637_v23 = vld [vmem:[%s10660_s6 + $0x70c] ss:$28 sps:$4 sm:$0xff]   ;;  %v7640_v26 = vld [vmem:[%s10660_s6 + $0x6d4] ss:$28 sps:$4 sm:$0xff]  }
 0x43f   :  { %8018 = vpow2.f32 %v2687_v28  ;;  %v7635_v25 = vld [vmem:[%s10660_s6 + $0x708] ss:$28 sps:$4 sm:$0xff]   ;;  %v7638_v28 = vld [vmem:[%s10660_s6 + $0x6d0] ss:$28 sps:$4 sm:$0xff]   ;;  %v7649_v31 = vld [vmem:[%s10660_s6 + $0xa1c] ss:$28 sps:$4 sm:$0xff]  }
 0x440   :  { %5767 = vmatpush2.bf16.msra.mxu0 %v7557_v27  ;;  %v7643_v27 = vld [vmem:[%s10660_s6 + $0xa54] ss:$28 sps:$4 sm:$0xff]  }
 0x441   :  { %5768 = vmatprep.subr.bf16.mxu0 %v7565_v30  ;;  %v7641_v29 = vld [vmem:[%s10660_s6 + $0xa50] ss:$28 sps:$4 sm:$0xff]   ;;  %v7646_v30 = vld [vmem:[%s10660_s6 + $0x69c] ss:$28 sps:$4 sm:$0xff]  }
 0x444   :  { %5769 = vmatpush2.bf16.msra.mxu0 %v7563_v32 }
 0x445   :  { %5770 = vmatprep.subr.bf16.mxu0 %v7571_v33  ;;  %v7644_v33 = vld [vmem:[%s10660_s6 + $0x698] ss:$28 sps:$4 sm:$0xff]  }
 0x448   :  { %5771 = vmatpush2.bf16.msra.mxu0 %v7569_v35  ;;  %v7647_v35 = vld [vmem:[%s10660_s6 + $0xa18] ss:$28 sps:$4 sm:$0xff]  }
 0x449   :  { %5772 = vmatprep.subr.bf16.mxu0 %v7577_v37 }
 0x44a   :  { %v8017_v43 = vpop.eup %8016 }
 0x44b   :  { %v6645_v44 = vadd.f32 -1.0, %v8017_v43 }
 0x44c   :  { %v8019_v45 = vpop.eup %8018  ;;  %5773 = vmatpush2.bf16.msra.mxu0 %v7575_v38  ;;  %v7652_v38 = vld [vmem:[%s10660_s6 + $0x664] ss:$28 sps:$4 sm:$0xff]  }
 0x44d   :  { %v2703_v47 = vmul.f32 1.6732632, %v6645_v44  ;;  %v6646_v48 = vadd.f32 -1.0, %v8019_v45  ;;  %5774 = vmatprep.subr.bf16.mxu0 %v7583_v42  ;;  %v7655_v42 = vld [vmem:[%s10660_s6 + $0x9e4] ss:$28 sps:$4 sm:$0xff]  }
 0x44e   :  { %v7650_v44 = vld [vmem:[%s10660_s6 + $0x660] ss:$28 sps:$4 sm:$0xff]  }
 0x44f   :  { %v2711_v50 = vsel %vm2671_vm14, %v2659_v19, %v2703_v47  ;;  %v2704_v51 = vmul.f32 1.6732632, %v6646_v48  ;;  %v7631_v19 = vld [vmem:[%s10660_s6 + $0x744] ss:$28 sps:$4 sm:$0xff]   ;;  %v7658_v47 = vld [vmem:[%s10660_s6 + $0x62c] ss:$28 sps:$4 sm:$0xff]  }
 0x450   :  { %5775 = vmatpush2.bf16.msra.mxu0 %v7581_v46  ;;  %v2719_v55 = vmul.f32 1.050701, %v2711_v50  ;;  %v7653_v45 = vld [vmem:[%s10660_s6 + $0x9e0] ss:$28 sps:$4 sm:$0xff]   ;;  %v7661_v48 = vld [vmem:[%s10660_s6 + $0x9ac] ss:$28 sps:$4 sm:$0xff]  }
 0x451   :  { %v2712_v56 = vsel %vm2672_vm15, %v2661_v24, %v2704_v51  ;;  %5776 = vmatprep.subr.bf16.mxu0 %v7589_v49  ;;  %v7632_v24 = vld [vmem:[%s10660_s6 + $0x388] ss:$28 sps:$4 sm:$0xff]   ;;  %v7664_v51 = vld [vmem:[%s10660_s6 + $0x5f4] ss:$28 sps:$4 sm:$0xff]  }
 0x452   :  { %v2720_v58 = vmul.f32 1.050701, %v2712_v56  ;;  %v9696_v62 = vpack.c.bf16 %v2719_v55, %v2719_v55  ;;  %v7656_v49 = vld [vmem:[%s10660_s6 + $0x628] ss:$28 sps:$4 sm:$0xff]   ;;  %v7662_v55 = vld [vmem:[%s10660_s6 + $0x5f0] ss:$28 sps:$4 sm:$0xff]  }
 0x453   :  { %v7659_v50 = vld [vmem:[%s10660_s6 + $0x9a8] ss:$28 sps:$4 sm:$0xff]   ;;  %v7665_v56 = vld [vmem:[%s10660_s6 + $0x970] ss:$28 sps:$4 sm:$0xff]  }
 0x454   :  { %v9688_v59 = vpack.c.bf16 %v2720_v58, %v2720_v58  ;;  %5777 = vmatpush2.bf16.msra.mxu0 %v7587_v52  ;;  %v7667_v52 = vld [vmem:[%s10660_s6 + $0x974] ss:$28 sps:$4 sm:$0xff]   ;;  %v7673_v58 = vld [vmem:[%s10660_s6 + $0x93c] ss:$28 sps:$4 sm:$0xff]  }
 0x455   :  { %5828 = vmatprep.subr.bf16.mxu0 %v7595_v57  ;;  %v7670_v57 = vld [vmem:[%s10660_s6 + $0x5bc] ss:$28 sps:$4 sm:$0xff]  }
 0x456   :  { %5737 = vmatprep.mubr.bf16.mxu1 %v9688_v59 }
 0x457   :  { %5779 = vmatmul.mubr.bf16.vlgmr.msra.gmra.mxu0 %v9387_v40  ;;  %5738 = vmatmul.mubr.bf16.vlgmr.msra.gmra.mxu1 %v9696_v62 }
 0x458   :  { %5788 = vmatpush1.bf16.msra.mxu1 %v7590_v60  ;;  %5829 = vmatpush1.bf16.msra.mxu0 %v7593_v61  ;;  %v3243_v60 = vlaneseq  ;;  %v7668_v61 = vld [vmem:[%s10660_s6 + $0x5b8] ss:$28 sps:$4 sm:$0xff]  }
 0x459   :  { %5860 = vmatprep.mubr.bf16.mxu0 %v9585_v39  ;;  %5819 = vmatprep.mubr.bf16.mxu1 %v9441_v53 }
 0x45a   :  { %5789 = vmatprep.subr.bf16.mxu1 %v7598_v63  ;;  %5830 = vmatprep.subr.bf16.mxu0 %v7601_v0  ;;  %v7671_v63 = vld [vmem:[%s10660_s6 + $0x938] ss:$28 sps:$4 sm:$0xff]   ;;  %v7676_v0 = vld [vmem:[%s10660_s6 + $0x584] ss:$28 sps:$4 sm:$0xff]  }
 0x45c   :  { %5790 = vmatpush1.bf16.msra.mxu1 %v7596_v1  ;;  %5831 = vmatpush1.bf16.msra.mxu0 %v7599_v2  ;;  %v7679_v1 = vld [vmem:[%s10660_s6 + $0x904] ss:$28 sps:$4 sm:$0xff]   ;;  %v9869_v2 = vshrl.u32 %v3243_v60, 7  ;;  %v7731_v60 = vld [vmem:[%s10660_s6 + $0x10] ss:$28 sps:$4 sm:$0xff]  }
 0x45d   :  { %5791 = vmatprep.subr.bf16.mxu1 %v7604_v3  ;;  %5832 = vmatprep.subr.bf16.mxu0 %v7607_v4  ;;  %v7674_v3 = vld [vmem:[%s10660_s6 + $0x580] ss:$28 sps:$4 sm:$0xff]  }
 0x45e   :  { %v7677_v4 = vld [vmem:[%s10660_s6 + $0x900] ss:$28 sps:$4 sm:$0xff]  }
 0x460   :  { %5792 = vmatpush1.bf16.msra.mxu1 %v7602_v5  ;;  %5833 = vmatpush1.bf16.msra.mxu0 %v7605_v6  ;;  %v7682_v5 = vld [vmem:[%s10660_s6 + $0x54c] ss:$28 sps:$4 sm:$0xff]  }
 0x461   :  { %5793 = vmatprep.subr.bf16.mxu1 %v7610_v7  ;;  %5834 = vmatprep.subr.bf16.mxu0 %v7613_v8  ;;  %v7685_v6 = vld [vmem:[%s10660_s6 + $0x8cc] ss:$28 sps:$4 sm:$0xff]   ;;  %v3245_v7 = vsub.s32 0, %v9869_v2  ;;  %v3241_v8 = vld [vmem:[%s10661_s7] sm:$0xff] }
 0x464   :  { %5794 = vmatpush1.bf16.msra.mxu1 %v7608_v36  ;;  %5835 = vmatpush1.bf16.msra.mxu0 %v7611_v9  ;;  %v3249_v36 = vsub.s32 1, %v9869_v2  ;;  %v7680_v9 = vld [vmem:[%s10660_s6 + $0x548] ss:$28 sps:$4 sm:$0xff]  }
 0x465   :  { %5795 = vmatprep.subr.bf16.mxu1 %v7616_v10  ;;  %5836 = vmatprep.subr.bf16.mxu0 %v7619_v11  ;;  %v7683_v10 = vld [vmem:[%s10660_s6 + $0x8c8] ss:$28 sps:$4 sm:$0xff]   ;;  %v7688_v11 = vld [vmem:[%s10660_s6 + $0xc14] ss:$28 sps:$4 sm:$0xff]  }
 0x468   :  { %5796 = vmatpush1.bf16.msra.mxu1 %v7614_v12  ;;  %5837 = vmatpush1.bf16.msra.mxu0 %v7617_v13  ;;  %v7691_v12 = vld [vmem:[%s10660_s6 + $0x19c] ss:$28 sps:$4 sm:$0xff]   ;;  %v3246_v13 = vrot.slane %v3241_v8, %v3245_v7  ;;  %v7748_v7 = vld [vmem:[%s10660_s6 + $0xd64] ss:$28 sps:$4 sm:$0xff]  }
 0x469   :  { %5797 = vmatprep.subr.bf16.mxu1 %v7622_v14  ;;  %5838 = vmatprep.subr.bf16.mxu0 %v7625_v15  ;;  %v3250_v14 = vrot.slane %v3241_v8, %v3249_v36  ;;  %v7686_v15 = vld [vmem:[%s10660_s6 + $0xc10] ss:$28 sps:$4 sm:$0xff]   ;;  %v7746_v36 = vld [vmem:[%s10660_s6 + $0xd60] ss:$28 sps:$4 sm:$0xff]  }
 0x46a   :  { %v7751_v8 = vld [vmem:[%s10660_s6 + $0x2ec] ss:$28 sps:$4 sm:$0xff]  }
 0x46c   :  { %5798 = vmatpush1.bf16.msra.mxu1 %v7620_v16  ;;  %5839 = vmatpush1.bf16.msra.mxu0 %v7623_v17  ;;  %v7689_v16 = vld [vmem:[%s10660_s6 + $0x198] ss:$28 sps:$4 sm:$0xff]  }
 0x46d   :  { %5799 = vmatprep.subr.bf16.mxu1 %v7628_v18  ;;  %5840 = vmatprep.subr.bf16.mxu0 %v7631_v19  ;;  %v7694_v18 = vld [vmem:[%s10660_s6 + $0xbdc] ss:$28 sps:$4 sm:$0xff]   ;;  %v7697_v19 = vld [vmem:[%s10660_s6 + $0x164] ss:$28 sps:$4 sm:$0xff]  }
 0x470   :  { %5800 = vmatpush1.bf16.msra.mxu1 %v7626_v20  ;;  %5841 = vmatpush1.bf16.msra.mxu0 %v7629_v21 }
 0x471   :  { %5801 = vmatprep.subr.bf16.mxu1 %v7634_v22  ;;  %5842 = vmatprep.subr.bf16.mxu0 %v7637_v23  ;;  %v7692_v23 = vld [vmem:[%s10660_s6 + $0xbd8] ss:$28 sps:$4 sm:$0xff]  }
 0x474   :  { %5802 = vmatpush1.bf16.msra.mxu1 %v7632_v24  ;;  %5843 = vmatpush1.bf16.msra.mxu0 %v7635_v25  ;;  %v7695_v25 = vld [vmem:[%s10660_s6 + $0x160] ss:$28 sps:$4 sm:$0xff]  }
 0x475   :  { %5803 = vmatprep.subr.bf16.mxu1 %v7640_v26  ;;  %5844 = vmatprep.subr.bf16.mxu0 %v7643_v27  ;;  %v7700_v26 = vld [vmem:[%s10660_s6 + $0xba4] ss:$28 sps:$4 sm:$0xff]  }
 0x477   :  { %v9805_v32 = vpop.f32.mrf.mxu0 }
 0x478   :  { %5804 = vmatpush2.bf16.msra.mxu1 %v7638_v28  ;;  %5845 = vmatpush2.bf16.msra.mxu0 %v7641_v29  ;;  %v5617_v17 = vadd.f32 %v9805_v32, %v3246_v13  ;;  %v7703_v28 = vld [vmem:[%s10660_s6 + $0x12c] ss:$28 sps:$4 sm:$0xff]  }
 0x479   :  { %v9813_v37 = vpop.f32.mrf.mxu0  ;;  %5805 = vmatprep.subr.bf16.mxu1 %v7646_v30  ;;  %5846 = vmatprep.subr.bf16.mxu0 %v7649_v31  ;;  %v7698_v30 = vld [vmem:[%s10660_s6 + $0xba0] ss:$28 sps:$4 sm:$0xff]   ;;  %v7701_v32 = vld [vmem:[%s10660_s6 + $0x128] ss:$28 sps:$4 sm:$0xff]   ;;  %v7755_v13 = vld [vmem:[%s10660_s6 + $0x2b0] ss:$28 sps:$4 sm:$0xff]  }
 0x47a   :  { %v5619_v21 = vadd.f32 %v9813_v37, %v3250_v14  ;;  %v7704_v37 = vld [vmem:[%s10660_s6 + $0xb68] ss:$28 sps:$4 sm:$0xff]   ;;  %v7760_v14 = vld [vmem:[%s10660_s6 + $0xcf4] ss:$28 sps:$4 sm:$0xff]  }
 0x47b   :  { %v5620_v43 = vpop.f32.mrf.mxu0 }
 0x47c   :  { %5806 = vmatpush2.bf16.msra.mxu1 %v7644_v33  ;;  %5847 = vmatpush2.bf16.msra.mxu0 %v7647_v35  ;;  %v7706_v33 = vld [vmem:[%s10660_s6 + $0xb6c] ss:$28 sps:$4 sm:$0xff]   ;;  %v7709_v35 = vld [vmem:[%s10660_s6 + $0xf4] ss:$28 sps:$4 sm:$0xff]   ;;  %v7715_v43 = vld [vmem:[%s10660_s6 + $0xbc] ss:$28 sps:$4 sm:$0xff]  }
 0x47d   :  { %v5621_v46 = vpop.f32.mrf.mxu0  ;;  %5807 = vmatprep.subr.bf16.mxu1 %v7652_v38  ;;  %5848 = vmatprep.subr.bf16.mxu0 %v7655_v42  ;;  %v7707_v38 = vld [vmem:[%s10660_s6 + $0xf0] ss:$28 sps:$4 sm:$0xff]  }
 0x47e   :  { %v7712_v42 = vld [vmem:[%s10660_s6 + $0xb34] ss:$28 sps:$4 sm:$0xff]   ;;  %v7718_v46 = vld [vmem:[%s10660_s6 + $0xafc] ss:$28 sps:$4 sm:$0xff]  }
 0x480   :  { %5808 = vmatpush2.bf16.msra.mxu1 %v7650_v44  ;;  %5849 = vmatpush2.bf16.msra.mxu0 %v7653_v45  ;;  %v7710_v44 = vld [vmem:[%s10660_s6 + $0xb30] ss:$28 sps:$4 sm:$0xff]   ;;  %v7713_v45 = vld [vmem:[%s10660_s6 + $0xb8] ss:$28 sps:$4 sm:$0xff]  }
 0x481   :  { %5809 = vmatprep.subr.bf16.mxu1 %v7658_v47  ;;  %5850 = vmatprep.subr.bf16.mxu0 %v7661_v48  ;;  %v7721_v47 = vld [vmem:[%s10660_s6 + $0x84] ss:$28 sps:$4 sm:$0xff]   ;;  %v7716_v48 = vld [vmem:[%s10660_s6 + $0xaf8] ss:$28 sps:$4 sm:$0xff]  }
 0x484   :  { %5810 = vmatpush2.bf16.msra.mxu1 %v7656_v49  ;;  %5851 = vmatpush2.bf16.msra.mxu0 %v7659_v50  ;;  %v7719_v49 = vld [vmem:[%s10660_s6 + $0x80] ss:$28 sps:$4 sm:$0xff]  }
 0x485   :  { %5811 = vmatprep.subr.bf16.mxu1 %v7664_v51  ;;  %5852 = vmatprep.subr.bf16.mxu0 %v7667_v52  ;;  %v7724_v50 = vld [vmem:[%s10660_s6 + $0xac4] ss:$28 sps:$4 sm:$0xff]   ;;  %v7727_v51 = vld [vmem:[%s10660_s6 + $0x4c] ss:$28 sps:$4 sm:$0xff]  }
 0x486   :  { %v7722_v52 = vld [vmem:[%s10660_s6 + $0xac0] ss:$28 sps:$4 sm:$0xff]  }
 0x488   :  { %5812 = vmatpush2.bf16.msra.mxu1 %v7662_v55  ;;  %5853 = vmatpush2.bf16.msra.mxu0 %v7665_v56  ;;  %v7725_v55 = vld [vmem:[%s10660_s6 + $0x48] ss:$28 sps:$4 sm:$0xff]  }
 0x489   :  { %5813 = vmatprep.subr.bf16.mxu1 %v7670_v57  ;;  %5854 = vmatprep.subr.bf16.mxu0 %v7673_v58  ;;  %v7730_v56 = vld [vmem:[%s10660_s6 + $0xa8c] ss:$28 sps:$4 sm:$0xff]   ;;  %v7733_v57 = vld [vmem:[%s10660_s6 + $0x14] ss:$28 sps:$4 sm:$0xff]  }
 0x48a   :  { %v7728_v58 = vld [vmem:[%s10660_s6 + $0xa88] ss:$28 sps:$4 sm:$0xff]  }
 0x48c   :  { %5814 = vmatpush2.bf16.msra.mxu1 %v7668_v61  ;;  %5855 = vmatpush2.bf16.msra.mxu0 %v7671_v63  ;;  %v7736_v61 = vld [vmem:[%s10660_s6 + $0xdd4] ss:$28 sps:$4 sm:$0xff]   ;;  %v7739_v63 = vld [vmem:[%s10660_s6 + $0x35c] ss:$28 sps:$4 sm:$0xff]  }
 0x48d   :  { %5815 = vmatprep.subr.bf16.mxu1 %v7676_v0  ;;  %5856 = vmatprep.subr.bf16.mxu0 %v7679_v1  ;;  %v7734_v0 = vld [vmem:[%s10660_s6 + $0xdd0] ss:$28 sps:$4 sm:$0xff]   ;;  %v7737_v1 = vld [vmem:[%s10660_s6 + $0x358] ss:$28 sps:$4 sm:$0xff]  }
 0x490   :  { %5816 = vmatpush2.bf16.msra.mxu1 %v7674_v3  ;;  %5857 = vmatpush2.bf16.msra.mxu0 %v7677_v4  ;;  %v7742_v3 = vld [vmem:[%s10660_s6 + $0xd9c] ss:$28 sps:$4 sm:$0xff]   ;;  %v7745_v4 = vld [vmem:[%s10660_s6 + $0x324] ss:$28 sps:$4 sm:$0xff]  }
 0x491   :  { %5817 = vmatprep.subr.bf16.mxu1 %v7682_v5  ;;  %5858 = vmatprep.subr.bf16.mxu0 %v7685_v6  ;;  %v7740_v5 = vld [vmem:[%s10660_s6 + $0xd98] ss:$28 sps:$4 sm:$0xff]   ;;  %v7743_v6 = vld [vmem:[%s10660_s6 + $0x320] ss:$28 sps:$4 sm:$0xff]  }
 0x494   :  { %5818 = vmatpush2.bf16.msra.mxu1 %v7680_v9  ;;  %5859 = vmatpush2.bf16.msra.mxu0 %v7683_v10  ;;  %v7749_v9 = vld [vmem:[%s10660_s6 + $0x2e8] ss:$28 sps:$4 sm:$0xff]  }
 0x495   :  { %5869 = vmatprep.subr.bf16.mxu1 %v7688_v11  ;;  %5910 = vmatprep.subr.bf16.mxu0 %v7691_v12  ;;  %v7754_v10 = vld [vmem:[%s10660_s6 + $0xd2c] ss:$28 sps:$4 sm:$0xff]   ;;  %v7757_v11 = vld [vmem:[%s10660_s6 + $0x2b4] ss:$28 sps:$4 sm:$0xff]  }
 0x496   :  { %v7752_v12 = vld [vmem:[%s10660_s6 + $0xd28] ss:$28 sps:$4 sm:$0xff]  }
 0x497   :  { %5820 = vmatmul.mubr.bf16.vlgmr.msra.gmra.mxu1 %v9443_v54  ;;  %5861 = vmatmul.mubr.bf16.vlgmr.msra.gmra.mxu0 %v9590_v41  ;;  %v5657_v20 = vpop.f32.mrf.mxu1 }
 0x498   :  { %v9916_v22 = vadd.f32 %v5657_v20, %v5617_v17  ;;  %5870 = vmatpush1.bf16.msra.mxu1 %v7686_v15  ;;  %5901 = vmatprep.mubr.bf16.mxu1 %v9688_v59  ;;  %v7763_v15 = vld [vmem:[%s10660_s6 + $0x27c] ss:$28 sps:$4 sm:$0xff]  }
 0x499   :  { %5911 = vmatpush1.bf16.msra.mxu0 %v7689_v16  ;;  %5942 = vmatprep.mubr.bf16.mxu0 %v9286_v34  ;;  %v5659_v24 = vpop.f32.mrf.mxu1  ;;  %v7758_v16 = vld [vmem:[%s10660_s6 + $0xcf0] ss:$28 sps:$4 sm:$0xff]   ;;  %v7761_v17 = vld [vmem:[%s10660_s6 + $0x278] ss:$28 sps:$4 sm:$0xff]  }
 0x49a   :  { %v9929_v27 = vadd.f32 %v5659_v24, %v5619_v21  ;;  %5871 = vmatprep.subr.bf16.mxu1 %v7694_v18  ;;  %5912 = vmatprep.subr.bf16.mxu0 %v7697_v19  ;;  %v7766_v18 = vld [vmem:[%s10660_s6 + $0xcbc] ss:$28 sps:$4 sm:$0xff]   ;;  %v7769_v19 = vld [vmem:[%s10660_s6 + $0x244] ss:$28 sps:$4 sm:$0xff]   ;;  %v7775_v24 = vld [vmem:[%s10660_s6 + $0x20c] ss:$28 sps:$4 sm:$0xff]  }
 0x49b   :  { %v5661_v29 = vpop.f32.mrf.mxu1  ;;  %v7764_v20 = vld [vmem:[%s10660_s6 + $0xcb8] ss:$28 sps:$4 sm:$0xff]   ;;  %v7767_v21 = vld [vmem:[%s10660_s6 + $0x240] ss:$28 sps:$4 sm:$0xff]  }
 0x49c   :  { %5872 = vmatpush1.bf16.msra.mxu1 %v7692_v23  ;;  %v7772_v23 = vld [vmem:[%s10660_s6 + $0xc84] ss:$28 sps:$4 sm:$0xff]   ;;  %v7781_v29 = vld [vmem:[%s10660_s6 + $0x1d4] ss:$28 sps:$4 sm:$0xff]  }
 0x49d   :  { %5913 = vmatpush1.bf16.msra.mxu0 %v7695_v25  ;;  %v5662_v31 = vpop.f32.mrf.mxu1  ;;  %5873 = vmatprep.subr.bf16.mxu1 %v7700_v26  ;;  %v7770_v25 = vld [vmem:[%s10660_s6 + $0xc80] ss:$28 sps:$4 sm:$0xff]   ;;  %v7773_v26 = vld [vmem:[%s10660_s6 + $0x208] ss:$28 sps:$4 sm:$0xff]  }
 0x49e   :  { %5914 = vmatprep.subr.bf16.mxu0 %v7703_v28  ;;  %v7778_v28 = vld [vmem:[%s10660_s6 + $0xc4c] ss:$28 sps:$4 sm:$0xff]  }
 0x49f   :  { %v7779_v31 = vld [vmem:[%s10660_s6 + $0x1d0] ss:$28 sps:$4 sm:$0xff]  }
 0x4a0   :  { %5874 = vmatpush1.bf16.msra.mxu1 %v7698_v30  ;;  %v7776_v30 = vld [vmem:[%s10660_s6 + $0xc48] ss:$28 sps:$4 sm:$0xff]  }
 0x4a1   :  { %5915 = vmatpush1.bf16.msra.mxu0 %v7701_v32  ;;  %5875 = vmatprep.subr.bf16.mxu1 %v7706_v33  ;;  %v7784_v32 = vld [vmem:[%s10660_s6 + $0x51c] ss:$28 sps:$4 sm:$0xff]  }
 0x4a2   :  { %5916 = vmatprep.subr.bf16.mxu0 %v7709_v35  ;;  %v7787_v33 = vld [vmem:[%s10660_s6 + $0x89c] ss:$28 sps:$4 sm:$0xff]  }
 0x4a3   :  { %v7782_v35 = vld [vmem:[%s10660_s6 + $0x518] ss:$28 sps:$4 sm:$0xff]  }
 0x4a4   :  { %5876 = vmatpush1.bf16.msra.mxu1 %v7704_v37  ;;  %v7785_v37 = vld [vmem:[%s10660_s6 + $0x898] ss:$28 sps:$4 sm:$0xff]  }
 0x4a5   :  { %5917 = vmatpush1.bf16.msra.mxu0 %v7707_v38  ;;  %5877 = vmatprep.subr.bf16.mxu1 %v7712_v42  ;;  %v7790_v38 = vld [vmem:[%s10660_s6 + $0x4e4] ss:$28 sps:$4 sm:$0xff]  }
 0x4a6   :  { %5918 = vmatprep.subr.bf16.mxu0 %v7715_v43  ;;  %v7793_v43 = vld [vmem:[%s10660_s6 + $0x864] ss:$28 sps:$4 sm:$0xff]  }
 0x4a8   :  { %5878 = vmatpush1.bf16.msra.mxu1 %v7710_v44  ;;  %v7788_v44 = vld [vmem:[%s10660_s6 + $0x4e0] ss:$28 sps:$4 sm:$0xff]  }
 0x4a9   :  { %5919 = vmatpush1.bf16.msra.mxu0 %v7713_v45  ;;  %5879 = vmatprep.subr.bf16.mxu1 %v7718_v46  ;;  %v7791_v46 = vld [vmem:[%s10660_s6 + $0x860] ss:$28 sps:$4 sm:$0xff]  }
 0x4aa   :  { %5920 = vmatprep.subr.bf16.mxu0 %v7721_v47  ;;  %v7796_v47 = vld [vmem:[%s10660_s6 + $0x4ac] ss:$28 sps:$4 sm:$0xff]  }
 0x4ac   :  { %5880 = vmatpush1.bf16.msra.mxu1 %v7716_v48  ;;  %v7799_v48 = vld [vmem:[%s10660_s6 + $0x82c] ss:$28 sps:$4 sm:$0xff]  }
 0x4ad   :  { %5921 = vmatpush1.bf16.msra.mxu0 %v7719_v49  ;;  %5881 = vmatprep.subr.bf16.mxu1 %v7724_v50  ;;  %v7794_v50 = vld [vmem:[%s10660_s6 + $0x4a8] ss:$28 sps:$4 sm:$0xff]  }
 0x4ae   :  { %5922 = vmatprep.subr.bf16.mxu0 %v7727_v51 }
 0x4b0   :  { %5882 = vmatpush1.bf16.msra.mxu1 %v7722_v52  ;;  %v7797_v52 = vld [vmem:[%s10660_s6 + $0x828] ss:$28 sps:$4 sm:$0xff]  }
 0x4b1   :  { %5923 = vmatpush1.bf16.msra.mxu0 %v7725_v55  ;;  %5883 = vmatprep.subr.bf16.mxu1 %v7730_v56  ;;  %v7802_v55 = vld [vmem:[%s10660_s6 + $0x474] ss:$28 sps:$4 sm:$0xff]  }
 0x4b2   :  { %5924 = vmatprep.subr.bf16.mxu0 %v7733_v57  ;;  %v7805_v56 = vld [vmem:[%s10660_s6 + $0x7f4] ss:$28 sps:$4 sm:$0xff]  }
 0x4b3   :  { %v7800_v57 = vld [vmem:[%s10660_s6 + $0x470] ss:$28 sps:$4 sm:$0xff]  }
 0x4b4   :  { %5884 = vmatpush1.bf16.msra.mxu1 %v7728_v58  ;;  %v7803_v58 = vld [vmem:[%s10660_s6 + $0x7f0] ss:$28 sps:$4 sm:$0xff]  }
 0x4b5   :  { %5925 = vmatpush1.bf16.msra.mxu0 %v7731_v60  ;;  %5885 = vmatprep.subr.bf16.mxu1 %v7736_v61  ;;  %v7808_v60 = vld [vmem:[%s10660_s6 + $0x43c] ss:$28 sps:$4 sm:$0xff]  }
 0x4b6   :  { %5926 = vmatprep.subr.bf16.mxu0 %v7739_v63  ;;  %v7811_v61 = vld [vmem:[%s10660_s6 + $0x7bc] ss:$28 sps:$4 sm:$0xff]  }
 0x4b7   :  { %v7806_v63 = vld [vmem:[%s10660_s6 + $0x438] ss:$28 sps:$4 sm:$0xff]  }
 0x4b8   :  { %5886 = vmatpush2.bf16.msra.mxu1 %v7734_v0  ;;  %v7809_v0 = vld [vmem:[%s10660_s6 + $0x7b8] ss:$28 sps:$4 sm:$0xff]  }
 0x4b9   :  { %5927 = vmatpush2.bf16.msra.mxu0 %v7737_v1  ;;  %5887 = vmatprep.subr.bf16.mxu1 %v7742_v3  ;;  %v7814_v1 = vld [vmem:[%s10660_s6 + $0x404] ss:$28 sps:$4 sm:$0xff]  }
 0x4ba   :  { %5928 = vmatprep.subr.bf16.mxu0 %v7745_v4  ;;  %v7817_v3 = vld [vmem:[%s10660_s6 + $0x784] ss:$28 sps:$4 sm:$0xff]  }
 0x4bb   :  { %v7812_v4 = vld [vmem:[%s10660_s6 + $0x400] ss:$28 sps:$4 sm:$0xff]  }
 0x4bc   :  { %5888 = vmatpush2.bf16.msra.mxu1 %v7740_v5  ;;  %v7815_v5 = vld [vmem:[%s10660_s6 + $0x780] ss:$28 sps:$4 sm:$0xff]  }
 0x4bd   :  { %5929 = vmatpush2.bf16.msra.mxu0 %v7743_v6  ;;  %5889 = vmatprep.subr.bf16.mxu1 %v7748_v7  ;;  %v7820_v6 = vld [vmem:[%s10660_s6 + $0x3cc] ss:$28 sps:$4 sm:$0xff]  }
 0x4be   :  { %5930 = vmatprep.subr.bf16.mxu0 %v7751_v8  ;;  %v7823_v7 = vld [vmem:[%s10660_s6 + $0x74c] ss:$28 sps:$4 sm:$0xff]  }
 0x4bf   :  { %v7818_v8 = vld [vmem:[%s10660_s6 + $0x3c8] ss:$28 sps:$4 sm:$0xff]  }
 0x4c0   :  { %5890 = vmatpush2.bf16.msra.mxu1 %v7746_v36  ;;  %v7821_v36 = vld [vmem:[%s10660_s6 + $0x748] ss:$28 sps:$4 sm:$0xff]  }
 0x4c1   :  { %5931 = vmatpush2.bf16.msra.mxu0 %v7749_v9  ;;  %5891 = vmatprep.subr.bf16.mxu1 %v7754_v10  ;;  %v7826_v9 = vld [vmem:[%s10660_s6 + $0x394] ss:$28 sps:$4 sm:$0xff]  }
 0x4c2   :  { %5932 = vmatprep.subr.bf16.mxu0 %v7757_v11  ;;  %v7829_v10 = vld [vmem:[%s10660_s6 + $0x714] ss:$28 sps:$4 sm:$0xff]  }
 0x4c3   :  { %v7824_v11 = vld [vmem:[%s10660_s6 + $0x390] ss:$28 sps:$4 sm:$0xff]  }
 0x4c4   :  { %5892 = vmatpush2.bf16.msra.mxu1 %v7752_v12  ;;  %v7827_v12 = vld [vmem:[%s10660_s6 + $0x710] ss:$28 sps:$4 sm:$0xff]  }
 0x4c5   :  { %5933 = vmatpush2.bf16.msra.mxu0 %v7755_v13  ;;  %5893 = vmatprep.subr.bf16.mxu1 %v7760_v14  ;;  %v7832_v13 = vld [vmem:[%s10660_s6 + $0x6dc] ss:$28 sps:$4 sm:$0xff]  }
 0x4c6   :  { %5934 = vmatprep.subr.bf16.mxu0 %v7763_v15  ;;  %v7835_v14 = vld [vmem:[%s10660_s6 + $0xa5c] ss:$28 sps:$4 sm:$0xff]  }
 0x4c7   :  { %v7830_v15 = vld [vmem:[%s10660_s6 + $0x6d8] ss:$28 sps:$4 sm:$0xff]  }
 0x4c8   :  { %5894 = vmatpush2.bf16.msra.mxu1 %v7758_v16  ;;  %v7833_v16 = vld [vmem:[%s10660_s6 + $0xa58] ss:$28 sps:$4 sm:$0xff]  }
 0x4c9   :  { %5935 = vmatpush2.bf16.msra.mxu0 %v7761_v17  ;;  %5895 = vmatprep.subr.bf16.mxu1 %v7766_v18  ;;  %v7838_v17 = vld [vmem:[%s10660_s6 + $0x6a4] ss:$28 sps:$4 sm:$0xff]  }
 0x4ca   :  { %5936 = vmatprep.subr.bf16.mxu0 %v7769_v19  ;;  %v7841_v18 = vld [vmem:[%s10660_s6 + $0xa24] ss:$28 sps:$4 sm:$0xff]  }
 0x4cb   :  { %v7836_v19 = vld [vmem:[%s10660_s6 + $0x6a0] ss:$28 sps:$4 sm:$0xff]  }
 0x4cc   :  { %5896 = vmatpush2.bf16.msra.mxu1 %v7764_v20  ;;  %v7839_v20 = vld [vmem:[%s10660_s6 + $0xa20] ss:$28 sps:$4 sm:$0xff]  }
 0x4cd   :  { %5937 = vmatpush2.bf16.msra.mxu0 %v7767_v21  ;;  %5897 = vmatprep.subr.bf16.mxu1 %v7772_v23  ;;  %v7844_v21 = vld [vmem:[%s10660_s6 + $0x66c] ss:$28 sps:$4 sm:$0xff]  }
 0x4ce   :  { %5938 = vmatprep.subr.bf16.mxu0 %v7775_v24  ;;  %v7847_v23 = vld [vmem:[%s10660_s6 + $0x9ec] ss:$28 sps:$4 sm:$0xff]  }
 0x4cf   :  { %v7842_v24 = vld [vmem:[%s10660_s6 + $0x668] ss:$28 sps:$4 sm:$0xff]  }
 0x4d0   :  { %5898 = vmatpush2.bf16.msra.mxu1 %v7770_v25  ;;  %v7845_v25 = vld [vmem:[%s10660_s6 + $0x9e8] ss:$28 sps:$4 sm:$0xff]  }
 0x4d1   :  { %5939 = vmatpush2.bf16.msra.mxu0 %v7773_v26  ;;  %5899 = vmatprep.subr.bf16.mxu1 %v7778_v28  ;;  %v7850_v26 = vld [vmem:[%s10660_s6 + $0x634] ss:$28 sps:$4 sm:$0xff]  }
 0x4d2   :  { %5940 = vmatprep.subr.bf16.mxu0 %v7781_v29  ;;  %v7853_v28 = vld [vmem:[%s10660_s6 + $0x9b4] ss:$28 sps:$4 sm:$0xff]  }
 0x4d3   :  { %v7848_v29 = vld [vmem:[%s10660_s6 + $0x630] ss:$28 sps:$4 sm:$0xff]  }
 0x4d4   :  { %5900 = vmatpush2.bf16.msra.mxu1 %v7776_v30  ;;  %v7851_v30 = vld [vmem:[%s10660_s6 + $0x9b0] ss:$28 sps:$4 sm:$0xff]  }
 0x4d5   :  { %5941 = vmatpush2.bf16.msra.mxu0 %v7779_v31  ;;  %5951 = vmatprep.subr.bf16.mxu1 %v7784_v32  ;;  %v7856_v31 = vld [vmem:[%s10660_s6 + $0x5fc] ss:$28 sps:$4 sm:$0xff]  }
 0x4d6   :  { %5992 = vmatprep.subr.bf16.mxu0 %v7787_v33  ;;  %v7859_v32 = vld [vmem:[%s10660_s6 + $0x97c] ss:$28 sps:$4 sm:$0xff]  }
 0x4d7   :  { %5902 = vmatmul.mubr.bf16.vlgmr.msra.gmra.mxu1 %v9696_v62  ;;  %v10112_v42 = vpop.f32.mrf.mxu0  ;;  %v7854_v33 = vld [vmem:[%s10660_s6 + $0x5f8] ss:$28 sps:$4 sm:$0xff]  }
 0x4d8   :  { %5943 = vmatmul.mubr.bf16.vlgmr.msra.gmra.mxu0 %v9387_v40  ;;  %5952 = vmatpush1.bf16.msra.mxu1 %v7782_v35  ;;  %v7857_v35 = vld [vmem:[%s10660_s6 + $0x978] ss:$28 sps:$4 sm:$0xff]  }
 0x4d9   :  { %5983 = vmatprep.mubr.bf16.mxu1 %v9441_v53  ;;  %5993 = vmatpush1.bf16.msra.mxu0 %v7785_v37  ;;  %v10122_v45 = vpop.f32.mrf.mxu0  ;;  %v7862_v37 = vld [vmem:[%s10660_s6 + $0x5c4] ss:$28 sps:$4 sm:$0xff]  }
 0x4da   :  { %6024 = vmatprep.mubr.bf16.mxu0 %v9585_v39  ;;  %5953 = vmatprep.subr.bf16.mxu1 %v7790_v38  ;;  %v7865_v38 = vld [vmem:[%s10660_s6 + $0x944] ss:$28 sps:$4 sm:$0xff]  }
 0x4db   :  { %5994 = vmatprep.subr.bf16.mxu0 %v7793_v43  ;;  %v5702_v49 = vpop.f32.mrf.mxu0  ;;  %v7860_v43 = vld [vmem:[%s10660_s6 + $0x5c0] ss:$28 sps:$4 sm:$0xff]  }
 0x4dc   :  { %5954 = vmatpush1.bf16.msra.mxu1 %v7788_v44  ;;  %v7863_v44 = vld [vmem:[%s10660_s6 + $0x940] ss:$28 sps:$4 sm:$0xff]   ;;  %v7869_v49 = vld [vmem:[%s10660_s6 + $0x908] ss:$28 sps:$4 sm:$0xff]  }
 0x4dd   :  { %5995 = vmatpush1.bf16.msra.mxu0 %v7791_v46  ;;  %v5703_v51 = vpop.f32.mrf.mxu0  ;;  %5955 = vmatprep.subr.bf16.mxu1 %v7796_v47  ;;  %v7868_v46 = vld [vmem:[%s10660_s6 + $0x58c] ss:$28 sps:$4 sm:$0xff]  }
 0x4de   :  { %5996 = vmatprep.subr.bf16.mxu0 %v7799_v48  ;;  %v7871_v47 = vld [vmem:[%s10660_s6 + $0x90c] ss:$28 sps:$4 sm:$0xff]   ;;  %v7877_v51 = vld [vmem:[%s10660_s6 + $0x8d4] ss:$28 sps:$4 sm:$0xff]  }
 0x4df   :  { %v7866_v48 = vld [vmem:[%s10660_s6 + $0x588] ss:$28 sps:$4 sm:$0xff]  }
 0x4e0   :  { %5956 = vmatpush1.bf16.msra.mxu1 %v7794_v50  ;;  %v7874_v50 = vld [vmem:[%s10660_s6 + $0x554] ss:$28 sps:$4 sm:$0xff]  }
 0x4e1   :  { %5997 = vmatpush1.bf16.msra.mxu0 %v7797_v52  ;;  %5957 = vmatprep.subr.bf16.mxu1 %v7802_v55  ;;  %v7872_v52 = vld [vmem:[%s10660_s6 + $0x550] ss:$28 sps:$4 sm:$0xff]  }
 0x4e2   :  { %5998 = vmatprep.subr.bf16.mxu0 %v7805_v56  ;;  %v7875_v55 = vld [vmem:[%s10660_s6 + $0x8d0] ss:$28 sps:$4 sm:$0xff]   ;;  %v7880_v56 = vld [vmem:[%s10660_s6 + $0xc1c] ss:$28 sps:$4 sm:$0xff]  }
 0x4e4   :  { %5958 = vmatpush1.bf16.msra.mxu1 %v7800_v57  ;;  %v7881_v57 = vld [vmem:[%s10660_s6 + $0x360] ss:$28 sps:$4 sm:$0xff]  }
 0x4e5   :  { %5999 = vmatpush1.bf16.msra.mxu0 %v7803_v58  ;;  %5959 = vmatprep.subr.bf16.mxu1 %v7808_v60  ;;  %v7878_v58 = vld [vmem:[%s10660_s6 + $0xc18] ss:$28 sps:$4 sm:$0xff]   ;;  %v7882_v60 = vld [vmem:[%s10660_s6 + $0x1a0] ss:$28 sps:$4 sm:$0xff]  }
 0x4e6   :  { %6000 = vmatprep.subr.bf16.mxu0 %v7811_v61  ;;  %v5699_v61 = vadd.f32 %v10112_v42, %v9916_v22  ;;  %v7883_v42 = vld [vmem:[%s10660_s6 + $0xbe0] ss:$28 sps:$4 sm:$0xff]  }
 0x4e8   :  { %5960 = vmatpush1.bf16.msra.mxu1 %v7806_v63  ;;  %v7885_v63 = vld [vmem:[%s10660_s6 + $0xbe4] ss:$28 sps:$4 sm:$0xff]  }
 0x4e9   :  { %6001 = vmatpush1.bf16.msra.mxu0 %v7809_v0  ;;  %5961 = vmatprep.subr.bf16.mxu1 %v7814_v1 }
 0x4ea   :  { %6002 = vmatprep.subr.bf16.mxu0 %v7817_v3  ;;  %v7886_v3 = vld [vmem:[%s10660_s6 + $0x328] ss:$28 sps:$4 sm:$0xff]  }
 0x4ec   :  { %5962 = vmatpush1.bf16.msra.mxu1 %v7812_v4  ;;  %v5701_v4 = vadd.f32 %v10122_v45, %v9929_v27  ;;  %v7890_v27 = vld [vmem:[%s10660_s6 + $0xbac] ss:$28 sps:$4 sm:$0xff]  }
 0x4ed   :  { %6003 = vmatpush1.bf16.msra.mxu0 %v7815_v5  ;;  %5963 = vmatprep.subr.bf16.mxu1 %v7820_v6 }
 0x4ee   :  { %6004 = vmatprep.subr.bf16.mxu0 %v7823_v7  ;;  %v7887_v7 = vld [vmem:[%s10660_s6 + $0x168] ss:$28 sps:$4 sm:$0xff]  }
 0x4f0   :  { %5964 = vmatpush1.bf16.msra.mxu1 %v7818_v8 }
 0x4f1   :  { %6005 = vmatpush1.bf16.msra.mxu0 %v7821_v36  ;;  %5965 = vmatprep.subr.bf16.mxu1 %v7826_v9  ;;  %v7891_v36 = vld [vmem:[%s10660_s6 + $0x2f0] ss:$28 sps:$4 sm:$0xff]  }
 0x4f2   :  { %6006 = vmatprep.subr.bf16.mxu0 %v7829_v10 }
 0x4f4   :  { %5966 = vmatpush1.bf16.msra.mxu1 %v7824_v11 }
 0x4f5   :  { %6007 = vmatpush1.bf16.msra.mxu0 %v7827_v12  ;;  %5967 = vmatprep.subr.bf16.mxu1 %v7832_v13  ;;  %v7888_v12 = vld [vmem:[%s10660_s6 + $0xba8] ss:$28 sps:$4 sm:$0xff]  }
 0x4f6   :  { %6008 = vmatprep.subr.bf16.mxu0 %v7835_v14 }
 0x4f8   :  { %5968 = vmatpush2.bf16.msra.mxu1 %v7830_v15  ;;  %v7895_v15 = vld [vmem:[%s10660_s6 + $0xb74] ss:$28 sps:$4 sm:$0xff]  }
 0x4f9   :  { %6009 = vmatpush2.bf16.msra.mxu0 %v7833_v16  ;;  %5969 = vmatprep.subr.bf16.mxu1 %v7838_v17  ;;  %v7896_v16 = vld [vmem:[%s10660_s6 + $0x2b8] ss:$28 sps:$4 sm:$0xff]   ;;  %v7893_v17 = vld [vmem:[%s10660_s6 + $0xb70] ss:$28 sps:$4 sm:$0xff]  }
 0x4fa   :  { %6010 = vmatprep.subr.bf16.mxu0 %v7841_v18  ;;  %v7897_v18 = vld [vmem:[%s10660_s6 + $0xf8] ss:$28 sps:$4 sm:$0xff]  }
 0x4fc   :  { %5970 = vmatpush2.bf16.msra.mxu1 %v7836_v19  ;;  %v7900_v19 = vld [vmem:[%s10660_s6 + $0xb3c] ss:$28 sps:$4 sm:$0xff]  }
 0x4fd   :  { %6011 = vmatpush2.bf16.msra.mxu0 %v7839_v20  ;;  %5971 = vmatprep.subr.bf16.mxu1 %v7844_v21  ;;  %v7901_v20 = vld [vmem:[%s10660_s6 + $0x280] ss:$28 sps:$4 sm:$0xff]   ;;  %v7898_v21 = vld [vmem:[%s10660_s6 + $0xb38] ss:$28 sps:$4 sm:$0xff]  }
 0x4fe   :  { %6012 = vmatprep.subr.bf16.mxu0 %v7847_v23  ;;  %v7902_v23 = vld [vmem:[%s10660_s6 + $0xc0] ss:$28 sps:$4 sm:$0xff]  }
 0x500   :  { %5972 = vmatpush2.bf16.msra.mxu1 %v7842_v24  ;;  %v7905_v24 = vld [vmem:[%s10660_s6 + $0xb04] ss:$28 sps:$4 sm:$0xff]  }
 0x501   :  { %6013 = vmatpush2.bf16.msra.mxu0 %v7845_v25  ;;  %5973 = vmatprep.subr.bf16.mxu1 %v7850_v26  ;;  %v7906_v25 = vld [vmem:[%s10660_s6 + $0x248] ss:$28 sps:$4 sm:$0xff]   ;;  %v7903_v26 = vld [vmem:[%s10660_s6 + $0xb00] ss:$28 sps:$4 sm:$0xff]  }
 0x502   :  { %6014 = vmatprep.subr.bf16.mxu0 %v7853_v28 }
 0x504   :  { %5974 = vmatpush2.bf16.msra.mxu1 %v7848_v29  ;;  %v7907_v29 = vld [vmem:[%s10660_s6 + $0x88] ss:$28 sps:$4 sm:$0xff]  }
 0x505   :  { %6015 = vmatpush2.bf16.msra.mxu0 %v7851_v30  ;;  %5975 = vmatprep.subr.bf16.mxu1 %v7856_v31  ;;  %v7910_v30 = vld [vmem:[%s10660_s6 + $0xacc] ss:$28 sps:$4 sm:$0xff]  }
 0x506   :  { %6016 = vmatprep.subr.bf16.mxu0 %v7859_v32  ;;  %v7911_v32 = vld [vmem:[%s10660_s6 + $0x210] ss:$28 sps:$4 sm:$0xff]  }
 0x508   :  { %5976 = vmatpush2.bf16.msra.mxu1 %v7854_v33 }
 0x509   :  { %6017 = vmatpush2.bf16.msra.mxu0 %v7857_v35  ;;  %5977 = vmatprep.subr.bf16.mxu1 %v7862_v37  ;;  %v7908_v37 = vld [vmem:[%s10660_s6 + $0xac8] ss:$28 sps:$4 sm:$0xff]  }
 0x50a   :  { %6018 = vmatprep.subr.bf16.mxu0 %v7865_v38  ;;  %v7912_v38 = vld [vmem:[%s10660_s6 + $0x50] ss:$28 sps:$4 sm:$0xff]  }
 0x50c   :  { %5978 = vmatpush2.bf16.msra.mxu1 %v7860_v43  ;;  %v7915_v43 = vld [vmem:[%s10660_s6 + $0xa94] ss:$28 sps:$4 sm:$0xff]  }
 0x50d   :  { %6019 = vmatpush2.bf16.msra.mxu0 %v7863_v44  ;;  %5979 = vmatprep.subr.bf16.mxu1 %v7868_v46  ;;  %v7916_v44 = vld [vmem:[%s10660_s6 + $0x1d8] ss:$28 sps:$4 sm:$0xff]   ;;  %v7913_v46 = vld [vmem:[%s10660_s6 + $0xa90] ss:$28 sps:$4 sm:$0xff]  }
 0x50e   :  { %6020 = vmatprep.subr.bf16.mxu0 %v7871_v47  ;;  %v7917_v47 = vld [vmem:[%s10660_s6 + $0x18] ss:$28 sps:$4 sm:$0xff]  }
 0x510   :  { %5980 = vmatpush2.bf16.msra.mxu1 %v7866_v48  ;;  %v7920_v48 = vld [vmem:[%s10660_s6 + $0xddc] ss:$28 sps:$4 sm:$0xff]  }
 0x511   :  { %6021 = vmatpush2.bf16.msra.mxu0 %v7869_v49  ;;  %5981 = vmatprep.subr.bf16.mxu1 %v7874_v50  ;;  %v7921_v49 = vld [vmem:[%s10660_s6 + $0xa60] ss:$28 sps:$4 sm:$0xff]   ;;  %v7918_v50 = vld [vmem:[%s10660_s6 + $0xdd8] ss:$28 sps:$4 sm:$0xff]  }
 0x512   :  { %6022 = vmatprep.subr.bf16.mxu0 %v7877_v51  ;;  %v7922_v51 = vld [vmem:[%s10660_s6 + $0x8a0] ss:$28 sps:$4 sm:$0xff]  }
 0x514   :  { %5982 = vmatpush2.bf16.msra.mxu1 %v7872_v52  ;;  %v7925_v52 = vld [vmem:[%s10660_s6 + $0xda4] ss:$28 sps:$4 sm:$0xff]  }
 0x515   :  { %6023 = vmatpush2.bf16.msra.mxu0 %v7875_v55  ;;  %6033 = vmatprep.subr.bf16.mxu1 %v7880_v56  ;;  %v7926_v55 = vld [vmem:[%s10660_s6 + $0xa28] ss:$28 sps:$4 sm:$0xff]   ;;  %v7923_v56 = vld [vmem:[%s10660_s6 + $0xda0] ss:$28 sps:$4 sm:$0xff]  }
 0x516   :  { %7111 = vmatprep.subr.bf16.mxu0 %v7881_v57 }
 0x517   :  { %v10313_v0 = vpop.f32.mrf.mxu0  ;;  %5984 = vmatmul.mubr.bf16.vlgmr.msra.gmra.mxu1 %v9443_v54  ;;  %v5739_v1 = vpop.f32.mrf.mxu1 }
 0x518   :  { %6025 = vmatmul.mubr.bf16.vlgmr.msra.gmra.mxu0 %v9590_v41  ;;  %v5740_v22 = vadd.f32 %v5739_v1, %v5699_v61  ;;  %6034 = vmatpush1.bf16.msra.mxu1 %v7878_v58  ;;  %v7927_v58 = vld [vmem:[%s10660_s6 + $0x868] ss:$28 sps:$4 sm:$0xff]   ;;  %v7935_v1 = vld [vmem:[%s10660_s6 + $0xd34] ss:$28 sps:$4 sm:$0xff]  }
 0x519   :  { %6065 = vmatprep.mubr.bf16.mxu1 %v9688_v59  ;;  %7112 = vmatpush3.bf16.msra.mxu0 %v7882_v60  ;;  %v10326_v5 = vpop.f32.mrf.mxu0  ;;  %v5741_v6 = vpop.f32.mrf.mxu1  ;;  %v7930_v60 = vld [vmem:[%s10660_s6 + $0xd6c] ss:$28 sps:$4 sm:$0xff]  }
 0x51a   :  { %v7095_v45 = vmul.f32 -1.442695, %v5740_v22  ;;  %6106 = vmatprep.mubr.bf16.mxu0 %v9286_v34  ;;  %v5742_v8 = vadd.f32 %v5741_v6, %v5701_v4  ;;  %6035 = vmatprep.subr.bf16.mxu1 %v7885_v63  ;;  %v7892_v34 = vld [vmem:[%s10660_s6 + $0x130] ss:$28 sps:$4 sm:$0xff]   ;;  %v7937_v22 = vld [vmem:[%s10660_s6 + $0x7f8] ss:$28 sps:$4 sm:$0xff]  }
 0x51b   :  { %v5784_v9 = vpop.f32.mrf.mxu0  ;;  %7113 = vmatprep.subr.bf16.mxu0 %v7886_v3  ;;  %v5743_v10 = vpop.f32.mrf.mxu1  ;;  %v7932_v63 = vld [vmem:[%s10660_s6 + $0x830] ss:$28 sps:$4 sm:$0xff]   ;;  %v7936_v3 = vld [vmem:[%s10660_s6 + $0x9b8] ss:$28 sps:$4 sm:$0xff]   ;;  %v7941_v6 = vld [vmem:[%s10660_s6 + $0x980] ss:$28 sps:$4 sm:$0xff]  }
 0x51c   :  { %8020 = vpow2.f32 %v7095_v45  ;;  %v7096_v11 = vmul.f32 -1.442695, %v5742_v8  ;;  %6036 = vmatpush1.bf16.msra.mxu1 %v7883_v42  ;;  %v7933_v4 = vld [vmem:[%s10660_s6 + $0xd30] ss:$28 sps:$4 sm:$0xff]   ;;  %v7940_v42 = vld [vmem:[%s10660_s6 + $0xcfc] ss:$28 sps:$4 sm:$0xff]  }
 0x51d   :  { %7114 = vmatpush3.bf16.msra.mxu0 %v7887_v7  ;;  %v5785_v13 = vpop.f32.mrf.mxu0  ;;  %v5744_v14 = vpop.f32.mrf.mxu1  ;;  %6037 = vmatprep.subr.bf16.mxu1 %v7890_v27  ;;  %v7938_v7 = vld [vmem:[%s10660_s6 + $0xcf8] ss:$28 sps:$4 sm:$0xff]   ;;  %v7942_v27 = vld [vmem:[%s10660_s6 + $0x7c0] ss:$28 sps:$4 sm:$0xff]   ;;  %v7946_v8 = vld [vmem:[%s10660_s6 + $0x948] ss:$28 sps:$4 sm:$0xff]  }
 0x51e   :  { %8022 = vpow2.f32 %v7096_v11  ;;  %7115 = vmatprep.subr.bf16.mxu0 %v7891_v36  ;;  %v7945_v45 = vld [vmem:[%s10660_s6 + $0xcc4] ss:$28 sps:$4 sm:$0xff]   ;;  %v7950_v10 = vld [vmem:[%s10660_s6 + $0xc8c] ss:$28 sps:$4 sm:$0xff]   ;;  %v7955_v14 = vld [vmem:[%s10660_s6 + $0xc54] ss:$28 sps:$4 sm:$0xff]  }
 0x51f   :  { %v7943_v36 = vld [vmem:[%s10660_s6 + $0xcc0] ss:$28 sps:$4 sm:$0xff]   ;;  %v7947_v9 = vld [vmem:[%s10660_s6 + $0x788] ss:$28 sps:$4 sm:$0xff]   ;;  %v7951_v11 = vld [vmem:[%s10660_s6 + $0x910] ss:$28 sps:$4 sm:$0xff]  }
 0x520   :  { %6038 = vmatpush1.bf16.msra.mxu1 %v7888_v12  ;;  %v7948_v12 = vld [vmem:[%s10660_s6 + $0xc88] ss:$28 sps:$4 sm:$0xff]   ;;  %v7952_v13 = vld [vmem:[%s10660_s6 + $0x750] ss:$28 sps:$4 sm:$0xff]  }
 0x521   :  { %7116 = vmatpush3.bf16.msra.mxu0 %v7892_v34  ;;  %6039 = vmatprep.subr.bf16.mxu1 %v7895_v15  ;;  %v7956_v34 = vld [vmem:[%s10660_s6 + $0x8d8] ss:$28 sps:$4 sm:$0xff]   ;;  %v7953_v15 = vld [vmem:[%s10660_s6 + $0xc50] ss:$28 sps:$4 sm:$0xff]  }
 0x522   :  { %7117 = vmatprep.subr.bf16.mxu0 %v7896_v16  ;;  %v7957_v16 = vld [vmem:[%s10660_s6 + $0x718] ss:$28 sps:$4 sm:$0xff]  }
 0x524   :  { %6040 = vmatpush1.bf16.msra.mxu1 %v7893_v17  ;;  %v7958_v17 = vld [vmem:[%s10660_s6 + $0x6e0] ss:$28 sps:$4 sm:$0xff]  }
 0x525   :  { %7118 = vmatpush3.bf16.msra.mxu0 %v7897_v18  ;;  %6041 = vmatprep.subr.bf16.mxu1 %v7900_v19  ;;  %v7959_v18 = vld [vmem:[%s10660_s6 + $0x520] ss:$28 sps:$4 sm:$0xff]   ;;  %v7960_v19 = vld [vmem:[%s10660_s6 + $0x6a8] ss:$28 sps:$4 sm:$0xff]  }
 0x526   :  { %7119 = vmatprep.subr.bf16.mxu0 %v7901_v20 }
 0x528   :  { %6042 = vmatpush1.bf16.msra.mxu1 %v7898_v21 }
 0x529   :  { %v8021_v28 = vpop.eup %8020  ;;  %7120 = vmatpush3.bf16.msra.mxu0 %v7902_v23  ;;  %6043 = vmatprep.subr.bf16.mxu1 %v7905_v24  ;;  %v7961_v23 = vld [vmem:[%s10660_s6 + $0x4e8] ss:$28 sps:$4 sm:$0xff]  }
 0x52a   :  { %v6255_v31 = vadd.f32 1.0, %v8021_v28  ;;  %7121 = vmatprep.subr.bf16.mxu0 %v7906_v25 }
 0x52b   :  { %v8023_v33 = vpop.eup %8022 }
 0x52c   :  { %8024 = vrcp.f32 %v6255_v31  ;;  %v6256_v35 = vadd.f32 1.0, %v8023_v33  ;;  %6044 = vmatpush1.bf16.msra.mxu1 %v7903_v26  ;;  %v7962_v26 = vld [vmem:[%s10660_s6 + $0x670] ss:$28 sps:$4 sm:$0xff]   ;;  %v7966_v33 = vld [vmem:[%s10660_s6 + $0x600] ss:$28 sps:$4 sm:$0xff]  }
 0x52d   :  { %7122 = vmatpush3.bf16.msra.mxu0 %v7907_v29  ;;  %6045 = vmatprep.subr.bf16.mxu1 %v7910_v30 }
 0x52e   :  { %8026 = vrcp.f32 %v6256_v35  ;;  %7123 = vmatprep.subr.bf16.mxu0 %v7911_v32  ;;  %v7965_v32 = vld [vmem:[%s10660_s6 + $0x478] ss:$28 sps:$4 sm:$0xff]   ;;  %v7967_v35 = vld [vmem:[%s10660_s6 + $0x440] ss:$28 sps:$4 sm:$0xff]  }
 0x530   :  { %6046 = vmatpush1.bf16.msra.mxu1 %v7908_v37  ;;  %v7968_v37 = vld [vmem:[%s10660_s6 + $0x5c8] ss:$28 sps:$4 sm:$0xff]  }
 0x531   :  { %7124 = vmatpush3.bf16.msra.mxu0 %v7912_v38  ;;  %6047 = vmatprep.subr.bf16.mxu1 %v7915_v43  ;;  %v7969_v38 = vld [vmem:[%s10660_s6 + $0x408] ss:$28 sps:$4 sm:$0xff]   ;;  %v7970_v43 = vld [vmem:[%s10660_s6 + $0x590] ss:$28 sps:$4 sm:$0xff]  }
 0x532   :  { %7125 = vmatprep.subr.bf16.mxu0 %v7916_v44  ;;  %v7971_v44 = vld [vmem:[%s10660_s6 + $0x3d0] ss:$28 sps:$4 sm:$0xff]  }
 0x534   :  { %6048 = vmatpush1.bf16.msra.mxu1 %v7913_v46  ;;  %v7972_v46 = vld [vmem:[%s10660_s6 + $0x558] ss:$28 sps:$4 sm:$0xff]  }
 0x535   :  { %7126 = vmatpush3.bf16.msra.mxu0 %v7917_v47  ;;  %6049 = vmatprep.subr.bf16.mxu1 %v7920_v48  ;;  %v7973_v47 = vld [vmem:[%s10660_s6 + $0x398] ss:$28 sps:$4 sm:$0xff]   ;;  %v7974_v48 = vld [vmem:[%s10660_s6 + $0xde0] ss:$28 sps:$4 sm:$0xff]  }
 0x536   :  { %7155 = vmatprep.subr.bf16.mxu0 %v7921_v49  ;;  %v7975_v49 = vld [vmem:[%s10660_s6 + $0xc20] ss:$28 sps:$4 sm:$0xff]  }
 0x538   :  { %6107 = vmatmul.mubr.bf16.vlgmr.msra.gmra.mxu0 %v9387_v40  ;;  %6050 = vmatpush2.bf16.msra.mxu1 %v7918_v50  ;;  %v7931_v40 = vld [vmem:[%s10660_s6 + $0x9f0] ss:$28 sps:$4 sm:$0xff]   ;;  %v7976_v50 = vld [vmem:[%s10660_s6 + $0xda8] ss:$28 sps:$4 sm:$0xff]  }
 0x539   :  { %v8025_v57 = vpop.eup %8024  ;;  %7156 = vmatpush3.bf16.msra.mxu0 %v7922_v51  ;;  %6186 = vmatprep.mubr.bf16.mxu0 %v9585_v39  ;;  %v7928_v39 = vld [vmem:[%s10660_s6 + $0xd68] ss:$28 sps:$4 sm:$0xff]  }
 0x53a   :  { %6276 = vst [vmem:[%s10662_s8] sm:$0xff] %v8025_v57  ;;  %6051 = vmatprep.subr.bf16.mxu1 %v7925_v52  ;;  %7157 = vmatprep.subr.bf16.mxu0 %v7926_v55  ;;  %v7977_v51 = vld [vmem:[%s10660_s6 + $0xbe8] ss:$28 sps:$4 sm:$0xff]   ;;  %v7978_v52 = vld [vmem:[%s10660_s6 + $0xd70] ss:$28 sps:$4 sm:$0xff]   ;;  %v7983_v57 = vld [vmem:[%s10660_s6 + $0xb40] ss:$28 sps:$4 sm:$0xff]  }
 0x53b   :  { %v8027_v61 = vpop.eup %8026  ;;  %v7979_v55 = vld [vmem:[%s10660_s6 + $0xbb0] ss:$28 sps:$4 sm:$0xff]  }
 0x53c   :  { %6277 = vst [vmem:[%s10662_s8 + $0x8] sm:$0xff] %v8027_v61  ;;  %6052 = vmatpush2.bf16.msra.mxu1 %v7923_v56  ;;  %v7982_v56 = vld [vmem:[%s10660_s6 + $0xd00] ss:$28 sps:$4 sm:$0xff]   ;;  %v7986_v61 = vld [vmem:[%s10660_s6 + $0xc90] ss:$28 sps:$4 sm:$0xff]  }
 0x53d   :  { %7158 = vmatpush3.bf16.msra.mxu0 %v7927_v58  ;;  %6053 = vmatprep.subr.bf16.mxu1 %v7930_v60  ;;  %v7984_v58 = vld [vmem:[%s10660_s6 + $0xcc8] ss:$28 sps:$4 sm:$0xff]   ;;  %v3253_v60 = vsub.s32 2, %v9869_v2 }
 0x53e   :  { %7159 = vmatprep.subr.bf16.mxu0 %v7931_v40  ;;  %v7985_v40 = vld [vmem:[%s10660_s6 + $0xb08] ss:$28 sps:$4 sm:$0xff]  }
 0x540   :  { %6054 = vmatpush2.bf16.msra.mxu1 %v7928_v39  ;;  %v3257_v39 = vsub.s32 3, %v9869_v2 }
 0x541   :  { %7160 = vmatpush3.bf16.msra.mxu0 %v7932_v63  ;;  %6055 = vmatprep.subr.bf16.mxu1 %v7935_v1  ;;  %v10613_v63 = vld [vmem:[%s10661_s7] sm:$0xff] }
 0x542   :  { %7161 = vmatprep.subr.bf16.mxu0 %v7936_v3  ;;  %v3254_v1 = vrot.slane %v10613_v63, %v3253_v60  ;;  %v7987_v3 = vld [vmem:[%s10660_s6 + $0xad0] ss:$28 sps:$4 sm:$0xff]  }
 0x544   :  { %6056 = vmatpush2.bf16.msra.mxu1 %v7933_v4  ;;  %v7988_v4 = vld [vmem:[%s10660_s6 + $0xc58] ss:$28 sps:$4 sm:$0xff]  }
 0x545   :  { %7162 = vmatpush3.bf16.msra.mxu0 %v7937_v22  ;;  %6057 = vmatprep.subr.bf16.mxu1 %v7940_v42  ;;  %v3258_v22 = vrot.slane %v10613_v63, %v3257_v39  ;;  %v5781_v42 = vadd.f32 %v10313_v0, %v3254_v1 }
 0x546   :  { %7163 = vmatprep.subr.bf16.mxu0 %v7941_v6  ;;  %v7989_v6 = vld [vmem:[%s10660_s6 + $0xa98] ss:$28 sps:$4 sm:$0xff]  }
 0x548   :  { %6058 = vmatpush2.bf16.msra.mxu1 %v7938_v7  ;;  %v5783_v7 = vadd.f32 %v10326_v5, %v3258_v22 }
 0x549   :  { %7164 = vmatpush3.bf16.msra.mxu0 %v7942_v27  ;;  %6059 = vmatprep.subr.bf16.mxu1 %v7945_v45 }
 0x54a   :  { %7165 = vmatprep.subr.bf16.mxu0 %v7946_v8 }
 0x54c   :  { %6060 = vmatpush2.bf16.msra.mxu1 %v7943_v36 }
 0x54d   :  { %7166 = vmatpush3.bf16.msra.mxu0 %v7947_v9  ;;  %6061 = vmatprep.subr.bf16.mxu1 %v7950_v10 }
 0x54e   :  { %7167 = vmatprep.subr.bf16.mxu0 %v7951_v11 }
 0x550   :  { %6062 = vmatpush2.bf16.msra.mxu1 %v7948_v12 }
 0x551   :  { %7168 = vmatpush3.bf16.msra.mxu0 %v7952_v13  ;;  %6063 = vmatprep.subr.bf16.mxu1 %v7955_v14 }
 0x552   :  { %7169 = vmatprep.subr.bf16.mxu0 %v7956_v34 }
 0x554   :  { %6064 = vmatpush2.bf16.msra.mxu1 %v7953_v15 }
 0x555   :  { %7170 = vmatpush3.bf16.msra.mxu0 %v7957_v16  ;;  %7133 = vmatprep.subr.bf16.mxu1 %v7958_v17 }
 0x557   :  { %v10517_v20 = vpop.f32.mrf.mxu1  ;;  %v10519_v21 = vpop.f32.mrf.mxu0  ;;  %6066 = vmatmul.mubr.bf16.vlgmr.msra.gmra.mxu1 %v9696_v62 }
 0x558   :  { %6187 = vmatmul.mubr.bf16.vlgmr.msra.gmra.mxu0 %v9590_v41  ;;  %7134 = vmatpush3.bf16.msra.mxu1 %v7959_v18  ;;  %v7963_v41 = vld [vmem:[%s10660_s6 + $0x4b0] ss:$28 sps:$4 sm:$0xff]   ;;  %v5822_v27 = vadd.f32 %v10517_v20, %v5781_v42 }
 0x559   :  { %6146 = vmatprep.mubr.bf16.mxu1 %v9441_v53  ;;  %v10527_v24 = vpop.f32.mrf.mxu1  ;;  %v10529_v25 = vpop.f32.mrf.mxu0  ;;  %7135 = vmatprep.subr.bf16.mxu1 %v7960_v19  ;;  %v7964_v53 = vld [vmem:[%s10660_s6 + $0x638] ss:$28 sps:$4 sm:$0xff]  }
 0x55a   :  { %v5824_v45 = vadd.f32 %v10527_v24, %v5783_v7  ;;  %v5863_v8 = vadd.f32 %v10519_v21, %v5822_v27 }
 0x55b   :  { %v5825_v28 = vpop.f32.mrf.mxu1  ;;  %v5866_v29 = vpop.f32.mrf.mxu0 }
 0x55c   :  { %7136 = vmatpush3.bf16.msra.mxu1 %v7961_v23  ;;  %v5865_v0 = vadd.f32 %v10529_v25, %v5824_v45 }
 0x55d   :  { %v5826_v30 = vpop.f32.mrf.mxu1  ;;  %v5867_v31 = vpop.f32.mrf.mxu0  ;;  %7137 = vmatprep.subr.bf16.mxu1 %v7962_v26 }
 0x560   :  { %7138 = vmatpush3.bf16.msra.mxu1 %v7963_v41 }
 0x561   :  { %7139 = vmatprep.subr.bf16.mxu1 %v7964_v53 }
 0x564   :  { %7140 = vmatpush3.bf16.msra.mxu1 %v7965_v32 }
 0x565   :  { %7141 = vmatprep.subr.bf16.mxu1 %v7966_v33 }
 0x568   :  { %7142 = vmatpush3.bf16.msra.mxu1 %v7967_v35 }
 0x569   :  { %7143 = vmatprep.subr.bf16.mxu1 %v7968_v37 }
 0x56c   :  { %7144 = vmatpush3.bf16.msra.mxu1 %v7969_v38  ;;  %v3261_v38 = vsub.s32 4, %v9869_v2 }
 0x56d   :  { %7145 = vmatprep.subr.bf16.mxu1 %v7970_v43  ;;  %v3265_v43 = vsub.s32 5, %v9869_v2 }
 0x570   :  { %7146 = vmatpush3.bf16.msra.mxu1 %v7971_v44  ;;  %v3262_v44 = vrot.slane %v10613_v63, %v3261_v38 }
 0x571   :  { %7147 = vmatprep.subr.bf16.mxu1 %v7972_v46  ;;  %v3266_v46 = vrot.slane %v10613_v63, %v3265_v43 }
 0x574   :  { %7148 = vmatpush3.bf16.msra.mxu1 %v7973_v47 }
 0x575   :  { %7177 = vmatprep.subr.bf16.mxu1 %v7974_v48 }
 0x577   :  { %6147 = vmatmul.mubr.bf16.vlgmr.msra.gmra.mxu1 %v9443_v54  ;;  %v7980_v54 = vld [vmem:[%s10660_s6 + $0xd38] ss:$28 sps:$4 sm:$0xff]  }
 0x578   :  { %7178 = vmatpush3.bf16.msra.mxu1 %v7975_v49  ;;  %6226 = vmatprep.mubr.bf16.mxu1 %v9688_v59  ;;  %v7981_v59 = vld [vmem:[%s10660_s6 + $0xb78] ss:$28 sps:$4 sm:$0xff]  }
 0x579   :  { %7179 = vmatprep.subr.bf16.mxu1 %v7976_v50 }
 0x57c   :  { %7180 = vmatpush3.bf16.msra.mxu1 %v7977_v51 }
 0x57d   :  { %7181 = vmatprep.subr.bf16.mxu1 %v7978_v52 }
 0x580   :  { %7182 = vmatpush3.bf16.msra.mxu1 %v7979_v55 }
 0x581   :  { %7183 = vmatprep.subr.bf16.mxu1 %v7980_v54 }
 0x584   :  { %7184 = vmatpush3.bf16.msra.mxu1 %v7981_v59 }
 0x585   :  { %7185 = vmatprep.subr.bf16.mxu1 %v7982_v56 }
 0x588   :  { %7186 = vmatpush3.bf16.msra.mxu1 %v7983_v57 }
 0x589   :  { %7187 = vmatprep.subr.bf16.mxu1 %v7984_v58 }
 0x58c   :  { %7188 = vmatpush3.bf16.msra.mxu1 %v7985_v40 }
 0x58d   :  { %7189 = vmatprep.subr.bf16.mxu1 %v7986_v61 }
 0x590   :  { %7190 = vmatpush3.bf16.msra.mxu1 %v7987_v3 }
 0x591   :  { %7191 = vmatprep.subr.bf16.mxu1 %v7988_v4 }
 0x594   :  { %7192 = vmatpush3.bf16.msra.mxu1 %v7989_v6 }
 0x597   :  { %v5903_v36 = vpop.f32.mrf.mxu1  ;;  %6227 = vmatmul.mubr.bf16.vlgmr.msra.gmra.mxu1 %v9696_v62 }
 0x598   :  { %v5904_v9 = vadd.f32 %v5903_v36, %v5863_v8  ;;  %v5944_v10 = vpop.f32.mrf.mxu0 }
 0x599   :  { %v5905_v11 = vpop.f32.mrf.mxu1  ;;  %v5945_v47 = vadd.f32 %v5944_v10, %v3262_v44 }
 0x59a   :  { %v7097_v12 = vmul.f32 -1.442695, %v5904_v9  ;;  %v5906_v13 = vadd.f32 %v5905_v11, %v5865_v0  ;;  %v5946_v14 = vpop.f32.mrf.mxu0  ;;  %v3269_v9 = vsub.s32 6, %v9869_v2 }
 0x59b   :  { %v5907_v34 = vpop.f32.mrf.mxu1  ;;  %v5947_v48 = vadd.f32 %v5946_v14, %v3266_v46 }
 0x59c   :  { %8028 = vpow2.f32 %v7097_v12  ;;  %v7098_v5 = vmul.f32 -1.442695, %v5906_v13  ;;  %v5948_v15 = vpop.f32.mrf.mxu0  ;;  %v3270_v10 = vrot.slane %v10613_v63, %v3269_v9 }
 0x59d   :  { %v5908_v16 = vpop.f32.mrf.mxu1 }
 0x59e   :  { %8030 = vpow2.f32 %v7098_v5  ;;  %v5949_v17 = vpop.f32.mrf.mxu0 }
 0x5a9   :  { %v8029_v18 = vpop.eup %8028 }
 0x5aa   :  { %v6257_v19 = vadd.f32 1.0, %v8029_v18 }
 0x5ab   :  { %v8031_v20 = vpop.eup %8030 }
 0x5ac   :  { %8032 = vrcp.f32 %v6257_v19  ;;  %v6258_v62 = vadd.f32 1.0, %v8031_v20 }
 0x5ae   :  { %8034 = vrcp.f32 %v6258_v62 }
 0x5b9   :  { %v8033_v21 = vpop.eup %8032 }
 0x5ba   :  { %6278 = vst [vmem:[%s10662_s8 + $0x10] sm:$0xff] %v8033_v21 }
 0x5bb   :  { %v8035_v23 = vpop.eup %8034 }
 0x5bc   :  { %6279 = vst [vmem:[%s10662_s8 + $0x18] sm:$0xff] %v8035_v23 }
 0x5d7   :  { %v5985_v24 = vpop.f32.mrf.mxu1 }
 0x5d8   :  { %v6026_v25 = vpop.f32.mrf.mxu0  ;;  %v5986_v49 = vadd.f32 %v5985_v24, %v5945_v47 }
 0x5d9   :  { %v5987_v26 = vpop.f32.mrf.mxu1 }
 0x5da   :  { %v6028_v28 = vpop.f32.mrf.mxu0  ;;  %v5988_v50 = vadd.f32 %v5987_v26, %v5947_v48  ;;  %v6027_v51 = vadd.f32 %v6026_v25, %v5986_v49 }
 0x5db   :  { %v5989_v29 = vpop.f32.mrf.mxu1 }
 0x5dc   :  { %v6030_v41 = vpop.f32.mrf.mxu0  ;;  %v6029_v55 = vadd.f32 %v6028_v28, %v5988_v50 }
 0x5dd   :  { %v5990_v30 = vpop.f32.mrf.mxu1 }
 0x5de   :  { %v6031_v31 = vpop.f32.mrf.mxu0 }
 0x5f8   :  { %v7127_v53 = vpop.f32.mrf.mxu0 }
 0x5fa   :  { %v7128_v32 = vpop.f32.mrf.mxu0 }
 0x5fb   :  { %v7129_v33 = vadd.f32 %v7128_v32, %v7127_v53 }
 0x5fc   :  { %v7130_v35 = vpop.f32.mrf.mxu0 }
 0x5fd   :  { %v6109_v12 = vadd.f32 %v7129_v33, %v3270_v10 }
 0x5fe   :  { %v7131_v37 = vpop.f32.mrf.mxu0 }
 0x617   :  { %v6067_v52 = vpop.f32.mrf.mxu1 }
 0x618   :  { %v6068_v54 = vadd.f32 %v6067_v52, %v6027_v51  ;;  %v7171_v59 = vpop.f32.mrf.mxu0 }
 0x619   :  { %v6069_v56 = vpop.f32.mrf.mxu1 }
 0x61a   :  { %v7099_v57 = vmul.f32 -1.442695, %v6068_v54  ;;  %v6070_v58 = vadd.f32 %v6069_v56, %v6029_v55  ;;  %v7172_v60 = vpop.f32.mrf.mxu0 }
 0x61b   :  { %v6071_v40 = vpop.f32.mrf.mxu1  ;;  %v7173_v34 = vadd.f32 %v7172_v60, %v7171_v59 }
 0x61c   :  { %8036 = vpow2.f32 %v7099_v57  ;;  %v7100_v61 = vmul.f32 -1.442695, %v6070_v58  ;;  %v7174_v39 = vpop.f32.mrf.mxu0 }
 0x61d   :  { %v6072_v1 = vpop.f32.mrf.mxu1 }
 0x61e   :  { %8038 = vpow2.f32 %v7100_v61  ;;  %v7175_v3 = vpop.f32.mrf.mxu0 }
 0x629   :  { %v8037_v4 = vpop.eup %8036 }
 0x62a   :  { %v6259_v22 = vadd.f32 1.0, %v8037_v4 }
 0x62b   :  { %v8039_v42 = vpop.eup %8038 }
 0x62c   :  { %8040 = vrcp.f32 %v6259_v22  ;;  %v6260_v6 = vadd.f32 1.0, %v8039_v42 }
 0x62e   :  { %8042 = vrcp.f32 %v6260_v6 }
 0x637   :  { %v7149_v7 = vpop.f32.mrf.mxu1 }
 0x639   :  { %v8041_v27 = vpop.eup %8040  ;;  %v7150_v45 = vpop.f32.mrf.mxu1 }
 0x63a   :  { %6280 = vst [vmem:[%s10662_s8 + $0x20] sm:$0xff] %v8041_v27  ;;  %v7151_v11 = vadd.f32 %v7150_v45, %v7149_v7 }
 0x63b   :  { %v8043_v8 = vpop.eup %8042  ;;  %v7152_v36 = vpop.f32.mrf.mxu1 }
 0x63c   :  { %6281 = vst [vmem:[%s10662_s8 + $0x28] sm:$0xff] %v8043_v8  ;;  %v6149_v13 = vadd.f32 %v7151_v11, %v6109_v12 }
 0x63d   :  { %v7153_v0 = vpop.f32.mrf.mxu1 }
 0x63e   :  { %v6189_v15 = vadd.f32 %v7173_v34, %v6149_v13 }
 0x657   :  { %v7193_v14 = vpop.f32.mrf.mxu1 }
 0x659   :  { %v7194_v5 = vpop.f32.mrf.mxu1 }
 0x65a   :  { %v7195_v16 = vadd.f32 %v7194_v5, %v7193_v14 }
 0x65b   :  { %v7196_v17 = vpop.f32.mrf.mxu1 }
 0x65c   :  { %v6229_v18 = vadd.f32 %v7195_v16, %v6189_v15 }
 0x65d   :  { %v7197_v19 = vpop.f32.mrf.mxu1 }
 0x65e   :  { %v7101_v20 = vmul.f32 -1.442695, %v6229_v18 }
 0x660   :  { %8044 = vpow2.f32 %v7101_v20 }
 0x66d   :  { %v8045_v62 = vpop.eup %8044 }
 0x66e   :  { %v6261_v21 = vadd.f32 1.0, %v8045_v62 }
 0x670   :  { %8046 = vrcp.f32 %v6261_v21 }
 0x67d   :  { %v8047_v23 = vpop.eup %8046 }
 0x67e   :  { %6282 = vst [vmem:[%s10662_s8 + $0x30] sm:$0xff] %v8047_v23 }

</bundles_post_ra>
